<compile_context>
chip_gen: v7x
topology: tpu7x:2x2x1
jax: 0.10.0
libtpu: 0.0.40
codegen_flags: <defaults>
</compile_context>

<pallas_src>
import numpy as np

import jax
import jax.numpy as jnp
from jax.experimental import pallas as pl
from jax.experimental.pallas import tpu as pltpu


# ------------------------------ fused kernel --------------------------------

def _convnet_kernel(x_ref,                                  # (B*32, 128) input, lanes = C*W (pad)
                    b1_ref, bc1_ref,                        # (640, 168) bf16, (1, 168) f32
                    e1_ref, o1_ref,                         # (168, 128) bf16 lane-pool selectors
                    b2_ref, bc2_ref,                        # (640, 160) bf16, (1, 160) f32
                    e2_ref, o2_ref,                         # (160, 128) bf16 lane-pool selectors
                    w1_ref, bf1_ref,                        # (640, 120) bf16, (1, 120) f32
                    w2_ref, bf2_ref,                        # (120, 84)  bf16, (1, 84)  f32
                    w3_ref, bf3_ref,                        # (84, 128)  bf16, (1, 128) f32
                    out_ref,                                # (B, 128) f32 (first 10 lanes = logits)
                    wmax1_ref, wmax2_ref):                  # VMEM scratch (B*32,128), (B*16,128)
    f32 = jnp.float32
    bf16 = jnp.bfloat16
    r1 = wmax1_ref.shape[0]          # B*32
    r2 = wmax2_ref.shape[0]          # B*16
    bb = out_ref.shape[0]            # B

    # ---- conv1 (5x5, 3->6) as ONE deep-K matmul, fused bias + ReLU ----------
    # lhs1[r, di*128 + l] = x[r + di, l]  (rows r in [28,32) of each image are
    # garbage and never consumed downstream).
    x = x_ref[...]                                                     # (r1, 128) f32
    lhs1 = jnp.concatenate(
        [x] + [pltpu.roll(x, r1 - di, 0) for di in range(1, 5)], axis=1)   # (r1, 640)
    c1 = jnp.dot(lhs1.astype(bf16), b1_ref[...], preferred_element_type=f32)
    c1 = jnp.maximum(c1 + bc1_ref[...], 0.0)                           # (r1, 168)

    # ---- maxpool 2x2 #1: lane compaction via 0/1 matmuls, row pool strided --
    c1b = c1.astype(bf16)
    wmax1_ref[...] = jnp.maximum(
        jnp.dot(c1b, e1_ref[...], preferred_element_type=f32),
        jnp.dot(c1b, o1_ref[...], preferred_element_type=f32))        # (r1, 128)
    p1 = jnp.maximum(wmax1_ref[pl.ds(0, r2, 2), :],
                     wmax1_ref[pl.ds(1, r2, 2), :])                    # (r2, 128)

    # ---- conv2 (5x5, 6->16) as ONE deep-K matmul, fused bias + ReLU ---------
    lhs2 = jnp.concatenate(
        [p1] + [pltpu.roll(p1, r2 - di, 0) for di in range(1, 5)], axis=1)  # (r2, 640)
    c2 = jnp.dot(lhs2.astype(bf16), b2_ref[...], preferred_element_type=f32)
    c2 = jnp.maximum(c2 + bc2_ref[...], 0.0)                           # (r2, 160)

    # ---- maxpool 2x2 #2 (lane matmul + strided row max fused with fc1 gather)
    c2b = c2.astype(bf16)
    wmax2_ref[...] = jnp.maximum(
        jnp.dot(c2b, e2_ref[...], preferred_element_type=f32),
        jnp.dot(c2b, o2_ref[...], preferred_element_type=f32))        # (r2, 128)
    # piece_h[b, :] = max over conv2 rows {2h, 2h+1} of image b  (h = 0..4)
    fpieces = [jnp.maximum(wmax2_ref[pl.ds(2 * h, bb, 16), :],
                           wmax2_ref[pl.ds(2 * h + 1, bb, 16), :])
               for h in range(5)]
    lhsf = jnp.concatenate(fpieces, axis=1)                            # (bb, 640)

    # ---- fc1 (400->120) + ReLU, fc2 (120->84) + ReLU, fc3 (84->10) ----------
    f1 = jnp.maximum(jnp.dot(lhsf.astype(bf16), w1_ref[...],
                             preferred_element_type=f32) + bf1_ref[...], 0.0)  # (bb, 120)
    f2 = jnp.maximum(jnp.dot(f1.astype(bf16), w2_ref[...],
                             preferred_element_type=f32) + bf2_ref[...], 0.0)  # (bb, 84)
    out_ref[...] = (jnp.dot(f2.astype(bf16), w3_ref[...],
                            preferred_element_type=f32) + bf3_ref[...])        # (bb, 128)


# ------------------------- host-side weight packing -------------------------

def _banded_merged(w, w_in, lane_pad=128):
    """Conv weight (Cout,Cin,k,k) -> merged banded weight (k*lane_pad, Cout*OW).

    With input layout X[row, ci*w_in + x] and LHS[r, di*lane_pad + l] = X[r+di, l]:
        Y[r, co*OW + ow] = LHS[r] @ B
    """
    c_out, c_in, k, _ = w.shape
    ow = w_in - k + 1
    b = np.zeros((k * lane_pad, c_out * ow), np.float32)
    ar = np.arange(ow)
    for di in range(k):
        for dj in range(k):
            for ci in range(c_in):
                for co in range(c_out):
                    b[di * lane_pad + ci * w_in + dj + ar, co * ow + ar] = w[co, ci, di, dj]
    return b


def _lane_pool_selectors(channels, ow, out_pad=128):
    """0/1 selectors picking even/odd width positions inside each channel block."""
    pw = ow // 2
    e = np.zeros((channels * ow, out_pad), np.float32)
    o = np.zeros((channels * ow, out_pad), np.float32)
    for c in range(channels):
        for p in range(pw):
            e[c * ow + 2 * p, c * pw + p] = 1.0
            o[c * ow + 2 * p + 1, c * pw + p] = 1.0
    return e, o


def pack_params(params):
    """Repack PyTorch-layout parameters into the kernel's matmul-ready form."""
    w1 = np.asarray(params["conv1_w"], np.float32)
    b1 = np.asarray(params["conv1_b"], np.float32)
    w2 = np.asarray(params["conv2_w"], np.float32)
    b2 = np.asarray(params["conv2_b"], np.float32)
    fw1 = np.asarray(params["fc1_w"], np.float32)
    fb1 = np.asarray(params["fc1_b"], np.float32)
    fw2 = np.asarray(params["fc2_w"], np.float32)
    fb2 = np.asarray(params["fc2_b"], np.float32)
    fw3 = np.asarray(params["fc3_w"], np.float32)
    fb3 = np.asarray(params["fc3_b"], np.float32)

    e1, o1 = _lane_pool_selectors(6, 28)         # (168, 128)
    e2, o2 = _lane_pool_selectors(16, 10)        # (160, 128)

    # fc1 weight (120, 400), PyTorch flat index c*25 + h*5 + w
    #   -> merged row index h*128 + c*5 + w  (lanes 80..127 of each h-block zero)
    w1m = np.zeros((5 * 128, 120), np.float32)
    fw1_r = fw1.reshape(120, 16, 5, 5)
    for h in range(5):
        w1m[h * 128: h * 128 + 80, :] = fw1_r[:, :, h, :].reshape(120, 80).T

    w3p = np.zeros((84, 128), np.float32)
    w3p[:, :10] = fw3.T
    b3p = np.zeros((1, 128), np.float32)
    b3p[0, :10] = fb3

    mm = lambda a: jnp.asarray(a, jnp.bfloat16)   # MXU operands -> bf16
    fp = lambda a: jnp.asarray(a, jnp.float32)    # biases stay f32
    return {
        "B1m": mm(_banded_merged(w1, 32)),                     # (640, 168)
        "bc1": fp(np.repeat(b1, 28).reshape(1, 168)),
        "E1p": mm(e1), "O1p": mm(o1),
        "B2m": mm(_banded_merged(w2, 14)),                     # (640, 160)
        "bc2": fp(np.repeat(b2, 10).reshape(1, 160)),
        "E2p": mm(e2), "O2p": mm(o2),
        "W1m": mm(w1m), "bf1": fp(fb1.reshape(1, 120)),
        "W2t": mm(fw2.T), "bf2": fp(fb2.reshape(1, 84)),
        "W3tp": mm(w3p), "bf3p": fp(b3p),
    }


_WEIGHT_ORDER = ["B1m", "bc1", "E1p", "O1p", "B2m", "bc2", "E2p", "O2p",
                 "W1m", "bf1", "W2t", "bf2", "W3tp", "bf3p"]


# ------------------------------ forward wrapper ------------------------------

def convnet_forward(x, packed, block_b=32):
    """x: (N, 3, 32, 32) NCHW float32 -> logits (N, 10)."""
    n = x.shape[0]
    assert x.shape[1:] == (3, 32, 32), "ConvNet expects (N, 3, 32, 32) input"

    # Batch block: multiple of 8 (sublane granularity of the output tile).
    bb = max(8, (min(block_b, max(n, 8)) // 8) * 8)
    n_pad = int(pl.cdiv(n, bb)) * bb

    # Boundary layout conversion only: rows = image-major H, lanes = C*W padded
    # from 96 to 128 (lane-dense, unmasked vector loads).
    x_l = jnp.transpose(x, (0, 2, 1, 3)).reshape(n, 32, 96)
    x_l = jnp.pad(x_l, ((0, n_pad - n), (0, 0), (0, 32)))
    x_l = x_l.reshape(n_pad * 32, 128)

    weights = [packed[k] for k in _WEIGHT_ORDER]
    in_specs = ([pl.BlockSpec((bb * 32, 128), lambda i: (i, 0))]
                + [pl.BlockSpec(w.shape, lambda i: (0, 0)) for w in weights])

    out = pl.pallas_call(
        _convnet_kernel,
        out_shape=jax.ShapeDtypeStruct((n_pad, 128), jnp.float32),
        grid=(n_pad // bb,),
        in_specs=in_specs,
        out_specs=pl.BlockSpec((bb, 128), lambda i: (i, 0)),
        scratch_shapes=[pltpu.VMEM((bb * 32, 128), jnp.float32),
                        pltpu.VMEM((bb * 16, 128), jnp.float32)],
        compiler_params=pltpu.CompilerParams(
            dimension_semantics=("parallel",)),
    )(x_l, *weights)
    return out[:n, :10]


# --------------------------- pure-JAX reference ------------------------------

def reference_forward(x, params):
    hp = jax.lax.Precision.HIGHEST
    y = jax.lax.conv_general_dilated(x, params["conv1_w"], (1, 1), "VALID",
                                     dimension_numbers=("NCHW", "OIHW", "NCHW"),
                                     precision=hp)
    y = jnp.maximum(y + params["conv1_b"][None, :, None, None], 0.0)
    y = jax.lax.reduce_window(y, -jnp.inf, jax.lax.max,
                              (1, 1, 2, 2), (1, 1, 2, 2), "VALID")
    y = jax.lax.conv_general_dilated(y, params["conv2_w"], (1, 1), "VALID",
                                     dimension_numbers=("NCHW", "OIHW", "NCHW"),
                                     precision=hp)
    y = jnp.maximum(y + params["conv2_b"][None, :, None, None], 0.0)
    y = jax.lax.reduce_window(y, -jnp.inf, jax.lax.max,
                              (1, 1, 2, 2), (1, 1, 2, 2), "VALID")
    y = y.reshape(y.shape[0], -1)
    y = jnp.maximum(jnp.matmul(y, params["fc1_w"].T, precision=hp) + params["fc1_b"], 0.0)
    y = jnp.maximum(jnp.matmul(y, params["fc2_w"].T, precision=hp) + params["fc2_b"], 0.0)
    return jnp.matmul(y, params["fc3_w"].T, precision=hp) + params["fc3_b"]


# --------------------------- deterministic init ------------------------------

def init_params(key):
    """Deterministic init mimicking PyTorch's default uniform(-1/sqrt(fan_in), ...)."""
    def uniform(k, shape, fan_in):
        bound = 1.0 / np.sqrt(float(fan_in))
        return jax.random.uniform(k, shape, jnp.float32, -bound, bound)

    ks = jax.random.split(key, 10)
    return {
        "conv1_w": uniform(ks[0], (6, 3, 5, 5), 3 * 5 * 5),
        "conv1_b": uniform(ks[1], (6,), 3 * 5 * 5),
        "conv2_w": uniform(ks[2], (16, 6, 5, 5), 6 * 5 * 5),
        "conv2_b": uniform(ks[3], (16,), 6 * 5 * 5),
        "fc1_w": uniform(ks[4], (120, 400), 400),
        "fc1_b": uniform(ks[5], (120,), 400),
        "fc2_w": uniform(ks[6], (84, 120), 120),
        "fc2_b": uniform(ks[7], (84,), 120),
        "fc3_w": uniform(ks[8], (10, 84), 84),
        "fc3_b": uniform(ks[9], (84,) and (10,), 84),
    }


if __name__ == "__main__":
    key = jax.random.PRNGKey(0)
    k_param, k_x = jax.random.split(key)
    params = init_params(k_param)
    # fc1 (16*5*5 inputs) fixes the spatial size at 32x32 (CIFAR-sized).
    # 16 images with an 8-image batch block -> grid=(2,), so v7x's two
    # TensorCores both get a block.
    x = jax.random.normal(k_x, (16, 3, 32, 32), jnp.float32)

    packed = pack_params(params)
    fwd = jax.jit(lambda xx, pp: convnet_forward(xx, pp, block_b=8))
    out = jax.block_until_ready(fwd(x, packed))
    assert out.shape == (16, 10) and out.dtype == jnp.float32

    ref = jax.block_until_ready(reference_forward(x, params))
    # Kernel uses bf16 MXU operands (f32 accumulation); reference is f32 HIGHEST.
    np.testing.assert_allclose(np.asarray(out), np.asarray(ref), rtol=5e-2, atol=5e-2)

    print("KERNEL_OK")
</pallas_src>

<mosaic_0001>
module attributes {stable_mosaic.version = 11 : i64} {
  func.func @_convnet_kernel(%arg0: i32, %arg1: memref<256x128xf32, #tpu.memory_space<vmem>>, %arg2: memref<640x168xbf16, #tpu.memory_space<vmem>>, %arg3: memref<1x168xf32, #tpu.memory_space<vmem>>, %arg4: memref<168x128xbf16, #tpu.memory_space<vmem>>, %arg5: memref<168x128xbf16, #tpu.memory_space<vmem>>, %arg6: memref<640x160xbf16, #tpu.memory_space<vmem>>, %arg7: memref<1x160xf32, #tpu.memory_space<vmem>>, %arg8: memref<160x128xbf16, #tpu.memory_space<vmem>>, %arg9: memref<160x128xbf16, #tpu.memory_space<vmem>>, %arg10: memref<640x120xbf16, #tpu.memory_space<vmem>>, %arg11: memref<1x120xf32, #tpu.memory_space<vmem>>, %arg12: memref<120x84xbf16, #tpu.memory_space<vmem>>, %arg13: memref<1x84xf32, #tpu.memory_space<vmem>>, %arg14: memref<84x128xbf16, #tpu.memory_space<vmem>>, %arg15: memref<1x128xf32, #tpu.memory_space<vmem>>, %arg16: memref<8x128xf32, #tpu.memory_space<vmem>>, %arg17: memref<256x128xf32, #tpu.memory_space<vmem>>, %arg18: memref<128x128xf32, #tpu.memory_space<vmem>>) attributes {dimension_semantics = [#tpu.dimension_semantics<parallel>], iteration_bounds = array<i64: 2>, scalar_prefetch = 0 : i64, scratch_operands = 2 : i64, tpu.core_type = #tpu.core_type<tc>, window_params = [{transform_indices = @transform_0, window_bounds = array<i64: 256, 128>}, {pipeline_mode = #tpu.pipeline_mode<synchronous>, transform_indices = @transform_1, window_bounds = array<i64: 640, 168>}, {pipeline_mode = #tpu.pipeline_mode<synchronous>, transform_indices = @transform_2, window_bounds = array<i64: 1, 168>}, {pipeline_mode = #tpu.pipeline_mode<synchronous>, transform_indices = @transform_3, window_bounds = array<i64: 168, 128>}, {pipeline_mode = #tpu.pipeline_mode<synchronous>, transform_indices = @transform_4, window_bounds = array<i64: 168, 128>}, {pipeline_mode = #tpu.pipeline_mode<synchronous>, transform_indices = @transform_5, window_bounds = array<i64: 640, 160>}, {pipeline_mode = #tpu.pipeline_mode<synchronous>, transform_indices = @transform_6, window_bounds = array<i64: 1, 160>}, {pipeline_mode = #tpu.pipeline_mode<synchronous>, transform_indices = @transform_7, window_bounds = array<i64: 160, 128>}, {pipeline_mode = #tpu.pipeline_mode<synchronous>, transform_indices = @transform_8, window_bounds = array<i64: 160, 128>}, {pipeline_mode = #tpu.pipeline_mode<synchronous>, transform_indices = @transform_9, window_bounds = array<i64: 640, 120>}, {pipeline_mode = #tpu.pipeline_mode<synchronous>, transform_indices = @transform_10, window_bounds = array<i64: 1, 120>}, {pipeline_mode = #tpu.pipeline_mode<synchronous>, transform_indices = @transform_11, window_bounds = array<i64: 120, 84>}, {pipeline_mode = #tpu.pipeline_mode<synchronous>, transform_indices = @transform_12, window_bounds = array<i64: 1, 84>}, {pipeline_mode = #tpu.pipeline_mode<synchronous>, transform_indices = @transform_13, window_bounds = array<i64: 84, 128>}, {pipeline_mode = #tpu.pipeline_mode<synchronous>, transform_indices = @transform_14, window_bounds = array<i64: 1, 128>}, {transform_indices = @transform_15, window_bounds = array<i64: 8, 128>}]} {
    %c0 = arith.constant 0 : index
    %c0_0 = arith.constant 0 : index
    %0 = vector.load %arg1[%c0, %c0_0] : memref<256x128xf32, #tpu.memory_space<vmem>>, vector<256x128xf32>
    %c255_i32 = arith.constant 255 : i32
    %1 = tpu.dynamic_rotate %0 by %c255_i32 dim 0 : vector<256x128xf32>, i32 -> vector<256x128xf32>
    %c254_i32 = arith.constant 254 : i32
    %2 = tpu.dynamic_rotate %0 by %c254_i32 dim 0 : vector<256x128xf32>, i32 -> vector<256x128xf32>
    %c253_i32 = arith.constant 253 : i32
    %3 = tpu.dynamic_rotate %0 by %c253_i32 dim 0 : vector<256x128xf32>, i32 -> vector<256x128xf32>
    %c252_i32 = arith.constant 252 : i32
    %4 = tpu.dynamic_rotate %0 by %c252_i32 dim 0 : vector<256x128xf32>, i32 -> vector<256x128xf32>
    %5 = tpu.concatenate %0, %1, %2, %3, %4 in 1 : vector<256x128xf32>, vector<256x128xf32>, vector<256x128xf32>, vector<256x128xf32>, vector<256x128xf32> -> vector<256x640xf32>
    %6 = arith.truncf %5 : vector<256x640xf32> to vector<256x640xbf16>
    %c0_1 = arith.constant 0 : index
    %c0_2 = arith.constant 0 : index
    %7 = vector.load %arg2[%c0_1, %c0_2] : memref<640x168xbf16, #tpu.memory_space<vmem>>, vector<640x168xbf16>
    %cst = arith.constant dense<0.000000e+00> : vector<256x168xf32>
    %8 = tpu.matmul %6, %7, %cst {dimension_numbers = #tpu.dot_dimension_numbers<[1], [0], [0], [1], [0, 0, 1, 1], [], []>} : vector<256x640xbf16>, vector<640x168xbf16>, vector<256x168xf32> -> vector<256x168xf32>
    %c0_3 = arith.constant 0 : index
    %c0_4 = arith.constant 0 : index
    %9 = vector.load %arg3[%c0_3, %c0_4] : memref<1x168xf32, #tpu.memory_space<vmem>>, vector<1x168xf32>
    %10 = vector.broadcast %9 : vector<1x168xf32> to vector<256x168xf32>
    %11 = arith.addf %8, %10 : vector<256x168xf32>
    %cst_5 = arith.constant 0.000000e+00 : f32
    %12 = vector.broadcast %cst_5 : f32 to vector<256x168xf32>
    %13 = arith.maximumf %11, %12 : vector<256x168xf32>
    %14 = arith.truncf %13 : vector<256x168xf32> to vector<256x168xbf16>
    %c0_6 = arith.constant 0 : index
    %c0_7 = arith.constant 0 : index
    %15 = vector.load %arg4[%c0_6, %c0_7] : memref<168x128xbf16, #tpu.memory_space<vmem>>, vector<168x128xbf16>
    %cst_8 = arith.constant dense<0.000000e+00> : vector<256x128xf32>
    %16 = tpu.matmul %14, %15, %cst_8 {dimension_numbers = #tpu.dot_dimension_numbers<[1], [0], [0], [1], [0, 0, 1, 1], [], []>} : vector<256x168xbf16>, vector<168x128xbf16>, vector<256x128xf32> -> vector<256x128xf32>
    %c0_9 = arith.constant 0 : index
    %c0_10 = arith.constant 0 : index
    %17 = vector.load %arg5[%c0_9, %c0_10] : memref<168x128xbf16, #tpu.memory_space<vmem>>, vector<168x128xbf16>
    %cst_11 = arith.constant dense<0.000000e+00> : vector<256x128xf32>
    %18 = tpu.matmul %14, %17, %cst_11 {dimension_numbers = #tpu.dot_dimension_numbers<[1], [0], [0], [1], [0, 0, 1, 1], [], []>} : vector<256x168xbf16>, vector<168x128xbf16>, vector<256x128xf32> -> vector<256x128xf32>
    %19 = arith.maximumf %16, %18 : vector<256x128xf32>
    %c0_12 = arith.constant 0 : index
    %c0_13 = arith.constant 0 : index
    %20 = vector.load %arg17[%c0_12, %c0_13] : memref<256x128xf32, #tpu.memory_space<vmem>>, vector<256x128xf32>
    tpu.vector_store %arg17[%c0_12, %c0_13], %19 {strides = array<i32>} : memref<256x128xf32, #tpu.memory_space<vmem>>, vector<256x128xf32>,
    %c0_14 = arith.constant 0 : index
    %c0_15 = arith.constant 0 : index
    %21 = tpu.strided_load %arg17[%c0_14, %c0_15] {strides = array<i32: 2, 1>} : memref<256x128xf32, #tpu.memory_space<vmem>>, vector<128x128xf32>
    %c1 = arith.constant 1 : index
    %c0_16 = arith.constant 0 : index
    %22 = tpu.strided_load %arg17[%c1, %c0_16] {strides = array<i32: 2, 1>} : memref<256x128xf32, #tpu.memory_space<vmem>>, vector<128x128xf32>
    %23 = arith.maximumf %21, %22 : vector<128x128xf32>
    %c127_i32 = arith.constant 127 : i32
    %24 = tpu.dynamic_rotate %23 by %c127_i32 dim 0 : vector<128x128xf32>, i32 -> vector<128x128xf32>
    %c126_i32 = arith.constant 126 : i32
    %25 = tpu.dynamic_rotate %23 by %c126_i32 dim 0 : vector<128x128xf32>, i32 -> vector<128x128xf32>
    %c125_i32 = arith.constant 125 : i32
    %26 = tpu.dynamic_rotate %23 by %c125_i32 dim 0 : vector<128x128xf32>, i32 -> vector<128x128xf32>
    %c124_i32 = arith.constant 124 : i32
    %27 = tpu.dynamic_rotate %23 by %c124_i32 dim 0 : vector<128x128xf32>, i32 -> vector<128x128xf32>
    %28 = tpu.concatenate %23, %24, %25, %26, %27 in 1 : vector<128x128xf32>, vector<128x128xf32>, vector<128x128xf32>, vector<128x128xf32>, vector<128x128xf32> -> vector<128x640xf32>
    %29 = arith.truncf %28 : vector<128x640xf32> to vector<128x640xbf16>
    %c0_17 = arith.constant 0 : index
    %c0_18 = arith.constant 0 : index
    %30 = vector.load %arg6[%c0_17, %c0_18] : memref<640x160xbf16, #tpu.memory_space<vmem>>, vector<640x160xbf16>
    %cst_19 = arith.constant dense<0.000000e+00> : vector<128x160xf32>
    %31 = tpu.matmul %29, %30, %cst_19 {dimension_numbers = #tpu.dot_dimension_numbers<[1], [0], [0], [1], [0, 0, 1, 1], [], []>} : vector<128x640xbf16>, vector<640x160xbf16>, vector<128x160xf32> -> vector<128x160xf32>
    %c0_20 = arith.constant 0 : index
    %c0_21 = arith.constant 0 : index
    %32 = vector.load %arg7[%c0_20, %c0_21] : memref<1x160xf32, #tpu.memory_space<vmem>>, vector<1x160xf32>
    %33 = vector.broadcast %32 : vector<1x160xf32> to vector<128x160xf32>
    %34 = arith.addf %31, %33 : vector<128x160xf32>
    %cst_22 = arith.constant 0.000000e+00 : f32
    %35 = vector.broadcast %cst_22 : f32 to vector<128x160xf32>
    %36 = arith.maximumf %34, %35 : vector<128x160xf32>
    %37 = arith.truncf %36 : vector<128x160xf32> to vector<128x160xbf16>
    %c0_23 = arith.constant 0 : index
    %c0_24 = arith.constant 0 : index
    %38 = vector.load %arg8[%c0_23, %c0_24] : memref<160x128xbf16, #tpu.memory_space<vmem>>, vector<160x128xbf16>
    %cst_25 = arith.constant dense<0.000000e+00> : vector<128x128xf32>
    %39 = tpu.matmul %37, %38, %cst_25 {dimension_numbers = #tpu.dot_dimension_numbers<[1], [0], [0], [1], [0, 0, 1, 1], [], []>} : vector<128x160xbf16>, vector<160x128xbf16>, vector<128x128xf32> -> vector<128x128xf32>
    %c0_26 = arith.constant 0 : index
    %c0_27 = arith.constant 0 : index
    %40 = vector.load %arg9[%c0_26, %c0_27] : memref<160x128xbf16, #tpu.memory_space<vmem>>, vector<160x128xbf16>
    %cst_28 = arith.constant dense<0.000000e+00> : vector<128x128xf32>
    %41 = tpu.matmul %37, %40, %cst_28 {dimension_numbers = #tpu.dot_dimension_numbers<[1], [0], [0], [1], [0, 0, 1, 1], [], []>} : vector<128x160xbf16>, vector<160x128xbf16>, vector<128x128xf32> -> vector<128x128xf32>
    %42 = arith.maximumf %39, %41 : vector<128x128xf32>
    %c0_29 = arith.constant 0 : index
    %c0_30 = arith.constant 0 : index
    %43 = vector.load %arg18[%c0_29, %c0_30] : memref<128x128xf32, #tpu.memory_space<vmem>>, vector<128x128xf32>
    tpu.vector_store %arg18[%c0_29, %c0_30], %42 {strides = array<i32>} : memref<128x128xf32, #tpu.memory_space<vmem>>, vector<128x128xf32>,
    %c0_31 = arith.constant 0 : index
    %c0_32 = arith.constant 0 : index
    %44 = tpu.strided_load %arg18[%c0_31, %c0_32] {strides = array<i32: 16, 1>} : memref<128x128xf32, #tpu.memory_space<vmem>>, vector<8x128xf32>
    %c1_33 = arith.constant 1 : index
    %c0_34 = arith.constant 0 : index
    %45 = tpu.strided_load %arg18[%c1_33, %c0_34] {strides = array<i32: 16, 1>} : memref<128x128xf32, #tpu.memory_space<vmem>>, vector<8x128xf32>
    %46 = arith.maximumf %44, %45 : vector<8x128xf32>
    %c2 = arith.constant 2 : index
    %c0_35 = arith.constant 0 : index
    %47 = tpu.strided_load %arg18[%c2, %c0_35] {strides = array<i32: 16, 1>} : memref<128x128xf32, #tpu.memory_space<vmem>>, vector<8x128xf32>
    %c3 = arith.constant 3 : index
    %c0_36 = arith.constant 0 : index
    %48 = tpu.strided_load %arg18[%c3, %c0_36] {strides = array<i32: 16, 1>} : memref<128x128xf32, #tpu.memory_space<vmem>>, vector<8x128xf32>
    %49 = arith.maximumf %47, %48 : vector<8x128xf32>
    %c4 = arith.constant 4 : index
    %c0_37 = arith.constant 0 : index
    %50 = tpu.strided_load %arg18[%c4, %c0_37] {strides = array<i32: 16, 1>} : memref<128x128xf32, #tpu.memory_space<vmem>>, vector<8x128xf32>
    %c5 = arith.constant 5 : index
    %c0_38 = arith.constant 0 : index
    %51 = tpu.strided_load %arg18[%c5, %c0_38] {strides = array<i32: 16, 1>} : memref<128x128xf32, #tpu.memory_space<vmem>>, vector<8x128xf32>
    %52 = arith.maximumf %50, %51 : vector<8x128xf32>
    %c6 = arith.constant 6 : index
    %c0_39 = arith.constant 0 : index
    %53 = tpu.strided_load %arg18[%c6, %c0_39] {strides = array<i32: 16, 1>} : memref<128x128xf32, #tpu.memory_space<vmem>>, vector<8x128xf32>
    %c7 = arith.constant 7 : index
    %c0_40 = arith.constant 0 : index
    %54 = tpu.strided_load %arg18[%c7, %c0_40] {strides = array<i32: 16, 1>} : memref<128x128xf32, #tpu.memory_space<vmem>>, vector<8x128xf32>
    %55 = arith.maximumf %53, %54 : vector<8x128xf32>
    %c8 = arith.constant 8 : index
    %c0_41 = arith.constant 0 : index
    %56 = tpu.strided_load %arg18[%c8, %c0_41] {strides = array<i32: 16, 1>} : memref<128x128xf32, #tpu.memory_space<vmem>>, vector<8x128xf32>
    %c9 = arith.constant 9 : index
    %c0_42 = arith.constant 0 : index
    %57 = tpu.strided_load %arg18[%c9, %c0_42] {strides = array<i32: 16, 1>} : memref<128x128xf32, #tpu.memory_space<vmem>>, vector<8x128xf32>
    %58 = arith.maximumf %56, %57 : vector<8x128xf32>
    %59 = tpu.concatenate %46, %49, %52, %55, %58 in 1 : vector<8x128xf32>, vector<8x128xf32>, vector<8x128xf32>, vector<8x128xf32>, vector<8x128xf32> -> vector<8x640xf32>
    %60 = arith.truncf %59 : vector<8x640xf32> to vector<8x640xbf16>
    %c0_43 = arith.constant 0 : index
    %c0_44 = arith.constant 0 : index
    %61 = vector.load %arg10[%c0_43, %c0_44] : memref<640x120xbf16, #tpu.memory_space<vmem>>, vector<640x120xbf16>
    %cst_45 = arith.constant dense<0.000000e+00> : vector<8x120xf32>
    %62 = tpu.matmul %60, %61, %cst_45 {dimension_numbers = #tpu.dot_dimension_numbers<[1], [0], [0], [1], [0, 0, 1, 1], [], []>} : vector<8x640xbf16>, vector<640x120xbf16>, vector<8x120xf32> -> vector<8x120xf32>
    %c0_46 = arith.constant 0 : index
    %c0_47 = arith.constant 0 : index
    %63 = vector.load %arg11[%c0_46, %c0_47] : memref<1x120xf32, #tpu.memory_space<vmem>>, vector<1x120xf32>
    %64 = vector.broadcast %63 : vector<1x120xf32> to vector<8x120xf32>
    %65 = arith.addf %62, %64 : vector<8x120xf32>
    %cst_48 = arith.constant 0.000000e+00 : f32
    %66 = vector.broadcast %cst_48 : f32 to vector<8x120xf32>
    %67 = arith.maximumf %65, %66 : vector<8x120xf32>
    %68 = arith.truncf %67 : vector<8x120xf32> to vector<8x120xbf16>
    %c0_49 = arith.constant 0 : index
    %c0_50 = arith.constant 0 : index
    %69 = vector.load %arg12[%c0_49, %c0_50] : memref<120x84xbf16, #tpu.memory_space<vmem>>, vector<120x84xbf16>
    %cst_51 = arith.constant dense<0.000000e+00> : vector<8x84xf32>
    %70 = tpu.matmul %68, %69, %cst_51 {dimension_numbers = #tpu.dot_dimension_numbers<[1], [0], [0], [1], [0, 0, 1, 1], [], []>} : vector<8x120xbf16>, vector<120x84xbf16>, vector<8x84xf32> -> vector<8x84xf32>
    %c0_52 = arith.constant 0 : index
    %c0_53 = arith.constant 0 : index
    %71 = vector.load %arg13[%c0_52, %c0_53] : memref<1x84xf32, #tpu.memory_space<vmem>>, vector<1x84xf32>
    %72 = vector.broadcast %71 : vector<1x84xf32> to vector<8x84xf32>
    %73 = arith.addf %70, %72 : vector<8x84xf32>
    %cst_54 = arith.constant 0.000000e+00 : f32
    %74 = vector.broadcast %cst_54 : f32 to vector<8x84xf32>
    %75 = arith.maximumf %73, %74 : vector<8x84xf32>
    %76 = arith.truncf %75 : vector<8x84xf32> to vector<8x84xbf16>
    %c0_55 = arith.constant 0 : index
    %c0_56 = arith.constant 0 : index
    %77 = vector.load %arg14[%c0_55, %c0_56] : memref<84x128xbf16, #tpu.memory_space<vmem>>, vector<84x128xbf16>
    %cst_57 = arith.constant dense<0.000000e+00> : vector<8x128xf32>
    %78 = tpu.matmul %76, %77, %cst_57 {dimension_numbers = #tpu.dot_dimension_numbers<[1], [0], [0], [1], [0, 0, 1, 1], [], []>} : vector<8x84xbf16>, vector<84x128xbf16>, vector<8x128xf32> -> vector<8x128xf32>
    %c0_58 = arith.constant 0 : index
    %c0_59 = arith.constant 0 : index
    %79 = vector.load %arg15[%c0_58, %c0_59] : memref<1x128xf32, #tpu.memory_space<vmem>>, vector<1x128xf32>
    %80 = vector.broadcast %79 : vector<1x128xf32> to vector<8x128xf32>
    %81 = arith.addf %78, %80 : vector<8x128xf32>
    %c0_60 = arith.constant 0 : index
    %c0_61 = arith.constant 0 : index
    %82 = vector.load %arg16[%c0_60, %c0_61] : memref<8x128xf32, #tpu.memory_space<vmem>>, vector<8x128xf32>
    tpu.vector_store %arg16[%c0_60, %c0_61], %81 {strides = array<i32>} : memref<8x128xf32, #tpu.memory_space<vmem>>, vector<8x128xf32>,
    return
  }
  func.func @transform_0(%arg0: i32) -> (i32, i32) {
    %c0_i32 = arith.constant 0 : i32
    %c0_i32_0 = arith.constant 0 : i32
    return %arg0, %c0_i32 : i32, i32
  }
  func.func @transform_1(%arg0: i32) -> (i32, i32) {
    %c0_i32 = arith.constant 0 : i32
    %c0_i32_0 = arith.constant 0 : i32
    %c0_i32_1 = arith.constant 0 : i32
    return %c0_i32, %c0_i32_0 : i32, i32
  }
  func.func @transform_2(%arg0: i32) -> (i32, i32) {
    %c0_i32 = arith.constant 0 : i32
    %c0_i32_0 = arith.constant 0 : i32
    %c0_i32_1 = arith.constant 0 : i32
    return %c0_i32, %c0_i32_0 : i32, i32
  }
  func.func @transform_3(%arg0: i32) -> (i32, i32) {
    %c0_i32 = arith.constant 0 : i32
    %c0_i32_0 = arith.constant 0 : i32
    %c0_i32_1 = arith.constant 0 : i32
    return %c0_i32, %c0_i32_0 : i32, i32
  }
  func.func @transform_4(%arg0: i32) -> (i32, i32) {
    %c0_i32 = arith.constant 0 : i32
    %c0_i32_0 = arith.constant 0 : i32
    %c0_i32_1 = arith.constant 0 : i32
    return %c0_i32, %c0_i32_0 : i32, i32
  }
  func.func @transform_5(%arg0: i32) -> (i32, i32) {
    %c0_i32 = arith.constant 0 : i32
    %c0_i32_0 = arith.constant 0 : i32
    %c0_i32_1 = arith.constant 0 : i32
    return %c0_i32, %c0_i32_0 : i32, i32
  }
  func.func @transform_6(%arg0: i32) -> (i32, i32) {
    %c0_i32 = arith.constant 0 : i32
    %c0_i32_0 = arith.constant 0 : i32
    %c0_i32_1 = arith.constant 0 : i32
    return %c0_i32, %c0_i32_0 : i32, i32
  }
  func.func @transform_7(%arg0: i32) -> (i32, i32) {
    %c0_i32 = arith.constant 0 : i32
    %c0_i32_0 = arith.constant 0 : i32
    %c0_i32_1 = arith.constant 0 : i32
    return %c0_i32, %c0_i32_0 : i32, i32
  }
  func.func @transform_8(%arg0: i32) -> (i32, i32) {
    %c0_i32 = arith.constant 0 : i32
    %c0_i32_0 = arith.constant 0 : i32
    %c0_i32_1 = arith.constant 0 : i32
    return %c0_i32, %c0_i32_0 : i32, i32
  }
  func.func @transform_9(%arg0: i32) -> (i32, i32) {
    %c0_i32 = arith.constant 0 : i32
    %c0_i32_0 = arith.constant 0 : i32
    %c0_i32_1 = arith.constant 0 : i32
    return %c0_i32, %c0_i32_0 : i32, i32
  }
  func.func @transform_10(%arg0: i32) -> (i32, i32) {
    %c0_i32 = arith.constant 0 : i32
    %c0_i32_0 = arith.constant 0 : i32
    %c0_i32_1 = arith.constant 0 : i32
    return %c0_i32, %c0_i32_0 : i32, i32
  }
  func.func @transform_11(%arg0: i32) -> (i32, i32) {
    %c0_i32 = arith.constant 0 : i32
    %c0_i32_0 = arith.constant 0 : i32
    %c0_i32_1 = arith.constant 0 : i32
    return %c0_i32, %c0_i32_0 : i32, i32
  }
  func.func @transform_12(%arg0: i32) -> (i32, i32) {
    %c0_i32 = arith.constant 0 : i32
    %c0_i32_0 = arith.constant 0 : i32
    %c0_i32_1 = arith.constant 0 : i32
    return %c0_i32, %c0_i32_0 : i32, i32
  }
  func.func @transform_13(%arg0: i32) -> (i32, i32) {
    %c0_i32 = arith.constant 0 : i32
    %c0_i32_0 = arith.constant 0 : i32
    %c0_i32_1 = arith.constant 0 : i32
    return %c0_i32, %c0_i32_0 : i32, i32
  }
  func.func @transform_14(%arg0: i32) -> (i32, i32) {
    %c0_i32 = arith.constant 0 : i32
    %c0_i32_0 = arith.constant 0 : i32
    %c0_i32_1 = arith.constant 0 : i32
    return %c0_i32, %c0_i32_0 : i32, i32
  }
  func.func @transform_15(%arg0: i32) -> (i32, i32) {
    %c0_i32 = arith.constant 0 : i32
    %c0_i32_0 = arith.constant 0 : i32
    return %arg0, %c0_i32 : i32, i32
  }
}

</mosaic_0001>

<bundles_post_ra>
// kernel: _lambda_.1
= control target key start
LH: loop header
LB: loop body
LE: loop exit
PB: predicated region body
PF: predicated region fallthrough
CT: control target
= control target key end

     0   :  { %20 = vsyncpa [#allocation5], 0  ;;  %s8641_s0 = inlined_call_operand.vmem [shape: f32[512,128], index: 0, kind: input, shape index: {}]   ;;  %s8642_s1 = inlined_call_operand.vmem [shape: bf16[640,168], index: 1, kind: input, shape index: {}]   ;;  %s8643_s2 = inlined_call_operand.vmem [shape: f32[1,168], index: 2, kind: input, shape index: {}]   ;;  %s8644_s3 = inlined_call_operand.vmem [shape: bf16[168,128], index: 3, kind: input, shape index: {}]   ;;  %s8645_s4 = inlined_call_operand.vmem [shape: bf16[168,128], index: 4, kind: input, shape index: {}]   ;;  %s8646_s5 = inlined_call_operand.vmem [shape: bf16[640,160], index: 5, kind: input, shape index: {}]   ;;  %s8647_s6 = inlined_call_operand.vmem [shape: f32[1,160], index: 6, kind: input, shape index: {}]   ;;  %s8648_s7 = inlined_call_operand.vmem [shape: bf16[160,128], index: 7, kind: input, shape index: {}]   ;;  %s8649_s8 = inlined_call_operand.vmem [shape: bf16[160,128], index: 8, kind: input, shape index: {}]   ;;  %s8650_s9 = inlined_call_operand.vmem [shape: bf16[640,120], index: 9, kind: input, shape index: {}]   ;;  %s8651_s10 = inlined_call_operand.vmem [shape: f32[1,120], index: 10, kind: input, shape index: {}]   ;;  %s8652_s11 = inlined_call_operand.vmem [shape: bf16[120,84], index: 11, kind: input, shape index: {}]   ;;  %s8653_s12 = inlined_call_operand.vmem [shape: f32[1,84], index: 12, kind: input, shape index: {}]   ;;  %s8654_s13 = inlined_call_operand.vmem [shape: bf16[84,128], index: 13, kind: input, shape index: {}]   ;;  %s8655_s14 = inlined_call_operand.vmem [shape: f32[1,128], index: 14, kind: input, shape index: {}]   ;;  %s8656_s15 = inlined_call_operand.hbm [shape: f32[16,128], index: 15, kind: output, shape index: {}]  }
   0x1   :  { %22 = vsyncpa [#allocation5 + $0x1], 0  ;;  %s6293_s18 = smov 0   ;;  %s6295_s19 = smov 0  }
   0x2   :  { %s6297_s20 = smov 0   ;;  %s6299_s21 = smov 0  }
   0x3 LB: > { %8667 = sst [smem:[#allocation7_spill]] %s6195_s18  ;;  %s6314_s22 = sadd.s32 4294967295, %s6207_s21   ;;  %s6207_s21 = sphi %s6299_s21, %s8698_s21   ;;  %s6203_s20 = sphi %s6297_s20, %s8700_s20   ;;  %s6199_s19 = sphi %s6295_s19, %s8702_s19   ;;  %s6195_s18 = sphi %s6293_s18, %s8701_s18  }
   0x4   : > { %8668 = sst [smem:[#allocation8_spill]] %s6203_s20  ;;  %s5011_s23 = sadd.s32 4294967294, %s6207_s21  }
   0x5   : > { %s6318_s24 = sadd.s32 1, %s6207_s21   ;;  %s355_s25 = sadd.s32 1, %s6203_s20 }
   0x6   : > { %8669 = sst [smem:[#allocation9_spill]] %s6318_s24  ;;  %s352_s26 = ssub.s32 %s6207_s21, %s6318_s24 }
   0x7   : > { %p365_p0 = scmp.ne.s32.totalorder %s6203_s20, %s6199_s19  ;;  %p353_p1 = scmp.eq.s32.totalorder %s352_s26, 0 }
   0x8   : > { %p366_p2 = scmp.eq.s32.totalorder %s6314_s22, 1  ;;  %p371_p3 = scmp.ne.s32.totalorder %s6199_s19, %s6195_s18 }
   0x9   : > { %p372_p4 = scmp.eq.s32.totalorder %s5011_s23, 1  ;;  %p5014_p7 = scmp.ge.s32.totalorder %s6207_s21, 1 }
   0xa   : > { %s6329_s27 = scalar_select %p353_p1, %s6203_s20, %s355_s25  }
   0xb   : > { %p6331_p5 = por %p366_p2, %p365_p0  ;;  %p6335_p6 = por %p372_p4, %p371_p3 }
   0xc   : > { %8670 = sst [smem:[#allocation10_spill]] %s6329_s27  ;;  %p441_p8 = scmp.lt.s32.totalorder %s6207_s21, 3 }
   0xd   : > { %s8672_s29 = scalar_select %p6335_p6, 1, 0 }
   0xe   : > { %p442_p9 = pnand %p5014_p7, %p441_p8 }
   0xf   : > { %8673 = sst [smem:[#allocation11_spill]] %s8672_s29  ;;  %v5786_v0 = vld [vmem:[%s8642_s1 + $0x4] ss:$8 sps:$4 sm:$0xff] (!%p442_p9)   ;;  %v5788_v1 = vld [vmem:[%s8642_s1] ss:$8 sps:$4 sm:$0xff] (!%p442_p9)   ;;  %s5016_s30 = sshll.u32 (!%p442_p9), %s6314_s22, 5  ;;  %v560_v9 = vlaneseq (!%p442_p9) }
  0x10   : > { %445 = sbr.rel (%p442_p9) target bundleno = 2318 (0x90e), region = 80  ;;  %1362 = vmatprep.subr.bf16.mxu0 (!%p442_p9), %v5786_v0  ;;  %v5789_v2 = vld [vmem:[%s8642_s1 + $0x14] ss:$8 sps:$4 sm:$0xff] (!%p442_p9)   ;;  %v5791_v3 = vld [vmem:[%s8642_s1 + $0x10] ss:$8 sps:$4 sm:$0xff] (!%p442_p9)   ;;  %p490_p10 = scmp.lt.s32.totalorder (!%p442_p9), %s5016_s30, 63 }
  0x11   : > { %1363 = vmatpush1.bf16.msra.mxu0 (!%p442_p9), %v5788_v1  ;;  %v5792_v4 = vld [vmem:[%s8642_s1 + $0x24] ss:$8 sps:$4 sm:$0xff] (!%p442_p9)   ;;  %v5794_v5 = vld [vmem:[%s8642_s1 + $0x20] ss:$8 sps:$4 sm:$0xff] (!%p442_p9)   ;;  %v5795_v6 = vld [vmem:[%s8642_s1 + $0x34] ss:$8 sps:$4 sm:$0xff] (!%p442_p9)  }
  0x12   : > { %1364 = vmatprep.subr.bf16.mxu0 (!%p442_p9), %v5789_v2  ;;  %v5797_v7 = vld [vmem:[%s8642_s1 + $0x30] ss:$8 sps:$4 sm:$0xff] (!%p442_p9)   ;;  %v5798_v8 = vld [vmem:[%s8642_s1 + $0x44] ss:$8 sps:$4 sm:$0xff] (!%p442_p9)   ;;  %v5800_v10 = vld [vmem:[%s8642_s1 + $0x40] ss:$8 sps:$4 sm:$0xff] (!%p442_p9)  }
  0x13   : > { %v5801_v11 = vld [vmem:[%s8642_s1 + $0x54] ss:$8 sps:$4 sm:$0xff] (!%p442_p9)   ;;  %v6375_v12 = vshrl.u32 (!%p442_p9), %v560_v9, 7  ;;  %v5803_v13 = vld [vmem:[%s8642_s1 + $0x50] ss:$8 sps:$4 sm:$0xff] (!%p442_p9)   ;;  %vm2170_vm4 = vcmask (!%p442_p9), 1043456  }
  0x14   : > { %v5804_v14 = vld [vmem:[%s8642_s1 + $0x64] ss:$8 sps:$4 sm:$0xff] (!%p442_p9)   ;;  %v5806_v20 = vld [vmem:[%s8642_s1 + $0x60] ss:$8 sps:$4 sm:$0xff] (!%p442_p9)   ;;  %v5807_v22 = vld [vmem:[%s8642_s1 + $0x74] ss:$8 sps:$4 sm:$0xff] (!%p442_p9)  }
  0x15   : > { %1365 = vmatpush1.bf16.msra.mxu0 (!%p442_p9), %v5791_v3  ;;  %vm562_vm0 = vcmp.lt.s32.totalorder (!%p442_p9), %v6375_v12, 7  ;;  %v5809_v26 = vld [vmem:[%s8642_s1 + $0x70] ss:$8 sps:$4 sm:$0xff] (!%p442_p9)   ;;  %v5810_v27 = vld [vmem:[%s8642_s1 + $0x84] ss:$8 sps:$4 sm:$0xff] (!%p442_p9)   ;;  %vm692_vm1 = vcmp.lt.s32.totalorder (!%p442_p9), %v6375_v12, 5 }
  0x16   : > { %1366 = vmatprep.subr.bf16.mxu0 (!%p442_p9), %v5792_v4  ;;  %v5812_v28 = vld [vmem:[%s8642_s1 + $0x80] ss:$8 sps:$4 sm:$0xff] (!%p442_p9)   ;;  %v5813_v29 = vld [vmem:[%s8642_s1 + $0x94] ss:$8 sps:$4 sm:$0xff] (!%p442_p9)   ;;  %v5815_v30 = vld [vmem:[%s8642_s1 + $0x90] ss:$8 sps:$4 sm:$0xff] (!%p442_p9)  }
  0x17   : > { %s8704_s30 = smov (!%p490_p10, %s5016_s30), 63  ;;  %v5816_v31 = vld [vmem:[%s8642_s1 + $0xa4] ss:$8 sps:$4 sm:$0xff]   ;;  %v5818_v32 = vld [vmem:[%s8642_s1 + $0xa0] ss:$8 sps:$4 sm:$0xff]   ;;  %vm627_vm2 = vcmp.lt.s32.totalorder %v6375_v12, 6 }
  0x18   : > { %s5017_s17 = sshll.u32 %s8704_s30, 3  ;;  %v5819_v33 = vld [vmem:[%s8642_s1 + $0xb4] ss:$8 sps:$4 sm:$0xff]   ;;  %v5821_v34 = vld [vmem:[%s8642_s1 + $0xb0] ss:$8 sps:$4 sm:$0xff]   ;;  %vm757_vm3 = vcmp.lt.s32.totalorder %v6375_v12, 4 }
  0x19   : > { %1367 = vmatpush1.bf16.msra.mxu0 %v5794_v5  ;;  %s6380_s18 = scalar_lea.vmem %s8641_s0, %s5017_s17  ;;  %v5822_v35 = vld [vmem:[%s8642_s1 + $0xc4] ss:$8 sps:$4 sm:$0xff]   ;;  %v5824_v36 = vld [vmem:[%s8642_s1 + $0xc0] ss:$8 sps:$4 sm:$0xff]   ;;  %v5825_v37 = vld [vmem:[%s8642_s1 + $0xd4] ss:$8 sps:$4 sm:$0xff]  }
  0x1a   : > { %1368 = vmatprep.subr.bf16.mxu0 %v5795_v6  ;;  %v6389_v15 = vld [vmem:[%s6380_s18] sm:$0xff]  ;;  %v6392_v16 = vld [vmem:[%s6380_s18 + $0x8] sm:$0xff]  ;;  %v6396_v17 = vld [vmem:[%s6380_s18 + $0x10] sm:$0xff]  ;;  %vm2121_vm5 = vcmask 326656   ;;  %vm3853_vm6 = vcmask 261120   ;;  %vm6211_vm7 = vmmov 0  }
  0x1b   : > { %v528_v18 = vrot.slane %v6389_v15, 1  ;;  %v529_v19 = vrot.slane %v6392_v16, 1  ;;  %v530_v21 = vrot.slane %v6396_v17, 1  ;;  %v5827_v38 = vld [vmem:[%s8642_s1 + $0xd0] ss:$8 sps:$4 sm:$0xff]   ;;  %v500_v41 = vld [vmem:[%s6380_s18 + $0x20] sm:$0xff]  ;;  %v790_v55 = vpack.c.bf16 %v6392_v16, %v6389_v15 }
  0x1c   : > { %v5828_v39 = vld [vmem:[%s8642_s1 + $0xe4] ss:$8 sps:$4 sm:$0xff]   ;;  %v499_v40 = vld [vmem:[%s6380_s18 + $0x18] sm:$0xff]  ;;  %v5830_v42 = vld [vmem:[%s8642_s1 + $0xe0] ss:$8 sps:$4 sm:$0xff]   ;;  %v532_v47 = vrot.slane %v500_v41, 1 }
  0x1d   : > { %1369 = vmatpush1.bf16.msra.mxu0 %v5797_v7  ;;  %v593_v23 = vsel %vm562_vm0, %v528_v18, %v529_v19  ;;  %v592_v24 = vsel %vm562_vm0, %v529_v19, %v530_v21  ;;  %v5831_v43 = vld [vmem:[%s8642_s1 + $0xf4] ss:$8 sps:$4 sm:$0xff]   ;;  %v501_v44 = vld [vmem:[%s6380_s18 + $0x28] sm:$0xff]  ;;  %v531_v46 = vrot.slane %v499_v40, 1  ;;  %v5833_v48 = vld [vmem:[%s8642_s1 + $0xf0] ss:$8 sps:$4 sm:$0xff]   ;;  %v795_v3 = vpack.c.bf16 %v499_v40, %v6396_v17 }
  0x1e   : > { %1370 = vmatprep.subr.bf16.mxu0 %v5798_v8  ;;  %v791_v25 = vpack.c.bf16 %v592_v24, %v593_v23  ;;  %v6465_v45 = vld [vmem:[%s6380_s18 + $0x30] sm:$0xff]  ;;  %v5836_v49 = vld [vmem:[%s8642_s1 + $0x104] ss:$8 sps:$4 sm:$0xff]   ;;  %v533_v52 = vrot.slane %v501_v44, 1  ;;  %v5834_v54 = vld [vmem:[%s8642_s1 + $0x100] ss:$8 sps:$4 sm:$0xff]  }
  0x1f   : > { %v590_v50 = vsel %vm562_vm0, %v531_v46, %v532_v47  ;;  %v591_v51 = vsel %vm562_vm0, %v530_v21, %v531_v46  ;;  %v534_v53 = vrot.slane %v6465_v45, 1  ;;  %v5839_v56 = vld [vmem:[%s8642_s1 + $0x114] ss:$8 sps:$4 sm:$0xff]   ;;  %v6490_v58 = vld [vmem:[%s6380_s18 + $0x40] sm:$0xff]  ;;  %v5837_v60 = vld [vmem:[%s8642_s1 + $0x110] ss:$8 sps:$4 sm:$0xff]  }
  0x20   : > { %1394 = vmatprep.mubr.bf16.mxu0 %v791_v25  ;;  %v6487_v57 = vld [vmem:[%s6380_s18 + $0x38] sm:$0xff]  ;;  %v796_v59 = vpack.c.bf16 %v590_v50, %v591_v51  ;;  %v5842_v61 = vld [vmem:[%s8642_s1 + $0x124] ss:$8 sps:$4 sm:$0xff]   ;;  %v536_v63 = vrot.slane %v6490_v58, 1  ;;  %v589_v1 = vsel %vm562_vm0, %v532_v47, %v533_v52  ;;  %v5840_v2 = vld [vmem:[%s8642_s1 + $0x120] ss:$8 sps:$4 sm:$0xff]  }
  0x21   : > { %1371 = vmatpush1.bf16.msra.mxu0 %v5800_v10  ;;  %v535_v62 = vrot.slane %v6487_v57, 1  ;;  %v588_v0 = vsel %vm562_vm0, %v533_v52, %v534_v53  ;;  %v5845_v4 = vld [vmem:[%s8642_s1 + $0x134] ss:$8 sps:$4 sm:$0xff]   ;;  %v5843_v6 = vld [vmem:[%s8642_s1 + $0x130] ss:$8 sps:$4 sm:$0xff]   ;;  %v6515_v7 = vld [vmem:[%s6380_s18 + $0x48] sm:$0xff] }
  0x22   : > { %1372 = vmatprep.subr.bf16.mxu0 %v5801_v11  ;;  %v801_v5 = vpack.c.bf16 %v588_v0, %v589_v1  ;;  %v6518_v8 = vld [vmem:[%s6380_s18 + $0x50] sm:$0xff]  ;;  %v5848_v9 = vld [vmem:[%s8642_s1 + $0x144] ss:$8 sps:$4 sm:$0xff]   ;;  %v537_v19 = vrot.slane %v6515_v7, 1  ;;  %v6542_v23 = vld [vmem:[%s6380_s18 + $0x58] sm:$0xff]  ;;  %v810_v40 = vpack.c.bf16 %v6515_v7, %v6490_v58  ;;  %vm4789_vm8 = vcmask 982016  }
  0x23   : > { %v586_v10 = vsel %vm562_vm0, %v535_v62, %v536_v63  ;;  %v587_v11 = vsel %vm562_vm0, %v534_v53, %v535_v62  ;;  %v5851_v16 = vld [vmem:[%s8642_s1 + $0x154] ss:$8 sps:$4 sm:$0xff]   ;;  %v5849_v21 = vld [vmem:[%s8642_s1 + $0x150] ss:$8 sps:$4 sm:$0xff]   ;;  %v6545_v24 = vld [vmem:[%s6380_s18 + $0x60] sm:$0xff]  ;;  %vm4893_vm9 = vcmask 1041408  }
  0x24   : > { %v806_v17 = vpack.c.bf16 %v586_v10, %v587_v11  ;;  %v6591_v46 = vld [vmem:[%s6380_s18 + $0x80] sm:$0xff]  ;;  %v5861_v47 = vld [vmem:[%s8642_s1 + $0x190] ss:$8 sps:$4 sm:$0xff]   ;;  %v5875_v11 = vld [vmem:[%s8642_s1 + $0x1d4] ss:$8 sps:$4 sm:$0xff]   ;;  %vm4889_vm10 = vcmask 687104  }
  0x25   : > { %1373 = vmatpush1.bf16.msra.mxu0 %v5803_v13  ;;  %v5846_v13 = vld [vmem:[%s8642_s1 + $0x140] ss:$8 sps:$4 sm:$0xff]   ;;  %v6603_v50 = vld [vmem:[%s6380_s18 + $0x90] sm:$0xff]  ;;  %v5872_v0 = vld [vmem:[%s8642_s1 + $0x1c4] ss:$8 sps:$4 sm:$0xff]   ;;  %s486_s23 = sand.u32 1, %s6199_s19  }
  0x26   : > { %1374 = vmatprep.subr.bf16.mxu0 %v5804_v14  ;;  %v800_v14 = vpack.c.bf16 %v501_v44, %v500_v41  ;;  %v5863_v41 = vld [vmem:[%s8642_s1 + $0x194] ss:$8 sps:$4 sm:$0xff]   ;;  %v5864_v53 = vld [vmem:[%s8642_s1 + $0x1a0] ss:$8 sps:$4 sm:$0xff]   ;;  %v546_v62 = vrot.slane %v6603_v50, 1  ;;  %s5015_s25 = sshll.u32 %s486_s23, 3 }
  0x27   : > { %s5328_s24 = sshll.u32 %s6314_s22, 7  ;;  %s488_s29 = scalar_lea.vmem [#allocation4], %s5015_s25 }
  0x28   : > { %s4952_s30 = sshll.u32 %s488_s29, 4  ;;  %s8599_s16 = scalar_lea.hbm %s8656_s15, %s5328_s24  ;;  %s8601_s30 = int_to_ptr.vmem [resolvable:$true] %s4952_s30 }
  0x29   : > { %1375 = vmatpush1.bf16.msra.mxu0 %v5806_v20  ;;  %v538_v20 = vrot.slane %v6518_v8, 1  ;;  %s4939_s17 = scalar_lea.sflag [#allocation5], %s486_s23  ;;  %s6145_s22 = scalar_lea.vmem %s8601_s30, 128 }
  0x2a   : > { %1376 = vmatprep.subr.bf16.mxu0 %v5807_v22  ;;  %v5854_v22 = vld [vmem:[%s8642_s1 + $0x164] ss:$8 sps:$4 sm:$0xff]   ;;  %p6146_p11 = scmp.ne.s32.totalorder %s8601_s30, %s6145_s22  ;;  %s6212_s25 = smov [#allocation4]  }
  0x2b   : > { %v584_v25 = vsel %vm562_vm0, %v537_v19, %v538_v20  ;;  %s6149_s20 = sshll.u32 %s6212_s25, 4  ;;  %s6150_s20 = int_to_ptr.vmem [resolvable:$false] %s6149_s20 }
  0x2c   : > { %p6147_p12 = pnand %p6146_p11, %p6331_p5  ;;  %s6151_s27 = scalar_lea.vmem %s6150_s20, 256 }
  0x2d   : > { %1377 = vmatpush1.bf16.msra.mxu0 %v5809_v26  ;;  %v585_v26 = vsel %vm562_vm0, %v536_v63, %v537_v19  ;;  %v5867_v63 = vld [vmem:[%s8642_s1 + $0x1b0] ss:$8 sps:$4 sm:$0xff]   ;;  %p6152_p0 = scmp.lt.s32.totalorder %s8601_s30, %s6150_s20  ;;  %p6153_p1 = scmp.lt.s32.totalorder %s6151_s27, %s6145_s22 }
  0x2e   : > { %1378 = vmatprep.subr.bf16.mxu0 %v5810_v27  ;;  %v5852_v27 = vld [vmem:[%s8642_s1 + $0x160] ss:$8 sps:$4 sm:$0xff]   ;;  %p6148_p13 = pneg %p6147_p12 }
  0x2f   : > { %p6154_p2 = por %p6153_p1, %p6152_p0 }
  0x31   : > { %1379 = vmatpush1.bf16.msra.mxu0 %v5812_v28  ;;  %v805_v28 = vpack.c.bf16 %v6487_v57, %v6465_v45  ;;  %v6588_v45 = vld [vmem:[%s6380_s18 + $0x78] sm:$0xff]  ;;  %p6155_p3 = pnand %p6154_p2, %p6148_p13 }
  0x32   : > { %1380 = vmatprep.subr.bf16.mxu0 %v5813_v29  ;;  %v5857_v29 = vld [vmem:[%s8642_s1 + $0x174] ss:$8 sps:$4 sm:$0xff]  }
  0x35   : > { %1381 = vmatpush1.bf16.msra.mxu0 %v5815_v30  ;;  %v811_v30 = vpack.c.bf16 %v584_v25, %v585_v26  ;;  %v5876_v26 = vld [vmem:[%s8642_s1 + $0x1e0] ss:$8 sps:$4 sm:$0xff]  }
  0x36   : > { %1382 = vmatprep.subr.bf16.mxu0 %v5816_v31  ;;  %v539_v31 = vrot.slane %v6542_v23, 1 }
  0x39   : > { %1383 = vmatpush1.bf16.msra.mxu0 %v5818_v32  ;;  %v540_v32 = vrot.slane %v6545_v24, 1 }
  0x3a   : > { %1384 = vmatprep.subr.bf16.mxu0 %v5819_v33  ;;  %v5855_v33 = vld [vmem:[%s8642_s1 + $0x170] ss:$8 sps:$4 sm:$0xff]  }
  0x3d   : > { %1385 = vmatpush1.bf16.msra.mxu0 %v5821_v34  ;;  %v5860_v34 = vld [vmem:[%s8642_s1 + $0x184] ss:$8 sps:$4 sm:$0xff]  }
  0x3e   : > { %1386 = vmatprep.subr.bf16.mxu0 %v5822_v35  ;;  %v6568_v35 = vld [vmem:[%s6380_s18 + $0x68] sm:$0xff] }
  0x3f   : > { %v820_v10 = vpack.c.bf16 %v6568_v35, %v6545_v24 }
  0x41   : > { %1387 = vmatpush1.bf16.msra.mxu0 %v5824_v36  ;;  %v6571_v36 = vld [vmem:[%s6380_s18 + $0x70] sm:$0xff] }
  0x42   : > { %1388 = vmatprep.subr.bf16.mxu0 %v5825_v37  ;;  %v582_v37 = vsel %vm562_vm0, %v539_v31, %v540_v32  ;;  %v542_v44 = vrot.slane %v6571_v36, 1 }
  0x45   : > { %1389 = vmatpush1.bf16.msra.mxu0 %v5827_v38  ;;  %v583_v38 = vsel %vm562_vm0, %v538_v20, %v539_v31  ;;  %v5873_v20 = vld [vmem:[%s8642_s1 + $0x1d0] ss:$8 sps:$4 sm:$0xff]   ;;  %v5884_v31 = vld [vmem:[%s8642_s1 + $0x204] ss:$8 sps:$4 sm:$0xff]  }
  0x46   : > { %1390 = vmatprep.subr.bf16.mxu0 %v5828_v39  ;;  %v5858_v39 = vld [vmem:[%s8642_s1 + $0x180] ss:$8 sps:$4 sm:$0xff]  }
  0x49   : > { %1391 = vmatpush1.bf16.msra.mxu0 %v5830_v42  ;;  %v816_v42 = vpack.c.bf16 %v582_v37, %v583_v38  ;;  %v6686_v37 = vld [vmem:[%s6380_s18 + $0xb8] sm:$0xff]  ;;  %v6689_v38 = vld [vmem:[%s6380_s18 + $0xc0] sm:$0xff] }
  0x4a   : > { %1392 = vmatprep.subr.bf16.mxu0 %v5831_v43  ;;  %v541_v43 = vrot.slane %v6568_v35, 1 }
  0x4c   : > { %v580_v51 = vsel %vm562_vm0, %v541_v43, %v542_v44  ;;  %v581_v52 = vsel %vm562_vm0, %v540_v32, %v541_v43 }
  0x4d   : > { %1393 = vmatpush1.bf16.msra.mxu0 %v5833_v48  ;;  %v5866_v48 = vld [vmem:[%s8642_s1 + $0x1a4] ss:$8 sps:$4 sm:$0xff]  }
  0x4e   : > { %1555 = vmatprep.subr.bf16.mxu0 %v5836_v49  ;;  %v6600_v49 = vld [vmem:[%s6380_s18 + $0x88] sm:$0xff] }
  0x50   : > { %1395 = vmatmul.mubr.bf16.vlgmr.msra.gmra.mrb[0].mxu0 %v790_v55  ;;  %v5869_v55 = vld [vmem:[%s8642_s1 + $0x1b4] ss:$8 sps:$4 sm:$0xff]  }
  0x51   : > { %1556 = vmatpush1.bf16.msra.mxu0 %v5834_v54  ;;  %1404 = vmatprep.mubr.bf16.mxu0 %v796_v59  ;;  %v815_v54 = vpack.c.bf16 %v6542_v23, %v6518_v8  ;;  %v543_v59 = vrot.slane %v6588_v45, 1 }
  0x52   : > { %1557 = vmatprep.subr.bf16.mxu0 %v5839_v56  ;;  %v821_v56 = vpack.c.bf16 %v580_v51, %v581_v52 }
  0x55   : > { %1558 = vmatpush1.bf16.msra.mxu0 %v5837_v60  ;;  %v544_v60 = vrot.slane %v6591_v46, 1 }
  0x56   : > { %1559 = vmatprep.subr.bf16.mxu0 %v5842_v61  ;;  %v545_v61 = vrot.slane %v6600_v49, 1 }
  0x57   : > { %v578_v1 = vsel %vm562_vm0, %v543_v59, %v544_v60 }
  0x58   : > { %1405 = vmatmul.mubr.bf16.gmra.mrb[4].mxu0 %v795_v3  ;;  %v6632_v3 = vld [vmem:[%s6380_s18 + $0x98] sm:$0xff]  ;;  %v577_v25 = vsel %vm562_vm0, %v544_v60, %v545_v61  ;;  %v6717_v60 = vld [vmem:[%s6380_s18 + $0xe0] sm:$0xff] }
  0x59   : > { %1414 = vmatprep.mubr.bf16.mxu0 %v801_v5  ;;  %1560 = vmatpush1.bf16.msra.mxu0 %v5840_v2  ;;  %v579_v2 = vsel %vm562_vm0, %v542_v44, %v543_v59  ;;  %v6638_v5 = vld [vmem:[%s6380_s18 + $0xa8] sm:$0xff]  ;;  %v835_v44 = vpack.c.bf16 %v6632_v3, %v6603_v50  ;;  %v6714_v59 = vld [vmem:[%s6380_s18 + $0xd8] sm:$0xff] }
  0x5a   : > { %1561 = vmatprep.subr.bf16.mxu0 %v5845_v4  ;;  %v6635_v4 = vld [vmem:[%s6380_s18 + $0xa0] sm:$0xff] }
  0x5d   : > { %1562 = vmatpush1.bf16.msra.mxu0 %v5843_v6  ;;  %v6641_v6 = vld [vmem:[%s6380_s18 + $0xb0] sm:$0xff] }
  0x5e   : > { %1563 = vmatprep.subr.bf16.mxu0 %v5848_v9  ;;  %v5870_v9 = vld [vmem:[%s8642_s1 + $0x1c0] ss:$8 sps:$4 sm:$0xff]   ;;  %v550_v19 = vrot.slane %v6641_v6, 1 }
  0x60   : > { %1415 = vmatmul.mubr.bf16.gmra.mrb[8].mxu0 %v800_v14  ;;  %v547_v14 = vrot.slane %v6632_v3, 1 }
  0x61   : > { %1424 = vmatprep.mubr.bf16.mxu0 %v806_v17  ;;  %1564 = vmatpush1.bf16.msra.mxu0 %v5846_v13  ;;  %v826_v13 = vpack.c.bf16 %v578_v1, %v579_v2  ;;  %v549_v17 = vrot.slane %v6638_v5, 1  ;;  %v845_v2 = vpack.c.bf16 %v6686_v37, %v6641_v6 }
  0x62   : > { %1565 = vmatprep.subr.bf16.mxu0 %v5851_v16  ;;  %v548_v16 = vrot.slane %v6635_v4, 1 }
  0x64   : > { %v574_v32 = vsel %vm562_vm0, %v547_v14, %v548_v16  ;;  %v573_v43 = vsel %vm562_vm0, %v548_v16, %v549_v17 }
  0x65   : > { %1566 = vmatpush1.bf16.msra.mxu0 %v5849_v21  ;;  %v5878_v21 = vld [vmem:[%s8642_s1 + $0x1e4] ss:$8 sps:$4 sm:$0xff]  }
  0x66   : > { %1567 = vmatprep.subr.bf16.mxu0 %v5854_v22  ;;  %v576_v22 = vsel %vm562_vm0, %v545_v61, %v546_v62 }
  0x68   : > { %1425 = vmatmul.mubr.bf16.gmra.mrb[12].mxu0 %v805_v28  ;;  %v5881_v28 = vld [vmem:[%s8642_s1 + $0x1f4] ss:$8 sps:$4 sm:$0xff]  }
  0x69   : > { %1434 = vmatprep.mubr.bf16.mxu0 %v811_v30  ;;  %1568 = vmatpush1.bf16.msra.mxu0 %v5852_v27  ;;  %v825_v27 = vpack.c.bf16 %v6588_v45, %v6571_v36  ;;  %v5879_v30 = vld [vmem:[%s8642_s1 + $0x1f0] ss:$8 sps:$4 sm:$0xff]  }
  0x6a   : > { %1569 = vmatprep.subr.bf16.mxu0 %v5857_v29  ;;  %v831_v29 = vpack.c.bf16 %v576_v22, %v577_v25  ;;  %v6746_v25 = vld [vmem:[%s6380_s18 + $0xf8] sm:$0xff] }
  0x6d   : > { %1570 = vmatpush1.bf16.msra.mxu0 %v5855_v33  ;;  %v575_v33 = vsel %vm562_vm0, %v546_v62, %v547_v14  ;;  %v555_v62 = vrot.slane %v6714_v59, 1 }
  0x6e   : > { %1571 = vmatprep.subr.bf16.mxu0 %v5860_v34  ;;  %v830_v34 = vpack.c.bf16 %v6600_v49, %v6591_v46 }
  0x70   : > { %1435 = vmatmul.mubr.bf16.gmra.mrb[16].mxu0 %v810_v40  ;;  %v551_v40 = vrot.slane %v6686_v37, 1 }
  0x71   : > { %1444 = vmatprep.mubr.bf16.mxu0 %v816_v42  ;;  %1572 = vmatpush1.bf16.msra.mxu0 %v5858_v39  ;;  %v836_v39 = vpack.c.bf16 %v574_v32, %v575_v33  ;;  %v572_v42 = vsel %vm562_vm0, %v549_v17, %v550_v19  ;;  %v6760_v33 = vld [vmem:[%s6380_s18] sm:$0xff] }
  0x72   : > { %1573 = vmatprep.subr.bf16.mxu0 %v5863_v41  ;;  %v552_v41 = vrot.slane %v6689_v38, 1  ;;  %v841_v51 = vpack.c.bf16 %v572_v42, %v573_v43 }
  0x75   : > { %1574 = vmatpush1.bf16.msra.mxu0 %v5861_v47  ;;  %v6700_v47 = vld [vmem:[%s6380_s18 + $0xc8] sm:$0xff] }
  0x76   : > { %1575 = vmatprep.subr.bf16.mxu0 %v5866_v48  ;;  %v6703_v48 = vld [vmem:[%s6380_s18 + $0xd0] sm:$0xff]  ;;  %v553_v52 = vrot.slane %v6700_v47, 1  ;;  %v850_v16 = vpack.c.bf16 %v6700_v47, %v6689_v38 }
  0x78   : > { %1445 = vmatmul.mubr.bf16.gmra.mrb[20].mxu0 %v815_v54  ;;  %v570_v54 = vsel %vm562_vm0, %v551_v40, %v552_v41  ;;  %v569_v1 = vsel %vm562_vm0, %v552_v41, %v553_v52  ;;  %v6768_v41 = vld [vmem:[%s6380_s18 + $0x10] sm:$0xff] }
  0x79   : > { %1454 = vmatprep.mubr.bf16.mxu0 %v821_v56  ;;  %1576 = vmatpush1.bf16.msra.mxu0 %v5864_v53  ;;  %v554_v53 = vrot.slane %v6703_v48, 1  ;;  %v840_v56 = vpack.c.bf16 %v6638_v5, %v6635_v4  ;;  %v662_v15 = vrot.slane %v6768_v41, 3 }
  0x7a   : > { %1577 = vmatprep.subr.bf16.mxu0 %v5869_v55  ;;  %v571_v55 = vsel %vm562_vm0, %v550_v19, %v551_v40 }
  0x7b   : > { %v846_v61 = vpack.c.bf16 %v570_v54, %v571_v55  ;;  %v567_v14 = vsel %vm562_vm0, %v554_v53, %v555_v62  ;;  %v6785_v54 = vld [vmem:[%s6380_s18 + $0x18] sm:$0xff] }
  0x7c   : > { %v663_v55 = vrot.slane %v6785_v54, 3 }
  0x7d   : > { %1578 = vmatpush1.bf16.msra.mxu0 %v5867_v63  ;;  %v556_v63 = vrot.slane %v6717_v60, 1 }
  0x7e   : > { %1579 = vmatprep.subr.bf16.mxu0 %v5872_v0  ;;  %v568_v0 = vsel %vm562_vm0, %v553_v52, %v554_v53  ;;  %v597_v53 = vrot.slane %v6768_v41, 2 }
  0x80   : > { %1455 = vmatmul.mubr.bf16.gmra.mrb[24].mxu0 %v820_v10  ;;  %v6728_v10 = vld [vmem:[%s6380_s18 + $0xe8] sm:$0xff] }
  0x81   : > { %1464 = vmatprep.mubr.bf16.mxu0 %v826_v13  ;;  %1580 = vmatpush1.bf16.msra.mxu0 %v5870_v9  ;;  %v851_v9 = vpack.c.bf16 %v568_v0, %v569_v1  ;;  %v566_v13 = vsel %vm562_vm0, %v555_v62, %v556_v63  ;;  %v557_v19 = vrot.slane %v6728_v10, 1  ;;  %v8665_v0 = vmov 0  }
  0x82   : > { %1581 = vmatprep.subr.bf16.mxu0 %v5875_v11  ;;  %v6731_v11 = vld [vmem:[%s6380_s18 + $0xf0] sm:$0xff]  ;;  %v856_v17 = vpack.c.bf16 %v566_v13, %v567_v14  ;;  %2174 = vmatprep.subr.bf16.mxu1 %v8665_v0  ;;  %v5882_v13 = vld [vmem:[%s8642_s1 + $0x200] ss:$8 sps:$4 sm:$0xff]  }
  0x83   : > { %v565_v22 = vsel %vm562_vm0, %v556_v63, %v557_v19  ;;  %v865_v43 = vpack.c.bf16 %v6746_v25, %v6731_v11 }
  0x85   : > { %1582 = vmatpush1.bf16.msra.mxu0 %v5873_v20  ;;  %v558_v20 = vrot.slane %v6731_v11, 1 }
  0x86   : > { %1583 = vmatprep.subr.bf16.mxu0 %v5878_v21 }
  0x87   : > { %v564_v21 = vsel %vm562_vm0, %v557_v19, %v558_v20  ;;  %v6809_v19 = vld [vmem:[%s6380_s18 + $0x28] sm:$0xff] }
  0x88   : > { %1465 = vmatmul.mubr.bf16.gmra.mrb[28].mxu0 %v825_v27  ;;  %v861_v27 = vpack.c.bf16 %v564_v21, %v565_v22  ;;  %v6813_v21 = vld [vmem:[%s6380_s18 + $0x30] sm:$0xff] }
  0x89   : > { %1474 = vmatprep.mubr.bf16.mxu0 %v831_v29  ;;  %1584 = vmatpush1.bf16.msra.mxu0 %v5876_v26  ;;  %v855_v26 = vpack.c.bf16 %v6714_v59, %v6703_v48  ;;  %v666_v22 = vrot.slane %v6813_v21, 3 }
  0x8a   : > { %1585 = vmatprep.subr.bf16.mxu0 %v5881_v28  ;;  %v559_v28 = vrot.slane %v6746_v25, 1 }
  0x8c   : > { %v563_v29 = vsel %vm562_vm0, %v558_v20, %v559_v28  ;;  %v665_v20 = vrot.slane %v6809_v19, 3 }
  0x8d   : > { %1586 = vmatpush1.bf16.msra.mxu0 %v5879_v30  ;;  %v594_v30 = vsel %vm562_vm0, %v559_v28, %v528_v18 }
  0x8e   : > { %1748 = vmatprep.subr.bf16.mxu0 %v5884_v31  ;;  %v860_v31 = vpack.c.bf16 %v6728_v10, %v6717_v60  ;;  %v866_v32 = vpack.c.bf16 %v594_v30, %v563_v29  ;;  %v5885_v29 = vld [vmem:[%s8642_s1 + $0x210] ss:$8 sps:$4 sm:$0xff]   ;;  %v718_v30 = vsel %vm692_vm1, %v665_v20, %v666_v22 }
  0x90   : > { %1475 = vmatmul.mubr.bf16.gmra.mrb[32].mxu0 %v830_v34  ;;  %v660_v34 = vrot.slane %v6760_v33, 3 }
  0x91   : > { %1484 = vmatprep.mubr.bf16.mxu0 %v836_v39  ;;  %v6764_v39 = vld [vmem:[%s6380_s18 + $0x8] sm:$0xff] }
  0x92   : > { %v661_v40 = vrot.slane %v6764_v39, 3  ;;  %v596_v52 = vrot.slane %v6764_v39, 2 }
  0x94   : > { %v722_v18 = vsel %vm692_vm1, %v661_v40, %v662_v15  ;;  %v723_v42 = vsel %vm692_vm1, %v660_v34, %v661_v40  ;;  %v657_v62 = vsel %vm627_vm2, %v596_v52, %v597_v53 }
  0x98   : > { %1485 = vmatmul.mubr.bf16.gmra.mrb[36].mxu0 %v835_v44  ;;  %v793_v44 = vpack.c.bf16 %v722_v18, %v723_v42  ;;  %v600_v18 = vrot.slane %v6809_v19, 2  ;;  %v601_v42 = vrot.slane %v6813_v21, 2 }
  0x99   : > { %1494 = vmatprep.mubr.bf16.mxu0 %v841_v51  ;;  %v595_v51 = vrot.slane %v6760_v33, 2 }
  0x9b   : > { %v658_v63 = vsel %vm627_vm2, %v595_v51, %v596_v52  ;;  %v668_v52 = vrot.slane %v6490_v58, 3 }
  0xa0   : > { %1495 = vmatmul.mubr.bf16.gmra.mrb[40].mxu0 %v840_v56  ;;  %v6789_v56 = vld [vmem:[%s6380_s18 + $0x20] sm:$0xff] }
  0xa1   : > { %1504 = vmatprep.mubr.bf16.mxu0 %v846_v61  ;;  %v664_v61 = vrot.slane %v6789_v56, 3 }
  0xa3   : > { %v720_v1 = vsel %vm692_vm1, %v663_v55, %v664_v61 }
  0xa8   : > { %1505 = vmatmul.mubr.bf16.gmra.mrb[44].mxu0 %v845_v2  ;;  %v721_v2 = vsel %vm692_vm1, %v662_v15, %v663_v55  ;;  %v653_v55 = vsel %vm627_vm2, %v600_v18, %v601_v42 }
  0xa9   : > { %1514 = vmatprep.mubr.bf16.mxu0 %v851_v9  ;;  %v792_v9 = vpack.c.bf16 %v657_v62, %v658_v63  ;;  %v798_v14 = vpack.c.bf16 %v720_v1, %v721_v2  ;;  %v5896_v63 = vld [vmem:[%s8642_s1 + $0x244] ss:$8 sps:$4 sm:$0xff]  }
  0xb0   : > { %1515 = vmatmul.mubr.bf16.gmra.mrb[48].mxu0 %v850_v16  ;;  %v598_v16 = vrot.slane %v6785_v54, 2 }
  0xb1   : > { %1524 = vmatprep.mubr.bf16.mxu0 %v856_v17  ;;  %v599_v17 = vrot.slane %v6789_v56, 2 }
  0xb2   : > { %v656_v28 = vsel %vm627_vm2, %v597_v53, %v598_v16  ;;  %v5893_v53 = vld [vmem:[%s8642_s1 + $0x234] ss:$8 sps:$4 sm:$0xff]  }
  0xb8   : > { %1525 = vmatmul.mubr.bf16.gmra.mrb[52].mxu0 %v855_v26  ;;  %v5887_v26 = vld [vmem:[%s8642_s1 + $0x214] ss:$8 sps:$4 sm:$0xff]  }
  0xb9   : > { %1534 = vmatprep.mubr.bf16.mxu0 %v861_v27  ;;  %v655_v27 = vsel %vm627_vm2, %v598_v16, %v599_v17 }
  0xba   : > { %v797_v40 = vpack.c.bf16 %v655_v27, %v656_v28 }
  0xc0   : > { %1535 = vmatmul.mubr.bf16.gmra.mrb[56].mxu0 %v860_v31  ;;  %v719_v31 = vsel %vm692_vm1, %v664_v61, %v665_v20  ;;  %v654_v61 = vsel %vm627_vm2, %v599_v17, %v600_v18  ;;  %v5894_v17 = vld [vmem:[%s8642_s1 + $0x240] ss:$8 sps:$4 sm:$0xff]   ;;  %v669_v20 = vrot.slane %v6515_v7, 3  ;;  %v604_v18 = vrot.slane %v6515_v7, 2 }
  0xc1   : > { %1544 = vmatprep.mubr.bf16.mxu0 %v866_v32  ;;  %v5890_v32 = vld [vmem:[%s8642_s1 + $0x224] ss:$8 sps:$4 sm:$0xff]   ;;  %v803_v15 = vpack.c.bf16 %v718_v30, %v719_v31  ;;  %v802_v1 = vpack.c.bf16 %v653_v55, %v654_v61  ;;  %v5903_v55 = vld [vmem:[%s8642_s1 + $0x270] ss:$8 sps:$4 sm:$0xff]  }
  0xc2   : > { %v715_v31 = vsel %vm692_vm1, %v668_v52, %v669_v20 }
  0xc8   : > { %1545 = vmatmul.mubr.bf16.gmra.mrb[60].mxu0 %v865_v43  ;;  %v5888_v43 = vld [vmem:[%s8642_s1 + $0x220] ss:$8 sps:$4 sm:$0xff]  }
  0xc9   : > { %1587 = vmatprep.mubr.bf16.mxu0 %v793_v44  ;;  %v667_v44 = vrot.slane %v6487_v57, 3  ;;  %v5891_v57 = vld [vmem:[%s8642_s1 + $0x230] ss:$8 sps:$4 sm:$0xff]  }
  0xcb   : > { %v716_v58 = vsel %vm692_vm1, %v667_v44, %v668_v52  ;;  %v717_v62 = vsel %vm692_vm1, %v666_v22, %v667_v44  ;;  %v670_v22 = vrot.slane %v6518_v8, 3  ;;  %v671_v44 = vrot.slane %v6542_v23, 3 }
  0xcc   : > { %v808_v2 = vpack.c.bf16 %v716_v58, %v717_v62  ;;  %v672_v52 = vrot.slane %v6545_v24, 3 }
  0xcd   : > { %v714_v30 = vsel %vm692_vm1, %v669_v20, %v670_v22 }
  0xce   : > { %v712_v61 = vsel %vm692_vm1, %v671_v44, %v672_v52 }
  0xd0   : > { %1588 = vmatmul.mubr.bf16.vlgmr.msra.gmra.mrb[0].mxu0 %v792_v9  ;;  %v6858_v9 = vld [vmem:[%s6380_s18 + $0x38] sm:$0xff] }
  0xd1   : > { %1749 = vmatpush1.bf16.msra.mxu0 %v5882_v13  ;;  %1597 = vmatprep.mubr.bf16.mxu0 %v798_v14  ;;  %v602_v13 = vrot.slane %v6858_v9, 2  ;;  %v6862_v14 = vld [vmem:[%s6380_s18 + $0x40] sm:$0xff] }
  0xd2   : > { %1750 = vmatprep.subr.bf16.mxu0 %v5887_v26  ;;  %v603_v16 = vrot.slane %v6862_v14, 2  ;;  %v5899_v26 = vld [vmem:[%s8642_s1 + $0x254] ss:$8 sps:$4 sm:$0xff]  }
  0xd3   : > { %v652_v28 = vsel %vm627_vm2, %v601_v42, %v602_v13  ;;  %v605_v42 = vrot.slane %v6518_v8, 2 }
  0xd4   : > { %v651_v27 = vsel %vm627_vm2, %v602_v13, %v603_v16  ;;  %v650_v8 = vsel %vm627_vm2, %v603_v16, %v604_v18  ;;  %v674_v13 = vrot.slane %v6571_v36, 3 }
  0xd5   : > { %1751 = vmatpush1.bf16.msra.mxu0 %v5885_v29  ;;  %v5897_v29 = vld [vmem:[%s8642_s1 + $0x250] ss:$8 sps:$4 sm:$0xff]   ;;  %v649_v7 = vsel %vm627_vm2, %v604_v18, %v605_v42  ;;  %v611_v18 = vrot.slane %v6591_v46, 2 }
  0xd6   : > { %1752 = vmatprep.subr.bf16.mxu0 %v5890_v32  ;;  %v5902_v32 = vld [vmem:[%s8642_s1 + $0x264] ss:$8 sps:$4 sm:$0xff]   ;;  %v812_v58 = vpack.c.bf16 %v649_v7, %v650_v8  ;;  %v612_v8 = vrot.slane %v6600_v49, 2 }
  0xd8   : > { %1598 = vmatmul.mubr.bf16.gmra.mrb[4].mxu0 %v797_v40  ;;  %v807_v40 = vpack.c.bf16 %v651_v27, %v652_v28  ;;  %v609_v27 = vrot.slane %v6571_v36, 2  ;;  %v675_v28 = vrot.slane %v6588_v45, 3 }
  0xd9   : > { %1607 = vmatprep.mubr.bf16.mxu0 %v803_v15  ;;  %1753 = vmatpush1.bf16.msra.mxu0 %v5888_v43  ;;  %v813_v15 = vpack.c.bf16 %v714_v30, %v715_v31  ;;  %v5900_v43 = vld [vmem:[%s8642_s1 + $0x260] ss:$8 sps:$4 sm:$0xff]  }
  0xda   : > { %1754 = vmatprep.subr.bf16.mxu0 %v5893_v53  ;;  %v5905_v53 = vld [vmem:[%s8642_s1 + $0x274] ss:$8 sps:$4 sm:$0xff]  }
  0xdd   : > { %1755 = vmatpush1.bf16.msra.mxu0 %v5891_v57  ;;  %v713_v57 = vsel %vm692_vm1, %v670_v22, %v671_v44 }
  0xde   : > { %1756 = vmatprep.subr.bf16.mxu0 %v5896_v63  ;;  %v818_v62 = vpack.c.bf16 %v712_v61, %v713_v57  ;;  %v606_v63 = vrot.slane %v6542_v23, 2  ;;  %v679_v61 = vrot.slane %v6632_v3, 3  ;;  %v680_v57 = vrot.slane %v6635_v4, 3 }
  0xe0   : > { %1608 = vmatmul.mubr.bf16.gmra.mrb[8].mxu0 %v802_v1  ;;  %v607_v1 = vrot.slane %v6545_v24, 2 }
  0xe1   : > { %1617 = vmatprep.mubr.bf16.mxu0 %v808_v2  ;;  %1757 = vmatpush1.bf16.msra.mxu0 %v5894_v17  ;;  %v673_v2 = vrot.slane %v6568_v35, 3  ;;  %v648_v17 = vsel %vm627_vm2, %v605_v42, %v606_v63  ;;  %v677_v42 = vrot.slane %v6600_v49, 3 }
  0xe2   : > { %1758 = vmatprep.subr.bf16.mxu0 %v5899_v26  ;;  %v647_v16 = vsel %vm627_vm2, %v606_v63, %v607_v1  ;;  %v608_v26 = vrot.slane %v6568_v35, 2  ;;  %v709_v35 = vsel %vm692_vm1, %v674_v13, %v675_v28  ;;  %v704_v63 = vsel %vm692_vm1, %v679_v61, %v680_v57 }
  0xe3   : > { %v710_v23 = vsel %vm692_vm1, %v673_v2, %v674_v13  ;;  %v711_v24 = vsel %vm692_vm1, %v672_v52, %v673_v2  ;;  %v817_v20 = vpack.c.bf16 %v647_v16, %v648_v17  ;;  %v614_v2 = vrot.slane %v6632_v3, 2 }
  0xe4   : > { %v823_v22 = vpack.c.bf16 %v710_v23, %v711_v24  ;;  %v645_v30 = vsel %vm627_vm2, %v608_v26, %v609_v27  ;;  %v646_v31 = vsel %vm627_vm2, %v607_v1, %v608_v26  ;;  %v615_v13 = vrot.slane %v6635_v4, 2 }
  0xe5   : > { %1759 = vmatpush1.bf16.msra.mxu0 %v5897_v29  ;;  %v676_v29 = vrot.slane %v6591_v46, 3  ;;  %v681_v16 = vrot.slane %v6638_v5, 3  ;;  %v682_v17 = vrot.slane %v6641_v6, 3  ;;  %v616_v26 = vrot.slane %v6638_v5, 2 }
  0xe6   : > { %1760 = vmatprep.subr.bf16.mxu0 %v5902_v32  ;;  %v639_v23 = vsel %vm627_vm2, %v614_v2, %v615_v13 }
  0xe7   : > { %v708_v32 = vsel %vm692_vm1, %v675_v28, %v676_v29  ;;  %v703_v3 = vsel %vm692_vm1, %v680_v57, %v681_v16  ;;  %v683_v28 = vrot.slane %v6686_v37, 3 }
  0xe8   : > { %1618 = vmatmul.mubr.bf16.gmra.mrb[12].mxu0 %v807_v40  ;;  %v822_v40 = vpack.c.bf16 %v645_v30, %v646_v31  ;;  %v828_v36 = vpack.c.bf16 %v708_v32, %v709_v35  ;;  %v638_v31 = vsel %vm627_vm2, %v615_v13, %v616_v26  ;;  %v690_v13 = vrot.slane %v6731_v11, 3 }
  0xe9   : > { %1627 = vmatprep.mubr.bf16.mxu0 %v813_v15  ;;  %1761 = vmatpush1.bf16.msra.mxu0 %v5900_v43  ;;  %v610_v15 = vrot.slane %v6588_v45, 2  ;;  %v678_v43 = vrot.slane %v6603_v50, 3  ;;  %v707_v45 = vsel %vm692_vm1, %v676_v29, %v677_v42  ;;  %v684_v29 = vrot.slane %v6689_v38, 3 }
  0xea   : > { %1762 = vmatprep.subr.bf16.mxu0 %v5905_v53  ;;  %v701_v5 = vsel %vm692_vm1, %v682_v17, %v683_v28 }
  0xeb   : > { %v643_v44 = vsel %vm627_vm2, %v610_v15, %v611_v18  ;;  %v644_v52 = vsel %vm627_vm2, %v609_v27, %v610_v15  ;;  %v706_v53 = vsel %vm692_vm1, %v677_v42, %v678_v43  ;;  %v705_v49 = vsel %vm692_vm1, %v678_v43, %v679_v61 }
  0xec   : > { %v827_v7 = vpack.c.bf16 %v643_v44, %v644_v52  ;;  %v833_v46 = vpack.c.bf16 %v706_v53, %v707_v45  ;;  %v617_v27 = vrot.slane %v6641_v6, 2  ;;  %v700_v32 = vsel %vm692_vm1, %v683_v28, %v684_v29 }
  0xed   : > { %1763 = vmatpush1.bf16.msra.mxu0 %v5903_v55  ;;  %v613_v55 = vrot.slane %v6603_v50, 2  ;;  %v838_v50 = vpack.c.bf16 %v704_v63, %v705_v49  ;;  %v848_v6 = vpack.c.bf16 %v700_v32, %v701_v5  ;;  %v685_v15 = vrot.slane %v6700_v47, 3 }
  0xee   : > { %3878 = vmatprep.subr.bf16.mxu0 %v8665_v0  ;;  %v637_v30 = vsel %vm627_vm2, %v616_v26, %v617_v27  ;;  %v691_v26 = vrot.slane %v6746_v25, 3  ;;  %v626_v5 = vrot.slane %v6746_v25, 2 }
  0xef   : > { %v640_v24 = vsel %vm627_vm2, %v613_v55, %v614_v2  ;;  %v842_v35 = vpack.c.bf16 %v637_v30, %v638_v31  ;;  %v699_v52 = vsel %vm692_vm1, %v684_v29, %v685_v15  ;;  %v689_v2 = vrot.slane %v6728_v10, 3 }
  0xf0   : > { %1628 = vmatmul.mubr.bf16.gmra.mrb[16].mxu0 %v812_v58  ;;  %v641_v58 = vsel %vm627_vm2, %v612_v8, %v613_v55  ;;  %v688_v55 = vrot.slane %v6717_v60, 3  ;;  %v693_v29 = vsel %vm692_vm1, %v690_v13, %v691_v26  ;;  %v724_v30 = vsel %vm692_vm1, %v691_v26, %v660_v34 }
  0xf1   : > { %1637 = vmatprep.mubr.bf16.mxu0 %v818_v62  ;;  %v642_v62 = vsel %vm627_vm2, %v611_v18, %v612_v8  ;;  %v686_v18 = vrot.slane %v6703_v48, 3  ;;  %v687_v8 = vrot.slane %v6714_v59, 3  ;;  %v868_v32 = vpack.c.bf16 %v724_v30, %v693_v29  ;;  %v6136_v30 = vld [vmem:[%s6380_s18 + $0x70] sm:$0xff] }
  0xf2   : > { %v832_v1 = vpack.c.bf16 %v641_v58, %v642_v62  ;;  %v727_v34 = vrot.slane %v6768_v41, 4 }
  0xf3   : > { %v698_v44 = vsel %vm692_vm1, %v685_v15, %v686_v18  ;;  %v696_v58 = vsel %vm692_vm1, %v687_v8, %v688_v55  ;;  %v697_v62 = vsel %vm692_vm1, %v686_v18, %v687_v8  ;;  %v726_v15 = vrot.slane %v6764_v39, 4  ;;  %v5906_v18 = vld [vmem:[%s8644_s3] sm:$0xff]   ;;  %v5907_v39 = vld [vmem:[%s8644_s3 + $0x8] sm:$0xff]  }
  0xf4   : > { %v853_v45 = vpack.c.bf16 %v698_v44, %v699_v52  ;;  %v858_v49 = vpack.c.bf16 %v696_v58, %v697_v62  ;;  %2175 = vmatpush1.bf16.msra.mxu1 %v5906_v18  ;;  %v729_v44 = vrot.slane %v6789_v56, 4  ;;  %v5908_v52 = vld [vmem:[%s8644_s3 + $0x10] sm:$0xff]   ;;  %v5910_v8 = vld [vmem:[%s8644_s3 + $0x20] sm:$0xff]   ;;  %v733_v58 = vrot.slane %v6862_v14, 4 }
  0xf5   : > { %2176 = vmatprep.subr.bf16.mxu1 %v8665_v0  ;;  %v5912_v62 = vld [vmem:[%s8644_s3 + $0x30] sm:$0xff]  }
  0xf8   : > { %1638 = vmatmul.mubr.bf16.gmra.mrb[20].mxu0 %v817_v20  ;;  %v702_v20 = vsel %vm692_vm1, %v681_v16, %v682_v17  ;;  %2177 = vmatpush1.bf16.msra.mxu1 %v5907_v39  ;;  %v6139_v39 = vld [vmem:[%s6380_s18 + $0x88] sm:$0xff] }
  0xf9   : > { %1647 = vmatprep.mubr.bf16.mxu0 %v823_v22  ;;  %v837_v22 = vpack.c.bf16 %v639_v23, %v640_v24  ;;  %v843_v4 = vpack.c.bf16 %v702_v20, %v703_v3  ;;  %v694_v23 = vsel %vm692_vm1, %v689_v2, %v690_v13  ;;  %v695_v24 = vsel %vm692_vm1, %v688_v55, %v689_v2  ;;  %v6132_v2 = vld [vmem:[%s6380_s18 + $0x50] sm:$0xff] }
  0xfa   : > { %v863_v3 = vpack.c.bf16 %v694_v23, %v695_v24  ;;  %2178 = vmatprep.subr.bf16.mxu1 %v8665_v0  ;;  %v735_v13 = vrot.slane %v6132_v2, 4  ;;  %v6133_v24 = vld [vmem:[%s6380_s18 + $0x58] sm:$0xff]  ;;  %v5914_v2 = vld [vmem:[%s8644_s3 + $0x40] sm:$0xff]  }
  0xfc   : > { %2179 = vmatpush1.bf16.msra.mxu1 %v5908_v52 }
  0xfd   : > { %2180 = vmatprep.subr.bf16.mxu1 %v8665_v0 }
 0x100   : > { %1648 = vmatmul.mubr.bf16.gmra.mrb[24].mxu0 %v822_v40  ;;  %v618_v40 = vrot.slane %v6686_v37, 2 }
 0x101   : > { %1657 = vmatprep.mubr.bf16.mxu0 %v828_v36  ;;  %v619_v36 = vrot.slane %v6689_v38, 2 }
 0x102   : > { %v636_v43 = vsel %vm627_vm2, %v617_v27, %v618_v40 }
 0x103   : > { %v635_v42 = vsel %vm627_vm2, %v618_v40, %v619_v36 }
 0x104   : > { %v847_v53 = vpack.c.bf16 %v635_v42, %v636_v43  ;;  %v787_v42 = vsel %vm757_vm3, %v726_v15, %v727_v34  ;;  %v728_v43 = vrot.slane %v6785_v54, 4  ;;  %v5909_v54 = vld [vmem:[%s8644_s3 + $0x18] sm:$0xff]  }
 0x105   : > { %2181 = vmatpush1.bf16.msra.mxu1 %v5909_v54  ;;  %v6141_v54 = vld [vmem:[%s6380_s18 + $0x98] sm:$0xff] }
 0x106   : > { %2182 = vmatprep.subr.bf16.mxu1 %v8665_v0 }
 0x108   : > { %1658 = vmatmul.mubr.bf16.gmra.mrb[28].mxu0 %v827_v7  ;;  %v620_v7 = vrot.slane %v6700_v47, 2 }
 0x109   : > { %1667 = vmatprep.mubr.bf16.mxu0 %v833_v46  ;;  %v621_v46 = vrot.slane %v6703_v48, 2  ;;  %2183 = vmatpush1.bf16.msra.mxu1 %v5910_v8 }
 0x10a   : > { %v634_v57 = vsel %vm627_vm2, %v619_v36, %v620_v7  ;;  %v725_v36 = vrot.slane %v6760_v33, 4  ;;  %2184 = vmatprep.subr.bf16.mxu1 %v8665_v0 }
 0x10b   : > { %v633_v61 = vsel %vm627_vm2, %v620_v7, %v621_v46  ;;  %v730_v7 = vrot.slane %v6809_v19, 4  ;;  %v5911_v19 = vld [vmem:[%s8644_s3 + $0x28] sm:$0xff]  }
 0x10c   : > { %v852_v63 = vpack.c.bf16 %v633_v61, %v634_v57  ;;  %v732_v57 = vrot.slane %v6858_v9, 4  ;;  %v5913_v9 = vld [vmem:[%s8644_s3 + $0x38] sm:$0xff]  }
 0x10d   : > { %v784_v61 = vsel %vm757_vm3, %v729_v44, %v730_v7  ;;  %2185 = vmatpush1.bf16.msra.mxu1 %v5911_v19  ;;  %v6143_v19 = vld [vmem:[%s6380_s18 + $0xa8] sm:$0xff] }
 0x10e   : > { %2186 = vmatprep.subr.bf16.mxu1 %v8665_v0 }
 0x110   : > { %1668 = vmatmul.mubr.bf16.gmra.mrb[32].mxu0 %v832_v1  ;;  %v622_v1 = vrot.slane %v6714_v59, 2 }
 0x111   : > { %1677 = vmatprep.mubr.bf16.mxu0 %v838_v50  ;;  %v623_v50 = vrot.slane %v6717_v60, 2  ;;  %2187 = vmatpush1.bf16.msra.mxu1 %v5912_v62 }
 0x112   : > { %v632_v17 = vsel %vm627_vm2, %v621_v46, %v622_v1  ;;  %v731_v46 = vrot.slane %v6813_v21, 4  ;;  %2188 = vmatprep.subr.bf16.mxu1 %v8665_v0 }
 0x113   : > { %v631_v16 = vsel %vm627_vm2, %v622_v1, %v623_v50  ;;  %v6131_v1 = vld [vmem:[%s6380_s18 + $0x48] sm:$0xff] }
 0x114   : > { %v857_v20 = vpack.c.bf16 %v631_v16, %v632_v17  ;;  %v783_v55 = vsel %vm757_vm3, %v730_v7, %v731_v46  ;;  %v6142_v7 = vld [vmem:[%s6380_s18 + $0xa0] sm:$0xff] }
 0x115   : > { %v804_v21 = vpack.c.bf16 %v783_v55, %v784_v61  ;;  %2189 = vmatpush1.bf16.msra.mxu1 %v5913_v9  ;;  %v748_v9 = vrot.slane %v6686_v37, 4  ;;  %v750_v37 = vrot.slane %v6700_v47, 4 }
 0x116   : > { %2190 = vmatprep.subr.bf16.mxu1 %v8665_v0 }
 0x118   : > { %1678 = vmatmul.mubr.bf16.gmra.mrb[36].mxu0 %v837_v22  ;;  %v624_v22 = vrot.slane %v6728_v10, 2 }
 0x119   : > { %1687 = vmatprep.mubr.bf16.mxu0 %v843_v4  ;;  %v625_v4 = vrot.slane %v6731_v11, 2  ;;  %2191 = vmatpush1.bf16.msra.mxu1 %v5914_v2 }
 0x11a   : > { %v630_v28 = vsel %vm627_vm2, %v623_v50, %v624_v22  ;;  %v734_v50 = vrot.slane %v6131_v1, 4  ;;  %2192 = vmatprep.subr.bf16.mxu1 %v8665_v0 }
 0x11b   : > { %v629_v27 = vsel %vm627_vm2, %v624_v22, %v625_v4 }
 0x11c   : > { %v862_v31 = vpack.c.bf16 %v629_v27, %v630_v28  ;;  %v779_v16 = vsel %vm757_vm3, %v734_v50, %v735_v13  ;;  %v780_v17 = vsel %vm757_vm3, %v733_v58, %v734_v50  ;;  %v6135_v28 = vld [vmem:[%s6380_s18 + $0x68] sm:$0xff] }
 0x11d   : > { %v814_v23 = vpack.c.bf16 %v779_v16, %v780_v17  ;;  %v738_v29 = vrot.slane %v6135_v28, 4  ;;  %v5915_v16 = vld [vmem:[%s8644_s3 + $0x48] sm:$0xff]   ;;  %v5916_v17 = vld [vmem:[%s8644_s3 + $0x50] ss:$0 sps:$4 sm:$0xff]   ;;  %v755_v28 = vrot.slane %v6731_v11, 4 }
 0x11e   : > { %2193 = vmatpush1.bf16.msra.mxu1 %v5915_v16 }
 0x11f   : > { %2194 = vmatprep.subr.bf16.mxu1 %v8665_v0 }
 0x120   : > { %1688 = vmatmul.mubr.bf16.gmra.mrb[40].mxu0 %v842_v35  ;;  %v628_v35 = vsel %vm627_vm2, %v625_v4, %v626_v5 }
 0x121   : > { %1697 = vmatprep.mubr.bf16.mxu0 %v848_v6  ;;  %v659_v6 = vsel %vm627_vm2, %v626_v5, %v595_v51  ;;  %v788_v51 = vsel %vm757_vm3, %v725_v36, %v726_v15  ;;  %v6138_v15 = vld [vmem:[%s6380_s18 + $0x80] sm:$0xff] }
 0x122   : > { %v867_v40 = vpack.c.bf16 %v659_v6, %v628_v35  ;;  %v794_v41 = vpack.c.bf16 %v787_v42, %v788_v51  ;;  %v6137_v6 = vld [vmem:[%s6380_s18 + $0x78] sm:$0xff] }
 0x128   : > { %1698 = vmatmul.mubr.bf16.gmra.mrb[44].mxu0 %v847_v53  ;;  %v785_v53 = vsel %vm757_vm3, %v728_v43, %v729_v44 }
 0x129   : > { %1707 = vmatprep.mubr.bf16.mxu0 %v853_v45  ;;  %v786_v45 = vsel %vm757_vm3, %v727_v34, %v728_v43  ;;  %v741_v34 = vrot.slane %v6138_v15, 4  ;;  %v6140_v43 = vld [vmem:[%s6380_s18 + $0x90] sm:$0xff] }
 0x12a   : > { %v799_v56 = vpack.c.bf16 %v785_v53, %v786_v45  ;;  %v743_v44 = vrot.slane %v6140_v43, 4 }
 0x130   : > { %1708 = vmatmul.mubr.bf16.gmra.mrb[48].mxu0 %v852_v63  ;;  %v781_v63 = vsel %vm757_vm3, %v732_v57, %v733_v58 }
 0x131   : > { %1717 = vmatprep.mubr.bf16.mxu0 %v858_v49  ;;  %v782_v49 = vsel %vm757_vm3, %v731_v46, %v732_v57  ;;  %v745_v46 = vrot.slane %v6142_v7, 4  ;;  %v6144_v57 = vld [vmem:[%s6380_s18 + $0xb0] sm:$0xff] }
 0x132   : > { %v809_v14 = vpack.c.bf16 %v781_v63, %v782_v49  ;;  %v747_v58 = vrot.slane %v6144_v57, 4 }
 0x134   : > { %v766_v50 = vsel %vm757_vm3, %v747_v58, %v748_v9 }
 0x138   : > { %1718 = vmatmul.mubr.bf16.gmra.mrb[52].mxu0 %v857_v20  ;;  %v736_v20 = vrot.slane %v6133_v24, 4 }
 0x139   : > { %1727 = vmatprep.mubr.bf16.mxu0 %v863_v3  ;;  %v6134_v3 = vld [vmem:[%s6380_s18 + $0x60] sm:$0xff] }
 0x13a   : > { %v737_v22 = vrot.slane %v6134_v3, 4  ;;  %v778_v26 = vsel %vm757_vm3, %v735_v13, %v736_v20  ;;  %v753_v3 = vrot.slane %v6717_v60, 4 }
 0x13c   : > { %v777_v4 = vsel %vm757_vm3, %v736_v20, %v737_v22  ;;  %v776_v5 = vsel %vm757_vm3, %v737_v22, %v738_v29  ;;  %v752_v20 = vrot.slane %v6714_v59, 4 }
 0x13d   : > { %v819_v27 = vpack.c.bf16 %v777_v4, %v778_v26 }
 0x13e   : > { %v761_v22 = vsel %vm757_vm3, %v752_v20, %v753_v3 }
 0x140   : > { %1728 = vmatmul.mubr.bf16.gmra.mrb[56].mxu0 %v862_v31  ;;  %v739_v31 = vrot.slane %v6136_v30, 4  ;;  %v756_v30 = vrot.slane %v6746_v25, 4  ;;  %v8662_v25 = vsub.s32 1, %v6375_v12 }
 0x141   : > { %1737 = vmatprep.mubr.bf16.mxu0 %v868_v32 }
 0x142   : > { %v775_v32 = vsel %vm757_vm3, %v738_v29, %v739_v31  ;;  %v789_v11 = vsel %vm757_vm3, %v756_v30, %v725_v36 }
 0x143   : > { %v824_v35 = vpack.c.bf16 %v775_v32, %v776_v5  ;;  %v8663_v32 = vsub.s32 0, %v6375_v12  ;;  %v950_v5 = vld [vmem:[%s8643_s2] sm:$0x3] }
 0x144   : > { %v7210_v33 = vrot.slane %v950_v5, %v8662_v25 }
 0x148   : > { %1738 = vmatmul.mubr.bf16.gmra.mrb[60].mxu0 %v867_v40  ;;  %v740_v40 = vrot.slane %v6137_v6, 4 }
 0x149   : > { %1780 = vmatprep.mubr.bf16.mxu0 %v8665_v0 }
 0x14a   : > { %v773_v18 = vsel %vm757_vm3, %v740_v40, %v741_v34  ;;  %v774_v42 = vsel %vm757_vm3, %v739_v31, %v740_v40 }
 0x14b   : > { %v829_v51 = vpack.c.bf16 %v773_v18, %v774_v42 }
 0x150   : > { %1781 = vmatmul.mubr.bf16.vlgmr.msra.gmra.mrb[0].mxu0 %v794_v41  ;;  %v742_v41 = vrot.slane %v6139_v39, 4 }
 0x151   : > { %1790 = vmatprep.mubr.bf16.mxu0 %v8665_v0 }
 0x152   : > { %v771_v52 = vsel %vm757_vm3, %v742_v41, %v743_v44  ;;  %v772_v53 = vsel %vm757_vm3, %v741_v34, %v742_v41 }
 0x153   : > { %v834_v45 = vpack.c.bf16 %v771_v52, %v772_v53 }
 0x158   : > { %1791 = vmatmul.mubr.bf16.gmra.mrb[4].mxu0 %v799_v56  ;;  %v744_v56 = vrot.slane %v6141_v54, 4  ;;  %v5917_v54 = vld [vmem:[%s8645_s4] sm:$0xff]  }
 0x159   : > { %1800 = vmatprep.mubr.bf16.mxu0 %v8665_v0 }
 0x15a   : > { %v769_v8 = vsel %vm757_vm3, %v744_v56, %v745_v46  ;;  %v770_v55 = vsel %vm757_vm3, %v743_v44, %v744_v56 }
 0x15b   : > { %v839_v61 = vpack.c.bf16 %v769_v8, %v770_v55 }
 0x160   : > { %1801 = vmatmul.mubr.bf16.gmra.mrb[8].mxu0 %v804_v21  ;;  %v746_v21 = vrot.slane %v6143_v19, 4 }
 0x161   : > { %1810 = vmatprep.mubr.bf16.mxu0 %v8665_v0 }
 0x162   : > { %v767_v62 = vsel %vm757_vm3, %v746_v21, %v747_v58  ;;  %v768_v63 = vsel %vm757_vm3, %v745_v46, %v746_v21  ;;  %v5918_v21 = vld [vmem:[%s8645_s4 + $0x8] sm:$0xff]  }
 0x163   : > { %v844_v49 = vpack.c.bf16 %v767_v62, %v768_v63 }
 0x168   : > { %1811 = vmatmul.mubr.bf16.gmra.mrb[12].mxu0 %v809_v14  ;;  %v749_v14 = vrot.slane %v6689_v38, 4  ;;  %v751_v38 = vrot.slane %v6703_v48, 4  ;;  %v2172_v48 = vsel %vm2170_vm4, %v5916_v17, 0 }
 0x169   : > { %1820 = vmatprep.mubr.bf16.mxu0 %v8665_v0  ;;  %2195 = vmatpush1.bf16.msra.mxu1 %v2172_v48 }
 0x16a   : > { %v765_v1 = vsel %vm757_vm3, %v748_v9, %v749_v14  ;;  %v764_v47 = vsel %vm757_vm3, %v749_v14, %v750_v37  ;;  %2422 = vmatprep.subr.bf16.mxu1 %v8665_v0  ;;  %v762_v4 = vsel %vm757_vm3, %v751_v38, %v752_v20 }
 0x16b   : > { %v849_v13 = vpack.c.bf16 %v765_v1, %v766_v50  ;;  %v859_v26 = vpack.c.bf16 %v761_v22, %v762_v4  ;;  %v5919_v1 = vld [vmem:[%s8645_s4 + $0x10] sm:$0xff]  }
 0x170   : > { %1821 = vmatmul.mubr.bf16.gmra.mrb[16].mxu0 %v814_v23  ;;  %v763_v23 = vsel %vm757_vm3, %v750_v37, %v751_v38 }
 0x171   : > { %1830 = vmatprep.mubr.bf16.mxu0 %v8665_v0  ;;  %v854_v24 = vpack.c.bf16 %v763_v23, %v764_v47  ;;  %v5920_v23 = vld [vmem:[%s8645_s4 + $0x18] sm:$0xff]  }
 0x178   : > { %1831 = vmatmul.mubr.bf16.gmra.mrb[20].mxu0 %v819_v27  ;;  %v754_v27 = vrot.slane %v6728_v10, 4  ;;  %v758_v10 = vsel %vm757_vm3, %v755_v28, %v756_v30 }
 0x179   : > { %1840 = vmatprep.mubr.bf16.mxu0 %v8665_v0  ;;  %v869_v31 = vpack.c.bf16 %v789_v11, %v758_v10  ;;  %v5922_v11 = vld [vmem:[%s8645_s4 + $0x28] sm:$0xff]  }
 0x17a   : > { %v759_v59 = vsel %vm757_vm3, %v754_v27, %v755_v28  ;;  %v760_v60 = vsel %vm757_vm3, %v753_v3, %v754_v27 }
 0x17b   : > { %v864_v29 = vpack.c.bf16 %v759_v59, %v760_v60 }
 0x180   : > { %1841 = vmatmul.mubr.bf16.gmra.mrb[24].mxu0 %v824_v35  ;;  %v7206_v35 = vrot.slane %v950_v5, %v8663_v32 }
 0x181   : > { %1850 = vmatprep.mubr.bf16.mxu0 %v8665_v0 }
 0x188   : > { %1851 = vmatmul.mubr.bf16.gmra.mrb[28].mxu0 %v829_v51 }
 0x189   : > { %1860 = vmatprep.mubr.bf16.mxu0 %v8665_v0 }
 0x190   : > { %1861 = vmatmul.mubr.bf16.gmra.mrb[32].mxu0 %v834_v45 }
 0x191   : > { %1870 = vmatprep.mubr.bf16.mxu0 %v8665_v0 }
 0x198   : > { %1871 = vmatmul.mubr.bf16.gmra.mrb[36].mxu0 %v839_v61 }
 0x199   : > { %1880 = vmatprep.mubr.bf16.mxu0 %v8665_v0 }
 0x1a0   : > { %1881 = vmatmul.mubr.bf16.gmra.mrb[40].mxu0 %v844_v49 }
 0x1a1   : > { %1890 = vmatprep.mubr.bf16.mxu0 %v8665_v0 }
 0x1a8   : > { %1891 = vmatmul.mubr.bf16.gmra.mrb[44].mxu0 %v849_v13 }
 0x1a9   : > { %1900 = vmatprep.mubr.bf16.mxu0 %v8665_v0 }
 0x1b0   : > { %1901 = vmatmul.mubr.bf16.gmra.mrb[48].mxu0 %v854_v24 }
 0x1b1   : > { %1910 = vmatprep.mubr.bf16.mxu0 %v8665_v0 }
 0x1b8   : > { %1911 = vmatmul.mubr.bf16.gmra.mrb[52].mxu0 %v859_v26  ;;  %v5921_v26 = vld [vmem:[%s8645_s4 + $0x20] sm:$0xff]  }
 0x1b9   : > { %1920 = vmatprep.mubr.bf16.mxu0 %v8665_v0 }
 0x1c0   : > { %1921 = vmatmul.mubr.bf16.gmra.mrb[56].mxu0 %v864_v29 }
 0x1c1   : > { %1930 = vmatprep.mubr.bf16.mxu0 %v8665_v0 }
 0x1c8   : > { %1931 = vmatmul.mubr.bf16.gmra.mrb[60].mxu0 %v869_v31 }
 0x223   : > { %v1782_v6 = vpop.f32.mrb[0].mxu0 }
 0x224   : > { %v5456_v36 = vadd.f32 %v1782_v6, %v7206_v35  ;;  %v1784_v40 = vpop.f32.mrb[1].mxu0 }
 0x225   : > { %v5457_v15 = vadd.f32 %v1784_v40, %v7210_v33  ;;  %v1786_v34 = vpop.f32.mrb[2].mxu0 }
 0x226   : > { %v5458_v18 = vadd.f32 %v1786_v34, %v7206_v35  ;;  %v1788_v42 = vpop.f32.mrb[3].mxu0  ;;  %v1941_v39 = vmax.f32 %v5456_v36, 0.0 }
 0x227   : > { %v5459_v51 = vadd.f32 %v1788_v42, %v7210_v33  ;;  %v1942_v43 = vmax.f32 %v5457_v15, 0.0 }
 0x228   : > { %v1943_v41 = vmax.f32 %v5458_v18, 0.0  ;;  %v5923_v18 = vld [vmem:[%s8645_s4 + $0x30] sm:$0xff]  }
 0x229   : > { %v1944_v44 = vmax.f32 %v5459_v51, 0.0 }
 0x22a   : > { %v7216_v52 = vpack.c.bf16 %v1943_v41, %v1941_v39 }
 0x22b   : > { %v1792_v53 = vpop.f32.mrb[4].mxu0  ;;  %v7218_v45 = vpack.c.bf16 %v1944_v44, %v1942_v43 }
 0x22c   : > { %v5460_v56 = vadd.f32 %v1792_v53, %v7206_v35  ;;  %v1794_v7 = vpop.f32.mrb[5].mxu0 }
 0x22d   : > { %v5461_v46 = vadd.f32 %v1794_v7, %v7210_v33  ;;  %v1796_v8 = vpop.f32.mrb[6].mxu0  ;;  %5109 = vmatprep.mubr.msk.bf16.mxu1 %vm2121_vm5, %v7218_v45 }
 0x22e   : > { %v5462_v55 = vadd.f32 %v1796_v8, %v7206_v35  ;;  %v1798_v61 = vpop.f32.mrb[7].mxu0  ;;  %2207 = vmatmul.mubr.bf16.vlgmr.msra.gmra.mrb[0].mxu1 %v7216_v52  ;;  %v1945_v57 = vmax.f32 %v5460_v56, 0.0 }
 0x22f   : > { %v5463_v19 = vadd.f32 %v1798_v61, %v7210_v33  ;;  %2423 = vmatpush1.bf16.msra.mxu1 %v5917_v54  ;;  %v1946_v62 = vmax.f32 %v5461_v46, 0.0  ;;  %v5924_v54 = vld [vmem:[%s8645_s4 + $0x38] sm:$0xff]  }
 0x230   : > { %v1947_v58 = vmax.f32 %v5462_v55, 0.0  ;;  %2424 = vmatprep.subr.bf16.mxu1 %v8665_v0 }
 0x231   : > { %v1948_v63 = vmax.f32 %v5463_v19, 0.0 }
 0x232   : > { %v7234_v49 = vpack.c.bf16 %v1947_v58, %v1945_v57 }
 0x233   : > { %v7236_v9 = vpack.c.bf16 %v1948_v63, %v1946_v62  ;;  %v1802_v14 = vpop.f32.mrb[8].mxu0  ;;  %2425 = vmatpush1.bf16.msra.mxu1 %v5918_v21  ;;  %v5925_v21 = vld [vmem:[%s8645_s4 + $0x40] sm:$0xff]  }
 0x234   : > { %v5464_v50 = vadd.f32 %v1802_v14, %v7206_v35  ;;  %v1804_v2 = vpop.f32.mrb[9].mxu0  ;;  %2426 = vmatprep.subr.bf16.mxu1 %v8665_v0 }
 0x235   : > { %v5465_v13 = vadd.f32 %v1804_v2, %v7210_v33  ;;  %v1806_v37 = vpop.f32.mrb[10].mxu0  ;;  %5110 = vmatprep.mubr.msk.bf16.mxu1 %vm2121_vm5, %v7236_v9  ;;  %v5926_v2 = vld [vmem:[%s8645_s4 + $0x48] sm:$0xff]  }
 0x236   : > { %v5466_v38 = vadd.f32 %v1806_v37, %v7206_v35  ;;  %v1808_v16 = vpop.f32.mrb[11].mxu0  ;;  %2215 = vmatmul.mubr.bf16.gmra.mrb[4].mxu1 %v7234_v49  ;;  %v1949_v47 = vmax.f32 %v5464_v50, 0.0 }
 0x237   : > { %v5467_v17 = vadd.f32 %v1808_v16, %v7210_v33  ;;  %2427 = vmatpush1.bf16.msra.mxu1 %v5919_v1  ;;  %v1950_v24 = vmax.f32 %v5465_v13, 0.0 }
 0x238   : > { %v1951_v48 = vmax.f32 %v5466_v38, 0.0  ;;  %2428 = vmatprep.subr.bf16.mxu1 %v8665_v0  ;;  %v5927_v38 = vld [vmem:[%s8645_s4 + $0x50] ss:$0 sps:$4 sm:$0xff]  }
 0x239   : > { %v1952_v20 = vmax.f32 %v5467_v17, 0.0 }
 0x23a   : > { %v7253_v3 = vpack.c.bf16 %v1951_v48, %v1949_v47 }
 0x23b   : > { %v7255_v22 = vpack.c.bf16 %v1952_v20, %v1950_v24  ;;  %v1812_v4 = vpop.f32.mrb[12].mxu0  ;;  %2429 = vmatpush1.bf16.msra.mxu1 %v5920_v23 }
 0x23c   : > { %v5468_v27 = vadd.f32 %v1812_v4, %v7206_v35  ;;  %v1814_v28 = vpop.f32.mrb[13].mxu0  ;;  %2430 = vmatprep.subr.bf16.mxu1 %v8665_v0  ;;  %v2420_v4 = vsel %vm2170_vm4, %v5927_v38, 0 }
 0x23d   : > { %v5469_v59 = vadd.f32 %v1814_v28, %v7210_v33  ;;  %v1816_v60 = vpop.f32.mrb[14].mxu0  ;;  %5111 = vmatprep.mubr.msk.bf16.mxu1 %vm2121_vm5, %v7255_v22 }
 0x23e   : > { %v5470_v29 = vadd.f32 %v1816_v60, %v7206_v35  ;;  %v1818_v30 = vpop.f32.mrb[15].mxu0  ;;  %2223 = vmatmul.mubr.bf16.gmra.mrb[8].mxu1 %v7253_v3  ;;  %v1953_v31 = vmax.f32 %v5468_v27, 0.0 }
 0x23f   : > { %v5471_v10 = vadd.f32 %v1818_v30, %v7210_v33  ;;  %2431 = vmatpush1.bf16.msra.mxu1 %v5921_v26  ;;  %v1954_v6 = vmax.f32 %v5469_v59, 0.0 }
 0x240   : > { %v1955_v5 = vmax.f32 %v5470_v29, 0.0  ;;  %2432 = vmatprep.subr.bf16.mxu1 %v8665_v0 }
 0x241   : > { %v1956_v36 = vmax.f32 %v5471_v10, 0.0 }
 0x242   : > { %v7272_v40 = vpack.c.bf16 %v1955_v5, %v1953_v31 }
 0x243   : > { %v7274_v15 = vpack.c.bf16 %v1956_v36, %v1954_v6  ;;  %v1822_v34 = vpop.f32.mrb[16].mxu0  ;;  %2433 = vmatpush1.bf16.msra.mxu1 %v5922_v11 }
 0x244   : > { %v5472_v42 = vadd.f32 %v1822_v34, %v7206_v35  ;;  %v1824_v51 = vpop.f32.mrb[17].mxu0  ;;  %2434 = vmatprep.subr.bf16.mxu1 %v8665_v0 }
 0x245   : > { %v5473_v39 = vadd.f32 %v1824_v51, %v7210_v33  ;;  %v1826_v41 = vpop.f32.mrb[18].mxu0  ;;  %5112 = vmatprep.mubr.msk.bf16.mxu1 %vm2121_vm5, %v7274_v15 }
 0x246   : > { %v5474_v43 = vadd.f32 %v1826_v41, %v7206_v35  ;;  %v1828_v44 = vpop.f32.mrb[19].mxu0  ;;  %2231 = vmatmul.mubr.bf16.gmra.mrb[12].mxu1 %v7272_v40  ;;  %v1957_v56 = vmax.f32 %v5472_v42, 0.0 }
 0x247   : > { %v5475_v53 = vadd.f32 %v1828_v44, %v7210_v33  ;;  %2435 = vmatpush1.bf16.msra.mxu1 %v5923_v18  ;;  %v1958_v46 = vmax.f32 %v5473_v39, 0.0 }
 0x248   : > { %v1959_v7 = vmax.f32 %v5474_v43, 0.0  ;;  %2436 = vmatprep.subr.bf16.mxu1 %v8665_v0 }
 0x249   : > { %v1960_v8 = vmax.f32 %v5475_v53, 0.0 }
 0x24a   : > { %v7291_v55 = vpack.c.bf16 %v1959_v7, %v1957_v56 }
 0x24b   : > { %v7293_v61 = vpack.c.bf16 %v1960_v8, %v1958_v46  ;;  %v1832_v19 = vpop.f32.mrb[20].mxu0  ;;  %2437 = vmatpush1.bf16.msra.mxu1 %v5924_v54 }
 0x24c   : > { %v5476_v57 = vadd.f32 %v1832_v19, %v7206_v35  ;;  %v1834_v58 = vpop.f32.mrb[21].mxu0  ;;  %2438 = vmatprep.subr.bf16.mxu1 %v8665_v0 }
 0x24d   : > { %v5477_v62 = vadd.f32 %v1834_v58, %v7210_v33  ;;  %v1836_v63 = vpop.f32.mrb[22].mxu0  ;;  %5113 = vmatprep.mubr.msk.bf16.mxu1 %vm2121_vm5, %v7293_v61 }
 0x24e   : > { %v5478_v14 = vadd.f32 %v1836_v63, %v7206_v35  ;;  %v1838_v1 = vpop.f32.mrb[23].mxu0  ;;  %2239 = vmatmul.mubr.bf16.gmra.mrb[16].mxu1 %v7291_v55  ;;  %v1961_v13 = vmax.f32 %v5476_v57, 0.0 }
 0x24f   : > { %v5479_v50 = vadd.f32 %v1838_v1, %v7210_v33  ;;  %2439 = vmatpush1.bf16.msra.mxu1 %v5925_v21  ;;  %v1962_v16 = vmax.f32 %v5477_v62, 0.0 }
 0x250   : > { %v1963_v37 = vmax.f32 %v5478_v14, 0.0  ;;  %2440 = vmatprep.subr.bf16.mxu1 %v8665_v0 }
 0x251   : > { %v1964_v17 = vmax.f32 %v5479_v50, 0.0 }
 0x252   : > { %v7313_v23 = vpack.c.bf16 %v1963_v37, %v1961_v13 }
 0x253   : > { %v7315_v47 = vpack.c.bf16 %v1964_v17, %v1962_v16  ;;  %v1842_v48 = vpop.f32.mrb[24].mxu0  ;;  %2441 = vmatpush1.bf16.msra.mxu1 %v5926_v2 }
 0x254   : > { %v5480_v24 = vadd.f32 %v1842_v48, %v7206_v35  ;;  %v1844_v20 = vpop.f32.mrb[25].mxu0  ;;  %2442 = vmatprep.subr.bf16.mxu1 %v8665_v0 }
 0x255   : > { %v5481_v26 = vadd.f32 %v1844_v20, %v7210_v33  ;;  %v1846_v27 = vpop.f32.mrb[26].mxu0  ;;  %5114 = vmatprep.mubr.msk.bf16.mxu1 %vm2121_vm5, %v7315_v47 }
 0x256   : > { %v5482_v28 = vadd.f32 %v1846_v27, %v7206_v35  ;;  %v1848_v59 = vpop.f32.mrb[27].mxu0  ;;  %2247 = vmatmul.mubr.bf16.gmra.mrb[20].mxu1 %v7313_v23  ;;  %v1965_v29 = vmax.f32 %v5480_v24, 0.0 }
 0x257   : > { %v5483_v60 = vadd.f32 %v1848_v59, %v7210_v33  ;;  %2443 = vmatpush1.bf16.msra.mxu1 %v2420_v4  ;;  %v1966_v10 = vmax.f32 %v5481_v26, 0.0 }
 0x258   : > { %v1967_v30 = vmax.f32 %v5482_v28, 0.0 }
 0x259   : > { %v1968_v11 = vmax.f32 %v5483_v60, 0.0 }
 0x25a   : > { %v7326_v31 = vpack.c.bf16 %v1967_v30, %v1965_v29 }
 0x25b   : > { %v7328_v5 = vpack.c.bf16 %v1968_v11, %v1966_v10  ;;  %v1852_v6 = vpop.f32.mrb[28].mxu0 }
 0x25c   : > { %v5484_v36 = vadd.f32 %v1852_v6, %v7206_v35  ;;  %v1854_v34 = vpop.f32.mrb[29].mxu0 }
 0x25d   : > { %v5485_v18 = vadd.f32 %v1854_v34, %v7210_v33  ;;  %v1856_v42 = vpop.f32.mrb[30].mxu0  ;;  %5115 = vmatprep.mubr.msk.bf16.mxu1 %vm2121_vm5, %v7328_v5 }
 0x25e   : > { %v5486_v51 = vadd.f32 %v1856_v42, %v7206_v35  ;;  %v1858_v39 = vpop.f32.mrb[31].mxu0  ;;  %2255 = vmatmul.mubr.bf16.gmra.mrb[24].mxu1 %v7326_v31  ;;  %v1969_v43 = vmax.f32 %v5484_v36, 0.0 }
 0x25f   : > { %v5487_v41 = vadd.f32 %v1858_v39, %v7210_v33  ;;  %v1970_v53 = vmax.f32 %v5485_v18, 0.0 }
 0x260   : > { %v1971_v44 = vmax.f32 %v5486_v51, 0.0 }
 0x261   : > { %v1972_v54 = vmax.f32 %v5487_v41, 0.0 }
 0x262   : > { %v7337_v56 = vpack.c.bf16 %v1971_v44, %v1969_v43 }
 0x263   : > { %v7339_v7 = vpack.c.bf16 %v1972_v54, %v1970_v53  ;;  %v1862_v46 = vpop.f32.mrb[32].mxu0 }
 0x264   : > { %v5488_v8 = vadd.f32 %v1862_v46, %v7206_v35  ;;  %v1864_v19 = vpop.f32.mrb[33].mxu0 }
 0x265   : > { %v5489_v21 = vadd.f32 %v1864_v19, %v7210_v33  ;;  %v1866_v57 = vpop.f32.mrb[34].mxu0  ;;  %5116 = vmatprep.mubr.msk.bf16.mxu1 %vm2121_vm5, %v7339_v7 }
 0x266   : > { %v5490_v58 = vadd.f32 %v1866_v57, %v7206_v35  ;;  %v1868_v62 = vpop.f32.mrb[35].mxu0  ;;  %2263 = vmatmul.mubr.bf16.gmra.mrb[28].mxu1 %v7337_v56  ;;  %v1973_v14 = vmax.f32 %v5488_v8, 0.0 }
 0x267   : > { %v5491_v63 = vadd.f32 %v1868_v62, %v7210_v33  ;;  %v1974_v50 = vmax.f32 %v5489_v21, 0.0 }
 0x268   : > { %v1975_v1 = vmax.f32 %v5490_v58, 0.0 }
 0x269   : > { %v1976_v2 = vmax.f32 %v5491_v63, 0.0 }
 0x26a   : > { %v7348_v13 = vpack.c.bf16 %v1975_v1, %v1973_v14 }
 0x26b   : > { %v7350_v37 = vpack.c.bf16 %v1976_v2, %v1974_v50  ;;  %v1872_v38 = vpop.f32.mrb[36].mxu0 }
 0x26c   : > { %v5492_v16 = vadd.f32 %v1872_v38, %v7206_v35  ;;  %v1874_v17 = vpop.f32.mrb[37].mxu0 }
 0x26d   : > { %v5493_v48 = vadd.f32 %v1874_v17, %v7210_v33  ;;  %v1876_v24 = vpop.f32.mrb[38].mxu0  ;;  %5117 = vmatprep.mubr.msk.bf16.mxu1 %vm2121_vm5, %v7350_v37 }
 0x26e   : > { %v5494_v20 = vadd.f32 %v1876_v24, %v7206_v35  ;;  %v1878_v4 = vpop.f32.mrb[39].mxu0  ;;  %2271 = vmatmul.mubr.bf16.gmra.mrb[32].mxu1 %v7348_v13  ;;  %v1977_v27 = vmax.f32 %v5492_v16, 0.0 }
 0x26f   : > { %v5495_v26 = vadd.f32 %v1878_v4, %v7210_v33  ;;  %v1978_v59 = vmax.f32 %v5493_v48, 0.0 }
 0x270   : > { %v1979_v28 = vmax.f32 %v5494_v20, 0.0 }
 0x271   : > { %v1980_v60 = vmax.f32 %v5495_v26, 0.0 }
 0x272   : > { %v7359_v29 = vpack.c.bf16 %v1979_v28, %v1977_v27 }
 0x273   : > { %v7361_v30 = vpack.c.bf16 %v1980_v60, %v1978_v59  ;;  %v1882_v10 = vpop.f32.mrb[40].mxu0 }
 0x274   : > { %v5496_v11 = vadd.f32 %v1882_v10, %v7206_v35  ;;  %v1884_v6 = vpop.f32.mrb[41].mxu0 }
 0x275   : > { %v5497_v36 = vadd.f32 %v1884_v6, %v7210_v33  ;;  %v1886_v34 = vpop.f32.mrb[42].mxu0  ;;  %5118 = vmatprep.mubr.msk.bf16.mxu1 %vm2121_vm5, %v7361_v30 }
 0x276   : > { %v5498_v18 = vadd.f32 %v1886_v34, %v7206_v35  ;;  %v1888_v42 = vpop.f32.mrb[43].mxu0  ;;  %2279 = vmatmul.mubr.bf16.gmra.mrb[36].mxu1 %v7359_v29  ;;  %v1981_v39 = vmax.f32 %v5496_v11, 0.0 }
 0x277   : > { %v5499_v51 = vadd.f32 %v1888_v42, %v7210_v33  ;;  %v1982_v43 = vmax.f32 %v5497_v36, 0.0 }
 0x278   : > { %v1983_v41 = vmax.f32 %v5498_v18, 0.0 }
 0x279   : > { %v1984_v44 = vmax.f32 %v5499_v51, 0.0 }
 0x27a   : > { %v7370_v53 = vpack.c.bf16 %v1983_v41, %v1981_v39 }
 0x27b   : > { %v7372_v54 = vpack.c.bf16 %v1984_v44, %v1982_v43  ;;  %v1892_v46 = vpop.f32.mrb[44].mxu0 }
 0x27c   : > { %v5500_v8 = vadd.f32 %v1892_v46, %v7206_v35  ;;  %v1894_v19 = vpop.f32.mrb[45].mxu0 }
 0x27d   : > { %v5501_v21 = vadd.f32 %v1894_v19, %v7210_v33  ;;  %v1896_v57 = vpop.f32.mrb[46].mxu0  ;;  %5119 = vmatprep.mubr.msk.bf16.mxu1 %vm2121_vm5, %v7372_v54 }
 0x27e   : > { %v5502_v58 = vadd.f32 %v1896_v57, %v7206_v35  ;;  %v1898_v62 = vpop.f32.mrb[47].mxu0  ;;  %2287 = vmatmul.mubr.bf16.gmra.mrb[40].mxu1 %v7370_v53  ;;  %v1985_v14 = vmax.f32 %v5500_v8, 0.0 }
 0x27f   : > { %v5503_v63 = vadd.f32 %v1898_v62, %v7210_v33  ;;  %v1986_v50 = vmax.f32 %v5501_v21, 0.0 }
 0x280   : > { %v1987_v1 = vmax.f32 %v5502_v58, 0.0 }
 0x281   : > { %v1988_v2 = vmax.f32 %v5503_v63, 0.0 }
 0x282   : > { %v7381_v38 = vpack.c.bf16 %v1987_v1, %v1985_v14 }
 0x283   : > { %v7383_v16 = vpack.c.bf16 %v1988_v2, %v1986_v50  ;;  %v1902_v17 = vpop.f32.mrb[48].mxu0 }
 0x284   : > { %v5504_v48 = vadd.f32 %v1902_v17, %v7206_v35  ;;  %v1904_v24 = vpop.f32.mrb[49].mxu0 }
 0x285   : > { %v5505_v20 = vadd.f32 %v1904_v24, %v7210_v33  ;;  %v1906_v4 = vpop.f32.mrb[50].mxu0  ;;  %5120 = vmatprep.mubr.msk.bf16.mxu1 %vm2121_vm5, %v7383_v16 }
 0x286   : > { %v5506_v26 = vadd.f32 %v1906_v4, %v7206_v35  ;;  %v1908_v27 = vpop.f32.mrb[51].mxu0  ;;  %2295 = vmatmul.mubr.bf16.gmra.mrb[44].mxu1 %v7381_v38  ;;  %v1989_v59 = vmax.f32 %v5504_v48, 0.0 }
 0x287   : > { %v5507_v28 = vadd.f32 %v1908_v27, %v7210_v33  ;;  %v1990_v10 = vmax.f32 %v5505_v20, 0.0 }
 0x288   : > { %v1991_v60 = vmax.f32 %v5506_v26, 0.0 }
 0x289   : > { %v1992_v11 = vmax.f32 %v5507_v28, 0.0 }
 0x28a   : > { %v7392_v6 = vpack.c.bf16 %v1991_v60, %v1989_v59 }
 0x28b   : > { %v7394_v36 = vpack.c.bf16 %v1992_v11, %v1990_v10  ;;  %v1912_v34 = vpop.f32.mrb[52].mxu0 }
 0x28c   : > { %v5508_v18 = vadd.f32 %v1912_v34, %v7206_v35  ;;  %v1914_v42 = vpop.f32.mrb[53].mxu0 }
 0x28d   : > { %v5509_v51 = vadd.f32 %v1914_v42, %v7210_v33  ;;  %v1916_v39 = vpop.f32.mrb[54].mxu0  ;;  %5121 = vmatprep.mubr.msk.bf16.mxu1 %vm2121_vm5, %v7394_v36 }
 0x28e   : > { %v5510_v41 = vadd.f32 %v1916_v39, %v7206_v35  ;;  %v1918_v43 = vpop.f32.mrb[55].mxu0  ;;  %2303 = vmatmul.mubr.bf16.gmra.mrb[48].mxu1 %v7392_v6  ;;  %v1993_v46 = vmax.f32 %v5508_v18, 0.0 }
 0x28f   : > { %v5511_v44 = vadd.f32 %v1918_v43, %v7210_v33  ;;  %v1994_v19 = vmax.f32 %v5509_v51, 0.0 }
 0x290   : > { %v1995_v8 = vmax.f32 %v5510_v41, 0.0 }
 0x291   : > { %v1996_v21 = vmax.f32 %v5511_v44, 0.0 }
 0x292   : > { %v7403_v57 = vpack.c.bf16 %v1995_v8, %v1993_v46 }
 0x293   : > { %v7405_v58 = vpack.c.bf16 %v1996_v21, %v1994_v19  ;;  %v1922_v62 = vpop.f32.mrb[56].mxu0 }
 0x294   : > { %v5512_v63 = vadd.f32 %v1922_v62, %v7206_v35  ;;  %v1924_v14 = vpop.f32.mrb[57].mxu0  ;;  %v5958_v62 = vld [vmem:[%s8646_s5 + $0xa0] ss:$8 sps:$4 sm:$0xff]  }
 0x295   : > { %v5513_v1 = vadd.f32 %v1924_v14, %v7210_v33  ;;  %v1926_v50 = vpop.f32.mrb[58].mxu0  ;;  %5122 = vmatprep.mubr.msk.bf16.mxu1 %vm2121_vm5, %v7405_v58 }
 0x296   : > { %v5514_v2 = vadd.f32 %v1926_v50, %v7206_v35  ;;  %v1928_v17 = vpop.f32.mrb[59].mxu0  ;;  %2311 = vmatmul.mubr.bf16.gmra.mrb[52].mxu1 %v7403_v57  ;;  %v1997_v24 = vmax.f32 %v5512_v63, 0.0  ;;  %v5963_v63 = vld [vmem:[%s8646_s5 + $0xb4] ss:$8 sps:$4 sm:$0xff]  }
 0x297   : > { %v5515_v48 = vadd.f32 %v1928_v17, %v7210_v33  ;;  %v1998_v4 = vmax.f32 %v5513_v1, 0.0  ;;  %v5961_v1 = vld [vmem:[%s8646_s5 + $0xb0] ss:$8 sps:$4 sm:$0xff]   ;;  %v5964_v17 = vld [vmem:[%s8646_s5 + $0xc0] ss:$8 sps:$4 sm:$0xff]  }
 0x298   : > { %v1999_v20 = vmax.f32 %v5514_v2, 0.0 }
 0x299   : > { %v2000_v26 = vmax.f32 %v5515_v48, 0.0  ;;  %v5969_v48 = vld [vmem:[%s8646_s5 + $0xd4] ss:$8 sps:$4 sm:$0xff]  }
 0x29a   : > { %v7414_v27 = vpack.c.bf16 %v1999_v20, %v1997_v24  ;;  %v5967_v20 = vld [vmem:[%s8646_s5 + $0xd0] ss:$8 sps:$4 sm:$0xff]  }
 0x29b   : > { %v7416_v28 = vpack.c.bf16 %v2000_v26, %v1998_v4  ;;  %v1932_v59 = vpop.f32.mrb[60].mxu0 }
 0x29c   : > { %v5516_v60 = vadd.f32 %v1932_v59, %v7206_v35  ;;  %v1934_v10 = vpop.f32.mrb[61].mxu0  ;;  %v5970_v59 = vld [vmem:[%s8646_s5 + $0xe0] ss:$8 sps:$4 sm:$0xff]  }
 0x29d   : > { %v5517_v11 = vadd.f32 %v1934_v10, %v7210_v33  ;;  %v1936_v34 = vpop.f32.mrb[62].mxu0  ;;  %5123 = vmatprep.mubr.msk.bf16.mxu1 %vm2121_vm5, %v7416_v28 }
 0x29e   : > { %v5518_v18 = vadd.f32 %v1936_v34, %v7206_v35  ;;  %v1938_v42 = vpop.f32.mrb[63].mxu0  ;;  %2319 = vmatmul.mubr.bf16.gmra.mrb[56].mxu1 %v7414_v27  ;;  %v2001_v39 = vmax.f32 %v5516_v60, 0.0  ;;  %v5928_v35 = vld [vmem:[%s8646_s5] ss:$8 sps:$4 sm:$0xff]   ;;  %v5975_v60 = vld [vmem:[%s8646_s5 + $0xf4] ss:$8 sps:$4 sm:$0xff]  }
 0x29f   : > { %v5519_v51 = vadd.f32 %v1938_v42, %v7210_v33  ;;  %v2002_v43 = vmax.f32 %v5517_v11, 0.0  ;;  %v5930_v33 = vld [vmem:[%s8646_s5 + $0x4] ss:$8 sps:$4 sm:$0xff]   ;;  %v5973_v11 = vld [vmem:[%s8646_s5 + $0xf0] ss:$8 sps:$4 sm:$0xff]  }
 0x2a0   : > { %v2003_v41 = vmax.f32 %v5518_v18, 0.0  ;;  %3386 = vmatprep.subr.bf16.mxu1 %v5930_v33 }
 0x2a1   : > { %v2004_v44 = vmax.f32 %v5519_v51, 0.0 }
 0x2a2   : > { %v7425_v46 = vpack.c.bf16 %v2003_v41, %v2001_v39 }
 0x2a3   : > { %v7427_v8 = vpack.c.bf16 %v2004_v44, %v2002_v43 }
 0x2a5   : > { %5124 = vmatprep.mubr.msk.bf16.mxu1 %vm2121_vm5, %v7427_v8 }
 0x2a6   : > { %2327 = vmatmul.mubr.bf16.gmra.mrb[60].mxu1 %v7425_v46 }
 0x2a7   : > { %5136 = vmatprep.mubr.msk.bf16.mxu1 %vm2121_vm5, %v7218_v45  ;;  %v5933_v45 = vld [vmem:[%s8646_s5 + $0x14] ss:$8 sps:$4 sm:$0xff]  }
 0x2ae   : > { %2455 = vmatmul.mubr.bf16.vlgmr.msra.gmra.mrb[64].mxu1 %v7216_v52  ;;  %v5931_v52 = vld [vmem:[%s8646_s5 + $0x10] ss:$8 sps:$4 sm:$0xff]  }
 0x2af   : > { %5137 = vmatprep.mubr.msk.bf16.mxu1 %vm2121_vm5, %v7236_v9  ;;  %3387 = vmatpush1.bf16.msra.mxu1 %v5928_v35  ;;  %v5936_v9 = vld [vmem:[%s8646_s5 + $0x24] ss:$8 sps:$4 sm:$0xff]  }
 0x2b0   : > { %3388 = vmatprep.subr.bf16.mxu1 %v5933_v45 }
 0x2b3   : > { %3389 = vmatpush1.bf16.msra.mxu1 %v5931_v52 }
 0x2b4   : > { %3390 = vmatprep.subr.bf16.mxu1 %v5936_v9 }
 0x2b6   : > { %2463 = vmatmul.mubr.bf16.gmra.mrb[68].mxu1 %v7234_v49  ;;  %v5934_v49 = vld [vmem:[%s8646_s5 + $0x20] ss:$8 sps:$4 sm:$0xff]  }
 0x2b7   : > { %5138 = vmatprep.mubr.msk.bf16.mxu1 %vm2121_vm5, %v7255_v22  ;;  %3391 = vmatpush1.bf16.msra.mxu1 %v5934_v49  ;;  %v5939_v22 = vld [vmem:[%s8646_s5 + $0x34] ss:$8 sps:$4 sm:$0xff]  }
 0x2b8   : > { %3392 = vmatprep.subr.bf16.mxu1 %v5939_v22 }
 0x2be   : > { %2471 = vmatmul.mubr.bf16.gmra.mrb[72].mxu1 %v7253_v3  ;;  %v5937_v3 = vld [vmem:[%s8646_s5 + $0x30] ss:$8 sps:$4 sm:$0xff]  }
 0x2bf   : > { %5139 = vmatprep.mubr.msk.bf16.mxu1 %vm2121_vm5, %v7274_v15  ;;  %3393 = vmatpush1.bf16.msra.mxu1 %v5937_v3  ;;  %v5942_v15 = vld [vmem:[%s8646_s5 + $0x44] ss:$8 sps:$4 sm:$0xff]  }
 0x2c0   : > { %3394 = vmatprep.subr.bf16.mxu1 %v5942_v15 }
 0x2c6   : > { %2479 = vmatmul.mubr.bf16.gmra.mrb[76].mxu1 %v7272_v40  ;;  %v5940_v40 = vld [vmem:[%s8646_s5 + $0x40] ss:$8 sps:$4 sm:$0xff]  }
 0x2c7   : > { %5140 = vmatprep.mubr.msk.bf16.mxu1 %vm2121_vm5, %v7293_v61  ;;  %3395 = vmatpush1.bf16.msra.mxu1 %v5940_v40  ;;  %v5943_v61 = vld [vmem:[%s8646_s5 + $0x50] ss:$8 sps:$4 sm:$0xff]  }
 0x2ce   : > { %2487 = vmatmul.mubr.bf16.gmra.mrb[80].mxu1 %v7291_v55  ;;  %v5945_v55 = vld [vmem:[%s8646_s5 + $0x54] ss:$8 sps:$4 sm:$0xff]  }
 0x2cf   : > { %5141 = vmatprep.mubr.msk.bf16.mxu1 %vm2121_vm5, %v7315_v47  ;;  %3396 = vmatprep.subr.bf16.mxu1 %v5945_v55  ;;  %v5948_v47 = vld [vmem:[%s8646_s5 + $0x64] ss:$8 sps:$4 sm:$0xff]  }
 0x2d0   : > { %3397 = vmatpush1.bf16.msra.mxu1 %v5943_v61 }
 0x2d1   : > { %3398 = vmatprep.subr.bf16.mxu1 %v5948_v47 }
 0x2d6   : > { %2495 = vmatmul.mubr.bf16.gmra.mrb[84].mxu1 %v7313_v23  ;;  %v5946_v23 = vld [vmem:[%s8646_s5 + $0x60] ss:$8 sps:$4 sm:$0xff]  }
 0x2d7   : > { %5142 = vmatprep.mubr.msk.bf16.mxu1 %vm2121_vm5, %v7328_v5  ;;  %3399 = vmatpush1.bf16.msra.mxu1 %v5946_v23 }
 0x2de   : > { %2503 = vmatmul.mubr.bf16.gmra.mrb[88].mxu1 %v7326_v31  ;;  %v5951_v31 = vld [vmem:[%s8646_s5 + $0x74] ss:$8 sps:$4 sm:$0xff]  }
 0x2df   : > { %5143 = vmatprep.mubr.msk.bf16.mxu1 %vm2121_vm5, %v7339_v7  ;;  %3400 = vmatprep.subr.bf16.mxu1 %v5951_v31 }
 0x2e6   : > { %2511 = vmatmul.mubr.bf16.gmra.mrb[92].mxu1 %v7337_v56  ;;  %v5949_v56 = vld [vmem:[%s8646_s5 + $0x70] ss:$8 sps:$4 sm:$0xff]  }
 0x2e7   : > { %5144 = vmatprep.mubr.msk.bf16.mxu1 %vm2121_vm5, %v7350_v37  ;;  %3401 = vmatpush1.bf16.msra.mxu1 %v5949_v56 }
 0x2ee   : > { %2519 = vmatmul.mubr.bf16.gmra.mrb[96].mxu1 %v7348_v13 }
 0x2ef   : > { %5145 = vmatprep.mubr.msk.bf16.mxu1 %vm2121_vm5, %v7361_v30  ;;  %v5952_v30 = vld [vmem:[%s8646_s5 + $0x80] ss:$8 sps:$4 sm:$0xff]  }
 0x2f6   : > { %2527 = vmatmul.mubr.bf16.gmra.mrb[100].mxu1 %v7359_v29  ;;  %v5954_v29 = vld [vmem:[%s8646_s5 + $0x84] ss:$8 sps:$4 sm:$0xff]  }
 0x2f7   : > { %5146 = vmatprep.mubr.msk.bf16.mxu1 %vm2121_vm5, %v7372_v54  ;;  %3402 = vmatprep.subr.bf16.mxu1 %v5954_v29 }
 0x2f8   : > { %3403 = vmatpush1.bf16.msra.mxu1 %v5952_v30 }
 0x2fe   : > { %2535 = vmatmul.mubr.bf16.gmra.mrb[104].mxu1 %v7370_v53  ;;  %v5957_v53 = vld [vmem:[%s8646_s5 + $0x94] ss:$8 sps:$4 sm:$0xff]  }
 0x2ff   : > { %5147 = vmatprep.mubr.msk.bf16.mxu1 %vm2121_vm5, %v7383_v16  ;;  %v5955_v16 = vld [vmem:[%s8646_s5 + $0x90] ss:$8 sps:$4 sm:$0xff]   ;;  %3404 = vmatprep.subr.bf16.mxu1 %v5957_v53 }
 0x300   : > { %3405 = vmatpush1.bf16.msra.mxu1 %v5955_v16 }
 0x301   : > { %v7512_v5 = vpop.f32.mrb[0].mxu1 }
 0x302   : > { %v2210_v7 = vpop.f32.mrb[1].mxu1 }
 0x303   : > { %v7517_v13 = vpop.f32.mrb[2].mxu1  ;;  %v5978_v7 = vld [vmem:[%s8646_s5 + $0x104] ss:$8 sps:$4 sm:$0xff]  }
 0x304   : > { %v2213_v37 = vpop.f32.mrb[3].mxu1 }
 0x306   : > { %2543 = vmatmul.mubr.bf16.gmra.mrb[108].mxu1 %v7381_v38 }
 0x307   : > { %5148 = vmatprep.mubr.msk.bf16.mxu1 %vm2121_vm5, %v7394_v36  ;;  %v5960_v36 = vld [vmem:[%s8646_s5 + $0xa4] ss:$8 sps:$4 sm:$0xff]  }
 0x308   : > { %3406 = vmatprep.subr.bf16.mxu1 %v5960_v36 }
 0x309   : > { %v7531_v54 = vpop.f32.mrb[4].mxu1  ;;  %3407 = vmatpush1.bf16.msra.mxu1 %v5958_v62 }
 0x30a   : > { %v2218_v19 = vpop.f32.mrb[5].mxu1  ;;  %3408 = vmatprep.subr.bf16.mxu1 %v5963_v63 }
 0x30b   : > { %v7536_v21 = vpop.f32.mrb[6].mxu1 }
 0x30c   : > { %v2221_v38 = vpop.f32.mrb[7].mxu1 }
 0x30d   : > { %3409 = vmatpush1.bf16.msra.mxu1 %v5961_v1 }
 0x30e   : > { %2551 = vmatmul.mubr.bf16.gmra.mrb[112].mxu1 %v7392_v6 }
 0x30f   : > { %5149 = vmatprep.mubr.msk.bf16.mxu1 %vm2121_vm5, %v7405_v58  ;;  %v5966_v58 = vld [vmem:[%s8646_s5 + $0xc4] ss:$8 sps:$4 sm:$0xff]  }
 0x310   : > { %3410 = vmatprep.subr.bf16.mxu1 %v5966_v58 }
 0x311   : > { %v7550_v14 = vpop.f32.mrb[8].mxu1  ;;  %3411 = vmatpush1.bf16.msra.mxu1 %v5964_v17 }
 0x312   : > { %v2226_v50 = vpop.f32.mrb[9].mxu1  ;;  %3412 = vmatprep.subr.bf16.mxu1 %v5969_v48 }
 0x313   : > { %v7555_v2 = vpop.f32.mrb[10].mxu1 }
 0x314   : > { %v2229_v6 = vpop.f32.mrb[11].mxu1 }
 0x315   : > { %3413 = vmatpush1.bf16.msra.mxu1 %v5967_v20 }
 0x316   : > { %2559 = vmatmul.mubr.bf16.gmra.mrb[116].mxu1 %v7403_v57 }
 0x317   : > { %5150 = vmatprep.mubr.msk.bf16.mxu1 %vm2121_vm5, %v7416_v28  ;;  %v5972_v28 = vld [vmem:[%s8646_s5 + $0xe4] ss:$8 sps:$4 sm:$0xff]  }
 0x318   : > { %3414 = vmatprep.subr.bf16.mxu1 %v5972_v28 }
 0x319   : > { %v7569_v24 = vpop.f32.mrb[12].mxu1  ;;  %3415 = vmatpush1.bf16.msra.mxu1 %v5970_v59 }
 0x31a   : > { %v2234_v4 = vpop.f32.mrb[13].mxu1  ;;  %3416 = vmatprep.subr.bf16.mxu1 %v5975_v60 }
 0x31b   : > { %v7574_v26 = vpop.f32.mrb[14].mxu1 }
 0x31c   : > { %v2237_v57 = vpop.f32.mrb[15].mxu1 }
 0x31d   : > { %3417 = vmatpush1.bf16.msra.mxu1 %v5973_v11 }
 0x31e   : > { %2567 = vmatmul.mubr.bf16.gmra.mrb[120].mxu1 %v7414_v27  ;;  %3499 = vmatprep.subr.bf16.mxu1 %v5978_v7 }
 0x31f   : > { %5151 = vmatprep.mubr.msk.bf16.mxu1 %vm2121_vm5, %v7427_v8 }
 0x321   : > { %v7588_v10 = vpop.f32.mrb[16].mxu1 }
 0x322   : > { %v2242_v34 = vpop.f32.mrb[17].mxu1 }
 0x323   : > { %v7593_v18 = vpop.f32.mrb[18].mxu1 }
 0x324   : > { %v2245_v27 = vpop.f32.mrb[19].mxu1 }
 0x326   : > { %2575 = vmatmul.mubr.bf16.gmra.mrb[124].mxu1 %v7425_v46 }
 0x329   : > { %v7596_v42 = vpop.f32.mrb[20].mxu1 }
 0x32a   : > { %v2250_v51 = vpop.f32.mrb[21].mxu1 }
 0x32b   : > { %v7598_v39 = vpop.f32.mrb[22].mxu1 }
 0x32c   : > { %v2253_v41 = vpop.f32.mrb[23].mxu1 }
 0x331   : > { %v7600_v43 = vpop.f32.mrb[24].mxu1 }
 0x332   : > { %v2258_v44 = vpop.f32.mrb[25].mxu1 }
 0x333   : > { %v7602_v8 = vpop.f32.mrb[26].mxu1 }
 0x334   : > { %v2261_v35 = vpop.f32.mrb[27].mxu1 }
 0x339   : > { %v7604_v33 = vpop.f32.mrb[28].mxu1 }
 0x33a   : > { %v2266_v52 = vpop.f32.mrb[29].mxu1 }
 0x33b   : > { %v7606_v45 = vpop.f32.mrb[30].mxu1 }
 0x33c   : > { %v2269_v49 = vpop.f32.mrb[31].mxu1 }
 0x341   : > { %v7608_v9 = vpop.f32.mrb[32].mxu1 }
 0x342   : > { %v2274_v46 = vpop.f32.mrb[33].mxu1 }
 0x343   : > { %v7610_v3 = vpop.f32.mrb[34].mxu1 }
 0x344   : > { %v2277_v22 = vpop.f32.mrb[35].mxu1 }
 0x349   : > { %v7612_v40 = vpop.f32.mrb[36].mxu1 }
 0x34a   : > { %v2282_v15 = vpop.f32.mrb[37].mxu1 }
 0x34b   : > { %v7614_v55 = vpop.f32.mrb[38].mxu1 }
 0x34c   : > { %v2285_v61 = vpop.f32.mrb[39].mxu1 }
 0x351   : > { %v7616_v23 = vpop.f32.mrb[40].mxu1 }
 0x352   : > { %v2290_v47 = vpop.f32.mrb[41].mxu1 }
 0x353   : > { %v7618_v31 = vpop.f32.mrb[42].mxu1 }
 0x354   : > { %v2293_v56 = vpop.f32.mrb[43].mxu1 }
 0x359   : > { %v7623_v37 = vpop.f32.mrb[44].mxu1 }
 0x35a   : > { %v2298_v29 = vpop.f32.mrb[45].mxu1 }
 0x35b   : > { %v7625_v30 = vpop.f32.mrb[46].mxu1 }
 0x35c   : > { %v2301_v53 = vpop.f32.mrb[47].mxu1 }
 0x361   : > { %v7627_v16 = vpop.f32.mrb[48].mxu1 }
 0x362   : > { %v2306_v19 = vpop.f32.mrb[49].mxu1 }
 0x363   : > { %v7629_v38 = vpop.f32.mrb[50].mxu1 }
 0x364   : > { %v2309_v36 = vpop.f32.mrb[51].mxu1 }
 0x369   : > { %v7631_v62 = vpop.f32.mrb[52].mxu1 }
 0x36a   : > { %v2314_v63 = vpop.f32.mrb[53].mxu1 }
 0x36b   : > { %v7633_v1 = vpop.f32.mrb[54].mxu1 }
 0x36c   : > { %v2317_v50 = vpop.f32.mrb[55].mxu1 }
 0x371   : > { %v7635_v6 = vpop.f32.mrb[56].mxu1 }
 0x372   : > { %v2322_v58 = vpop.f32.mrb[57].mxu1 }
 0x373   : > { %v7637_v17 = vpop.f32.mrb[58].mxu1 }
 0x374   : > { %v2325_v48 = vpop.f32.mrb[59].mxu1 }
 0x379   : > { %v7639_v20 = vpop.f32.mrb[60].mxu1 }
 0x37a   : > { %v2330_v4 = vpop.f32.mrb[61].mxu1 }
 0x37b   : > { %v7641_v57 = vpop.f32.mrb[62].mxu1 }
 0x37c   : > { %v2333_v28 = vpop.f32.mrb[63].mxu1 }
 0x381   : > { %v2456_v59 = vpop.f32.mrb[64].mxu1 }
 0x382   : > { %v2583_v60 = vmax.f32 %v7512_v5, %v2456_v59  ;;  %v2458_v11 = vpop.f32.mrb[65].mxu1 }
 0x383   : > { %v2459_v34 = vpop.f32.mrb[66].mxu1 }
 0x384   : > { %2615 = vst [vmem:[#allocation2] sm:$0xff] %v2583_v60  ;;  %v2584_v27 = vmax.f32 %v7517_v13, %v2459_v34  ;;  %v2461_v51 = vpop.f32.mrb[67].mxu1 }
 0x386   : > { %2616 = vst [vmem:[#allocation2 + $0x8] sm:$0xff] %v2584_v27 }
 0x389   : > { %v2464_v41 = vpop.f32.mrb[68].mxu1 }
 0x38a   : > { %v2585_v44 = vmax.f32 %v7531_v54, %v2464_v41  ;;  %v2466_v35 = vpop.f32.mrb[69].mxu1 }
 0x38b   : > { %v2467_v52 = vpop.f32.mrb[70].mxu1 }
 0x38c   : > { %2617 = vst [vmem:[#allocation2 + $0x10] sm:$0xff] %v2585_v44  ;;  %v2586_v49 = vmax.f32 %v7536_v21, %v2467_v52  ;;  %v2469_v46 = vpop.f32.mrb[71].mxu1 }
 0x38d   : > { %v2647_v15 = vld [vmem:[#allocation2] ss:$2 sm:$0xff]  ;;  %v2679_v5 = vld [vmem:[#allocation2 + $0x1] ss:$2 sm:$0xff] }
 0x38e   : > { %2618 = vst [vmem:[#allocation2 + $0x18] sm:$0xff] %v2586_v49  ;;  %v7649_v29 = vmax.f32 %v2647_v15, %v2679_v5 }
 0x390   : > { %v8664_v21 = vrot.slane %v7649_v29, 3  ;;  %v2758_v63 = vrot.slane %v7649_v29, 2  ;;  %v2726_v35 = vrot.slane %v7649_v29, 1 }
 0x391   : > { %v2472_v22 = vpop.f32.mrb[72].mxu1 }
 0x392   : > { %v2587_v61 = vmax.f32 %v7550_v14, %v2472_v22  ;;  %v2474_v47 = vpop.f32.mrb[73].mxu1  ;;  %v2822_v14 = vrot.slane %v7649_v29, 4 }
 0x393   : > { %v2475_v56 = vpop.f32.mrb[74].mxu1 }
 0x394   : > { %2619 = vst [vmem:[#allocation2 + $0x20] sm:$0xff] %v2587_v61  ;;  %v2588_v13 = vmax.f32 %v7555_v2, %v2475_v56  ;;  %v2477_v7 = vpop.f32.mrb[75].mxu1 }
 0x395   : > { %v2649_v54 = vld [vmem:[#allocation2 + $0x10] ss:$2 sm:$0xff]  ;;  %v2681_v53 = vld [vmem:[#allocation2 + $0x11] ss:$2 sm:$0xff] }
 0x396   : > { %2620 = vst [vmem:[#allocation2 + $0x28] sm:$0xff] %v2588_v13  ;;  %v2711_v19 = vmax.f32 %v2649_v54, %v2681_v53 }
 0x398   : > { %v2791_v36 = vrot.slane %v2711_v19, 3  ;;  %v2759_v50 = vrot.slane %v2711_v19, 2  ;;  %v2823_v48 = vrot.slane %v2711_v19, 4  ;;  %v2727_v41 = vrot.slane %v2711_v19, 1 }
 0x399   : > { %v2480_v58 = vpop.f32.mrb[76].mxu1 }
 0x39a   : > { %v2589_v4 = vmax.f32 %v7569_v24, %v2480_v58  ;;  %v2482_v2 = vpop.f32.mrb[77].mxu1  ;;  %v7659_v28 = vsel %vm692_vm1, %v8664_v21, %v2791_v36  ;;  %v7665_v59 = vsel %vm627_vm2, %v2758_v63, %v2759_v50  ;;  %v7671_v11 = vsel %vm757_vm3, %v2822_v14, %v2823_v48 }
 0x39b   : > { %v2483_v60 = vpop.f32.mrb[78].mxu1  ;;  %v2854_v2 = vpack.c.bf16 %v2711_v19, %v7649_v29  ;;  %v5984_v19 = vld [vmem:[%s8646_s5 + $0x124] ss:$8 sps:$4 sm:$0xff]  }
 0x39c   : > { %2621 = vst [vmem:[#allocation2 + $0x30] sm:$0xff] %v2589_v4  ;;  %v2590_v24 = vmax.f32 %v7574_v26, %v2483_v60  ;;  %v2485_v34 = vpop.f32.mrb[79].mxu1  ;;  %v2756_v26 = vsel %vm562_vm0, %v2726_v35, %v2727_v41  ;;  %v5981_v60 = vld [vmem:[%s8646_s5 + $0x114] ss:$8 sps:$4 sm:$0xff]  }
 0x39d   : > { %v2651_v27 = vld [vmem:[#allocation2 + $0x20] ss:$2 sm:$0xff]  ;;  %v2683_v51 = vld [vmem:[#allocation2 + $0x21] ss:$2 sm:$0xff] }
 0x39e   : > { %2622 = vst [vmem:[#allocation2 + $0x38] sm:$0xff] %v2590_v24  ;;  %v7674_v44 = vmax.f32 %v2651_v27, %v2683_v51 }
 0x3a0   : > { %v2728_v52 = vrot.slane %v7674_v44, 1  ;;  %v2792_v49 = vrot.slane %v7674_v44, 3  ;;  %v2760_v46 = vrot.slane %v7674_v44, 2  ;;  %v2824_v22 = vrot.slane %v7674_v44, 4 }
 0x3a1   : > { %v2488_v15 = vpop.f32.mrb[80].mxu1 }
 0x3a2   : > { %v2591_v5 = vmax.f32 %v7588_v10, %v2488_v15  ;;  %v2490_v61 = vpop.f32.mrb[81].mxu1  ;;  %v2755_v47 = vsel %vm562_vm0, %v2727_v41, %v2728_v52  ;;  %v7692_v56 = vsel %vm692_vm1, %v2791_v36, %v2792_v49  ;;  %v7696_v13 = vsel %vm627_vm2, %v2759_v50, %v2760_v46  ;;  %v5976_v10 = vld [vmem:[%s8646_s5 + $0x100] ss:$8 sps:$4 sm:$0xff]  }
 0x3a3   : > { %v2491_v7 = vpop.f32.mrb[82].mxu1  ;;  %v2855_v54 = vpack.c.bf16 %v2755_v47, %v2756_v26  ;;  %v7707_v36 = vsel %vm757_vm3, %v2823_v48, %v2824_v22 }
 0x3a4   : > { %2623 = vst [vmem:[#allocation2 + $0x40] sm:$0xff] %v2591_v5  ;;  %v2592_v50 = vmax.f32 %v7593_v18, %v2491_v7  ;;  %v2493_v4 = vpop.f32.mrb[83].mxu1  ;;  %v5979_v18 = vld [vmem:[%s8646_s5 + $0x110] ss:$8 sps:$4 sm:$0xff]  }
 0x3a5   : > { %3418 = vmatprep.mubr.bf16.mxu1 %v2855_v54  ;;  %v2653_v34 = vld [vmem:[#allocation2 + $0x30] ss:$2 sm:$0xff]  ;;  %v2685_v27 = vld [vmem:[#allocation2 + $0x31] ss:$2 sm:$0xff] }
 0x3a6   : > { %2624 = vst [vmem:[#allocation2 + $0x48] sm:$0xff] %v2592_v50  ;;  %3419 = vmatmul.mubr.bf16.vlgmr.msra.gmra.mrb[128].mxu1 %v2854_v2  ;;  %v2713_v48 = vmax.f32 %v2653_v34, %v2685_v27 }
 0x3a7   : > { %3500 = vmatpush1.bf16.msra.mxu1 %v5976_v10  ;;  %v5982_v10 = vld [vmem:[%s8646_s5 + $0x120] ss:$8 sps:$4 sm:$0xff]  }
 0x3a8   : > { %3501 = vmatprep.subr.bf16.mxu1 %v5981_v60  ;;  %v2793_v51 = vrot.slane %v2713_v48, 3  ;;  %v2761_v41 = vrot.slane %v2713_v48, 2  ;;  %v2825_v26 = vrot.slane %v2713_v48, 4  ;;  %v2729_v60 = vrot.slane %v2713_v48, 1 }
 0x3a9   : > { %v2496_v15 = vpop.f32.mrb[84].mxu1 }
 0x3aa   : > { %v2593_v5 = vmax.f32 %v7596_v42, %v2496_v15  ;;  %v2498_v61 = vpop.f32.mrb[85].mxu1  ;;  %v7725_v47 = vsel %vm692_vm1, %v2792_v49, %v2793_v51  ;;  %v7729_v7 = vsel %vm627_vm2, %v2760_v46, %v2761_v41  ;;  %v7736_v50 = vsel %vm757_vm3, %v2824_v22, %v2825_v26  ;;  %v5987_v49 = vld [vmem:[%s8646_s5 + $0x134] ss:$8 sps:$4 sm:$0xff]   ;;  %v5985_v22 = vld [vmem:[%s8646_s5 + $0x130] ss:$8 sps:$4 sm:$0xff]  }
 0x3ab   : > { %v2499_v54 = vpop.f32.mrb[86].mxu1  ;;  %3502 = vmatpush1.bf16.msra.mxu1 %v5979_v18  ;;  %v2754_v61 = vsel %vm562_vm0, %v2728_v52, %v2729_v60 }
 0x3ac   : > { %2625 = vst [vmem:[#allocation2 + $0x50] sm:$0xff] %v2593_v5  ;;  %v2594_v42 = vmax.f32 %v7598_v39, %v2499_v54  ;;  %v2501_v4 = vpop.f32.mrb[87].mxu1  ;;  %3503 = vmatprep.subr.bf16.mxu1 %v5984_v19  ;;  %v5990_v39 = vld [vmem:[%s8646_s5 + $0x144] ss:$8 sps:$4 sm:$0xff]  }
 0x3ad   : > { %v2655_v46 = vld [vmem:[#allocation2 + $0x40] ss:$2 sm:$0xff]  ;;  %v2687_v2 = vld [vmem:[#allocation2 + $0x41] ss:$2 sm:$0xff] }
 0x3ae   : > { %2626 = vst [vmem:[#allocation2 + $0x58] sm:$0xff] %v2594_v42  ;;  %v7742_v34 = vmax.f32 %v2655_v46, %v2687_v2 }
 0x3af   : > { %3504 = vmatpush1.bf16.msra.mxu1 %v5982_v10 }
 0x3b0   : > { %v2730_v27 = vrot.slane %v7742_v34, 1  ;;  %3505 = vmatprep.subr.bf16.mxu1 %v5987_v49  ;;  %v2794_v18 = vrot.slane %v7742_v34, 3  ;;  %v2762_v19 = vrot.slane %v7742_v34, 2  ;;  %v2826_v15 = vrot.slane %v7742_v34, 4 }
 0x3b1   : > { %v2504_v5 = vpop.f32.mrb[88].mxu1 }
 0x3b2   : > { %v2595_v54 = vmax.f32 %v7600_v43, %v2504_v5  ;;  %v2506_v10 = vpop.f32.mrb[89].mxu1  ;;  %v2753_v42 = vsel %vm562_vm0, %v2729_v60, %v2730_v27  ;;  %v7765_v4 = vsel %vm692_vm1, %v2793_v51, %v2794_v18  ;;  %v7769_v49 = vsel %vm627_vm2, %v2761_v41, %v2762_v19  ;;  %v5988_v43 = vld [vmem:[%s8646_s5 + $0x140] ss:$8 sps:$4 sm:$0xff]  }
 0x3b3   : > { %v2507_v46 = vpop.f32.mrb[90].mxu1  ;;  %v2860_v2 = vpack.c.bf16 %v2753_v42, %v2754_v61  ;;  %3506 = vmatpush1.bf16.msra.mxu1 %v5985_v22  ;;  %v7780_v51 = vsel %vm757_vm3, %v2825_v26, %v2826_v15  ;;  %v2859_v22 = vpack.c.bf16 %v2713_v48, %v7674_v44  ;;  %v5993_v61 = vld [vmem:[%s8646_s5 + $0x154] ss:$8 sps:$4 sm:$0xff]   ;;  %v5996_v44 = vld [vmem:[%s8646_s5 + $0x164] ss:$8 sps:$4 sm:$0xff]  }
 0x3b4   : > { %2627 = vst [vmem:[#allocation2 + $0x60] sm:$0xff] %v2595_v54  ;;  %v2596_v41 = vmax.f32 %v7602_v8, %v2507_v46  ;;  %v2509_v5 = vpop.f32.mrb[91].mxu1  ;;  %3507 = vmatprep.subr.bf16.mxu1 %v5990_v39  ;;  %v5991_v8 = vld [vmem:[%s8646_s5 + $0x150] ss:$8 sps:$4 sm:$0xff]  }
 0x3b5   : > { %3428 = vmatprep.mubr.bf16.mxu1 %v2860_v2  ;;  %v2657_v42 = vld [vmem:[#allocation2 + $0x50] ss:$2 sm:$0xff]  ;;  %v2689_v25 = vld [vmem:[#allocation2 + $0x51] ss:$2 sm:$0xff] }
 0x3b6   : > { %2628 = vst [vmem:[#allocation2 + $0x68] sm:$0xff] %v2596_v41  ;;  %3429 = vmatmul.mubr.bf16.gmra.mrb[132].mxu1 %v2859_v22  ;;  %v2715_v26 = vmax.f32 %v2657_v42, %v2689_v25  ;;  %v5994_v22 = vld [vmem:[%s8646_s5 + $0x160] ss:$8 sps:$4 sm:$0xff]  }
 0x3b7   : > { %3508 = vmatpush1.bf16.msra.mxu1 %v5988_v43 }
 0x3b8   : > { %3509 = vmatprep.subr.bf16.mxu1 %v5993_v61  ;;  %v2795_v48 = vrot.slane %v2715_v26, 3  ;;  %v2763_v39 = vrot.slane %v2715_v26, 2  ;;  %v2827_v46 = vrot.slane %v2715_v26, 4 }
 0x3b9   : > { %v2512_v54 = vpop.f32.mrb[92].mxu1 }
 0x3ba   : > { %v2597_v2 = vmax.f32 %v7604_v33, %v2512_v54  ;;  %v2514_v5 = vpop.f32.mrb[93].mxu1  ;;  %v7798_v25 = vsel %vm692_vm1, %v2794_v18, %v2795_v48  ;;  %v7802_v43 = vsel %vm627_vm2, %v2762_v19, %v2763_v39  ;;  %v7809_v61 = vsel %vm757_vm3, %v2826_v15, %v2827_v46  ;;  %v5999_v18 = vld [vmem:[%s8646_s5 + $0x174] ss:$8 sps:$4 sm:$0xff]   ;;  %v5997_v15 = vld [vmem:[%s8646_s5 + $0x170] ss:$8 sps:$4 sm:$0xff]  }
 0x3bb   : > { %v2515_v41 = vpop.f32.mrb[94].mxu1  ;;  %3510 = vmatpush1.bf16.msra.mxu1 %v5991_v8  ;;  %v2731_v8 = vrot.slane %v2715_v26, 1 }
 0x3bc   : > { %2629 = vst [vmem:[#allocation2 + $0x70] sm:$0xff] %v2597_v2  ;;  %v2598_v33 = vmax.f32 %v7606_v45, %v2515_v41  ;;  %v2517_v42 = vpop.f32.mrb[95].mxu1  ;;  %3511 = vmatprep.subr.bf16.mxu1 %v5996_v44  ;;  %v6002_v45 = vld [vmem:[%s8646_s5 + $0x184] ss:$8 sps:$4 sm:$0xff]  }
 0x3bd   : > { %v2659_v19 = vld [vmem:[#allocation2 + $0x60] ss:$2 sm:$0xff]  ;;  %v2691_v54 = vld [vmem:[#allocation2 + $0x61] ss:$2 sm:$0xff] }
 0x3be   : > { %2630 = vst [vmem:[#allocation2 + $0x78] sm:$0xff] %v2598_v33  ;;  %v7815_v5 = vmax.f32 %v2659_v19, %v2691_v54 }
 0x3bf   : > { %3512 = vmatpush1.bf16.msra.mxu1 %v5994_v22  ;;  %v2752_v22 = vsel %vm562_vm0, %v2730_v27, %v2731_v8 }
 0x3c0   : > { %v2732_v2 = vrot.slane %v7815_v5, 1  ;;  %3513 = vmatprep.subr.bf16.mxu1 %v5999_v18  ;;  %v2796_v44 = vrot.slane %v7815_v5, 3  ;;  %v2764_v41 = vrot.slane %v7815_v5, 2  ;;  %v2828_v33 = vrot.slane %v7815_v5, 4 }
 0x3c1   : > { %v2520_v42 = vpop.f32.mrb[96].mxu1 }
 0x3c2   : > { %v2599_v19 = vmax.f32 %v7608_v9, %v2520_v42  ;;  %v2522_v54 = vpop.f32.mrb[97].mxu1  ;;  %v2751_v18 = vsel %vm562_vm0, %v2731_v8, %v2732_v2  ;;  %v7838_v32 = vsel %vm692_vm1, %v2795_v48, %v2796_v44  ;;  %v7842_v10 = vsel %vm627_vm2, %v2763_v39, %v2764_v41  ;;  %v6000_v9 = vld [vmem:[%s8646_s5 + $0x180] ss:$8 sps:$4 sm:$0xff]  }
 0x3c3   : > { %v2523_v24 = vpop.f32.mrb[98].mxu1  ;;  %v2865_v21 = vpack.c.bf16 %v2751_v18, %v2752_v22  ;;  %3514 = vmatpush1.bf16.msra.mxu1 %v5997_v15  ;;  %v7853_v48 = vsel %vm757_vm3, %v2827_v46, %v2828_v33  ;;  %v2864_v15 = vpack.c.bf16 %v2715_v26, %v7742_v34  ;;  %v6005_v22 = vld [vmem:[%s8646_s5 + $0x194] ss:$8 sps:$4 sm:$0xff]  }
 0x3c4   : > { %2631 = vst [vmem:[#allocation2 + $0x80] sm:$0xff] %v2599_v19  ;;  %v2600_v39 = vmax.f32 %v7610_v3, %v2523_v24  ;;  %v2525_v42 = vpop.f32.mrb[99].mxu1  ;;  %3515 = vmatprep.subr.bf16.mxu1 %v6002_v45  ;;  %v6003_v3 = vld [vmem:[%s8646_s5 + $0x190] ss:$8 sps:$4 sm:$0xff]   ;;  %v6008_v24 = vld [vmem:[%s8646_s5 + $0x1a4] ss:$8 sps:$4 sm:$0xff]  }
 0x3c5   : > { %3438 = vmatprep.mubr.bf16.mxu1 %v2865_v21  ;;  %v2661_v18 = vld [vmem:[#allocation2 + $0x70] ss:$2 sm:$0xff]  ;;  %v2693_v8 = vld [vmem:[#allocation2 + $0x71] ss:$2 sm:$0xff] }
 0x3c6   : > { %2632 = vst [vmem:[#allocation2 + $0x88] sm:$0xff] %v2600_v39  ;;  %3439 = vmatmul.mubr.bf16.gmra.mrb[136].mxu1 %v2864_v15  ;;  %v2717_v46 = vmax.f32 %v2661_v18, %v2693_v8  ;;  %v6006_v15 = vld [vmem:[%s8646_s5 + $0x1a0] ss:$8 sps:$4 sm:$0xff]  }
 0x3c7   : > { %3516 = vmatpush1.bf16.msra.mxu1 %v6000_v9 }
 0x3c8   : > { %3517 = vmatprep.subr.bf16.mxu1 %v6005_v22  ;;  %v2797_v34 = vrot.slane %v2717_v46, 3  ;;  %v2765_v26 = vrot.slane %v2717_v46, 2  ;;  %v2829_v19 = vrot.slane %v2717_v46, 4 }
 0x3c9   : > { %v2528_v45 = vpop.f32.mrb[100].mxu1 }
 0x3ca   : > { %v2601_v21 = vmax.f32 %v7612_v40, %v2528_v45  ;;  %v2530_v42 = vpop.f32.mrb[101].mxu1  ;;  %v7871_v8 = vsel %vm692_vm1, %v2796_v44, %v2797_v34  ;;  %v7875_v9 = vsel %vm627_vm2, %v2764_v41, %v2765_v26  ;;  %v7882_v22 = vsel %vm757_vm3, %v2828_v33, %v2829_v19  ;;  %v6011_v44 = vld [vmem:[%s8646_s5 + $0x1b4] ss:$8 sps:$4 sm:$0xff]   ;;  %v6009_v33 = vld [vmem:[%s8646_s5 + $0x1b0] ss:$8 sps:$4 sm:$0xff]  }
 0x3cb   : > { %v2531_v39 = vpop.f32.mrb[102].mxu1  ;;  %3518 = vmatpush1.bf16.msra.mxu1 %v6003_v3  ;;  %v2733_v3 = vrot.slane %v2717_v46, 1 }
 0x3cc   : > { %2633 = vst [vmem:[#allocation2 + $0x90] sm:$0xff] %v2601_v21  ;;  %v2602_v40 = vmax.f32 %v7614_v55, %v2531_v39  ;;  %v2533_v18 = vpop.f32.mrb[103].mxu1  ;;  %3519 = vmatprep.subr.bf16.mxu1 %v6008_v24  ;;  %v6014_v55 = vld [vmem:[%s8646_s5 + $0x1c4] ss:$8 sps:$4 sm:$0xff]  }
 0x3cd   : > { %v2663_v41 = vld [vmem:[#allocation2 + $0x80] ss:$2 sm:$0xff]  ;;  %v2695_v45 = vld [vmem:[#allocation2 + $0x81] ss:$2 sm:$0xff] }
 0x3ce   : > { %2634 = vst [vmem:[#allocation2 + $0x98] sm:$0xff] %v2602_v40  ;;  %v7888_v42 = vmax.f32 %v2663_v41, %v2695_v45 }
 0x3cf   : > { %3520 = vmatpush1.bf16.msra.mxu1 %v6006_v15  ;;  %v2750_v15 = vsel %vm562_vm0, %v2732_v2, %v2733_v3 }
 0x3d0   : > { %v2734_v21 = vrot.slane %v7888_v42, 1  ;;  %3521 = vmatprep.subr.bf16.mxu1 %v6011_v44  ;;  %v2798_v24 = vrot.slane %v7888_v42, 3  ;;  %v2766_v39 = vrot.slane %v7888_v42, 2  ;;  %v2830_v40 = vrot.slane %v7888_v42, 4 }
 0x3d1   : > { %v2536_v18 = vpop.f32.mrb[104].mxu1 }
 0x3d2   : > { %v2603_v41 = vmax.f32 %v7616_v23, %v2536_v18  ;;  %v2538_v45 = vpop.f32.mrb[105].mxu1  ;;  %v2749_v44 = vsel %vm562_vm0, %v2733_v3, %v2734_v21  ;;  %v7911_v54 = vsel %vm692_vm1, %v2797_v34, %v2798_v24  ;;  %v7915_v27 = vsel %vm627_vm2, %v2765_v26, %v2766_v39  ;;  %v6012_v23 = vld [vmem:[%s8646_s5 + $0x1c0] ss:$8 sps:$4 sm:$0xff]  }
 0x3d3   : > { %v2539_v60 = vpop.f32.mrb[106].mxu1  ;;  %v2870_v52 = vpack.c.bf16 %v2749_v44, %v2750_v15  ;;  %3522 = vmatpush1.bf16.msra.mxu1 %v6009_v33  ;;  %v7926_v34 = vsel %vm757_vm3, %v2829_v19, %v2830_v40  ;;  %v2869_v33 = vpack.c.bf16 %v2717_v46, %v7815_v5  ;;  %v6017_v15 = vld [vmem:[%s8646_s5 + $0x1d4] ss:$8 sps:$4 sm:$0xff]  }
 0x3d4   : > { %2635 = vst [vmem:[#allocation2 + $0xa0] sm:$0xff] %v2603_v41  ;;  %v2604_v26 = vmax.f32 %v7618_v31, %v2539_v60  ;;  %v2541_v18 = vpop.f32.mrb[107].mxu1  ;;  %3523 = vmatprep.subr.bf16.mxu1 %v6014_v55  ;;  %v6015_v31 = vld [vmem:[%s8646_s5 + $0x1d0] ss:$8 sps:$4 sm:$0xff]   ;;  %v6020_v60 = vld [vmem:[%s8646_s5 + $0x1e4] ss:$8 sps:$4 sm:$0xff]  }
 0x3d5   : > { %3448 = vmatprep.mubr.bf16.mxu1 %v2870_v52  ;;  %v2665_v44 = vld [vmem:[#allocation2 + $0x90] ss:$2 sm:$0xff]  ;;  %v2697_v3 = vld [vmem:[#allocation2 + $0x91] ss:$2 sm:$0xff] }
 0x3d6   : > { %2636 = vst [vmem:[#allocation2 + $0xa8] sm:$0xff] %v2604_v26  ;;  %3449 = vmatmul.mubr.bf16.gmra.mrb[140].mxu1 %v2869_v33  ;;  %v2719_v19 = vmax.f32 %v2665_v44, %v2697_v3  ;;  %v6018_v33 = vld [vmem:[%s8646_s5 + $0x1e0] ss:$8 sps:$4 sm:$0xff]  }
 0x3d7   : > { %3524 = vmatpush1.bf16.msra.mxu1 %v6012_v23 }
 0x3d8   : > { %3525 = vmatprep.subr.bf16.mxu1 %v6017_v15  ;;  %v2799_v5 = vrot.slane %v2719_v19, 3  ;;  %v2767_v46 = vrot.slane %v2719_v19, 2  ;;  %v2831_v41 = vrot.slane %v2719_v19, 4 }
 0x3d9   : > { %v2544_v55 = vpop.f32.mrb[108].mxu1 }
 0x3da   : > { %v2605_v52 = vmax.f32 %v7623_v37, %v2544_v55  ;;  %v2546_v18 = vpop.f32.mrb[109].mxu1  ;;  %v7944_v3 = vsel %vm692_vm1, %v2798_v24, %v2799_v5  ;;  %v7948_v23 = vsel %vm627_vm2, %v2766_v39, %v2767_v46  ;;  %v7955_v15 = vsel %vm757_vm3, %v2830_v40, %v2831_v41  ;;  %v6023_v24 = vld [vmem:[%s8646_s5 + $0x1f4] ss:$8 sps:$4 sm:$0xff]   ;;  %v6021_v40 = vld [vmem:[%s8646_s5 + $0x1f0] ss:$8 sps:$4 sm:$0xff]  }
 0x3db   : > { %v2547_v26 = vpop.f32.mrb[110].mxu1  ;;  %3526 = vmatpush1.bf16.msra.mxu1 %v6015_v31  ;;  %v2735_v31 = vrot.slane %v2719_v19, 1 }
 0x3dc   : > { %2637 = vst [vmem:[#allocation2 + $0xb0] sm:$0xff] %v2605_v52  ;;  %v2606_v37 = vmax.f32 %v7625_v30, %v2547_v26  ;;  %v2549_v44 = vpop.f32.mrb[111].mxu1  ;;  %3527 = vmatprep.subr.bf16.mxu1 %v6020_v60  ;;  %v6026_v30 = vld [vmem:[%s8646_s5 + $0x204] ss:$8 sps:$4 sm:$0xff]  }
 0x3dd   : > { %v2667_v39 = vld [vmem:[#allocation2 + $0xa0] ss:$2 sm:$0xff]  ;;  %v2699_v55 = vld [vmem:[#allocation2 + $0xa1] ss:$2 sm:$0xff] }
 0x3de   : > { %2638 = vst [vmem:[#allocation2 + $0xb8] sm:$0xff] %v2606_v37  ;;  %v7961_v18 = vmax.f32 %v2667_v39, %v2699_v55 }
 0x3df   : > { %3528 = vmatpush1.bf16.msra.mxu1 %v6018_v33  ;;  %v2748_v33 = vsel %vm562_vm0, %v2734_v21, %v2735_v31 }
 0x3e0   : > { %v2736_v52 = vrot.slane %v7961_v18, 1  ;;  %3529 = vmatprep.subr.bf16.mxu1 %v6023_v24  ;;  %v2800_v60 = vrot.slane %v7961_v18, 3  ;;  %v2768_v26 = vrot.slane %v7961_v18, 2  ;;  %v2832_v37 = vrot.slane %v7961_v18, 4 }
 0x3e1   : > { %v2552_v44 = vpop.f32.mrb[112].mxu1 }
 0x3e2   : > { %v2607_v39 = vmax.f32 %v7627_v16, %v2552_v44  ;;  %v2554_v55 = vpop.f32.mrb[113].mxu1  ;;  %v2747_v24 = vsel %vm562_vm0, %v2735_v31, %v2736_v52  ;;  %v7982_v45 = vsel %vm692_vm1, %v2799_v5, %v2800_v60  ;;  %v7986_v2 = vsel %vm627_vm2, %v2767_v46, %v2768_v26 }
 0x3e3   : > { %v2555_v58 = vpop.f32.mrb[114].mxu1  ;;  %v2875_v0 = vpack.c.bf16 %v2747_v24, %v2748_v33  ;;  %3530 = vmatpush1.bf16.msra.mxu1 %v6021_v40  ;;  %v7994_v31 = vsel %vm757_vm3, %v2831_v41, %v2832_v37  ;;  %v2874_v46 = vpack.c.bf16 %v2719_v19, %v7888_v42 }
 0x3e4   : > { %2639 = vst [vmem:[#allocation2 + $0xc0] sm:$0xff] %v2607_v39  ;;  %v2608_v5 = vmax.f32 %v7629_v38, %v2555_v58  ;;  %v2557_v44 = vpop.f32.mrb[115].mxu1  ;;  %3612 = vmatprep.subr.bf16.mxu1 %v6026_v30 }
 0x3e5   : > { %3458 = vmatprep.mubr.bf16.mxu1 %v2875_v0  ;;  %v2669_v33 = vld [vmem:[#allocation2 + $0xb0] ss:$2 sm:$0xff]  ;;  %v2701_v55 = vld [vmem:[#allocation2 + $0xb1] ss:$2 sm:$0xff] }
 0x3e6   : > { %2640 = vst [vmem:[#allocation2 + $0xc8] sm:$0xff] %v2608_v5  ;;  %3459 = vmatmul.mubr.bf16.gmra.mrb[144].mxu1 %v2874_v46  ;;  %v2721_v24 = vmax.f32 %v2669_v33, %v2701_v55 }
 0x3e8   : > { %v2801_v16 = vrot.slane %v2721_v24, 3  ;;  %v2769_v21 = vrot.slane %v2721_v24, 2  ;;  %v2833_v53 = vrot.slane %v2721_v24, 4  ;;  %v2737_v46 = vrot.slane %v2721_v24, 1 }
 0x3e9   : > { %v2560_v41 = vpop.f32.mrb[116].mxu1 }
 0x3ea   : > { %v2609_v39 = vmax.f32 %v7631_v62, %v2560_v41  ;;  %v2562_v38 = vpop.f32.mrb[117].mxu1  ;;  %v8003_v58 = vsel %vm692_vm1, %v2800_v60, %v2801_v16  ;;  %v8007_v42 = vsel %vm627_vm2, %v2768_v26, %v2769_v21  ;;  %v8011_v19 = vsel %vm757_vm3, %v2832_v37, %v2833_v53 }
 0x3eb   : > { %v2563_v0 = vpop.f32.mrb[118].mxu1 }
 0x3ec   : > { %2641 = vst [vmem:[#allocation2 + $0xd0] sm:$0xff] %v2609_v39  ;;  %v2610_v30 = vmax.f32 %v7633_v1, %v2563_v0  ;;  %v2565_v5 = vpop.f32.mrb[119].mxu1  ;;  %v2746_v39 = vsel %vm562_vm0, %v2736_v52, %v2737_v46 }
 0x3ed   : > { %v2671_v44 = vld [vmem:[#allocation2 + $0xc0] ss:$2 sm:$0xff]  ;;  %v2703_v62 = vld [vmem:[#allocation2 + $0xc1] ss:$2 sm:$0xff] }
 0x3ee   : > { %2642 = vst [vmem:[#allocation2 + $0xd8] sm:$0xff] %v2610_v30  ;;  %v8014_v33 = vmax.f32 %v2671_v44, %v2703_v62 }
 0x3f0   : > { %v2738_v60 = vrot.slane %v8014_v33, 1  ;;  %v2802_v26 = vrot.slane %v8014_v33, 3  ;;  %v2770_v55 = vrot.slane %v8014_v33, 2  ;;  %v2834_v41 = vrot.slane %v8014_v33, 4 }
 0x3f1   : > { %v2568_v37 = vpop.f32.mrb[120].mxu1 }
 0x3f2   : > { %v2611_v1 = vmax.f32 %v7635_v6, %v2568_v37  ;;  %v2570_v38 = vpop.f32.mrb[121].mxu1  ;;  %v2745_v0 = vsel %vm562_vm0, %v2737_v46, %v2738_v60  ;;  %v8029_v30 = vsel %vm692_vm1, %v2801_v16, %v2802_v26  ;;  %v8033_v5 = vsel %vm627_vm2, %v2769_v21, %v2770_v55 }
 0x3f3   : > { %v2571_v44 = vpop.f32.mrb[122].mxu1  ;;  %v2880_v62 = vpack.c.bf16 %v2745_v0, %v2746_v39  ;;  %v2882_v52 = vpack.c.bf16 %v8029_v30, %v8003_v58  ;;  %v8041_v46 = vsel %vm757_vm3, %v2833_v53, %v2834_v41  ;;  %v2879_v38 = vpack.c.bf16 %v2721_v24, %v7961_v18 }
 0x3f4   : > { %2643 = vst [vmem:[#allocation2 + $0xe0] sm:$0xff] %v2611_v1  ;;  %v2612_v16 = vmax.f32 %v7637_v17, %v2571_v44  ;;  %v2573_v37 = vpop.f32.mrb[123].mxu1 }
 0x3f5   : > { %3468 = vmatprep.mubr.bf16.mxu1 %v2880_v62  ;;  %v2673_v39 = vld [vmem:[#allocation2 + $0xd0] ss:$2 sm:$0xff]  ;;  %v2705_v0 = vld [vmem:[#allocation2 + $0xd1] ss:$2 sm:$0xff] }
 0x3f6   : > { %2644 = vst [vmem:[#allocation2 + $0xe8] sm:$0xff] %v2612_v16  ;;  %3469 = vmatmul.mubr.bf16.gmra.mrb[148].mxu1 %v2879_v38  ;;  %v8047_v40 = vmax.f32 %v2673_v39, %v2705_v0 }
 0x3f8   : > { %v2771_v6 = vrot.slane %v8047_v40, 2  ;;  %v2835_v1 = vrot.slane %v8047_v40, 4 }
 0x3f9   : > { %v2576_v53 = vpop.f32.mrb[124].mxu1 }
 0x3fa   : > { %v2613_v17 = vmax.f32 %v7639_v20, %v2576_v53  ;;  %v2578_v44 = vpop.f32.mrb[125].mxu1  ;;  %v8054_v18 = vsel %vm627_vm2, %v2770_v55, %v2771_v6  ;;  %v8058_v62 = vsel %vm757_vm3, %v2834_v41, %v2835_v1  ;;  %v2739_v20 = vrot.slane %v8047_v40, 1 }
 0x3fb   : > { %v2579_v24 = vpop.f32.mrb[126].mxu1 }
 0x3fc   : > { %2645 = vst [vmem:[#allocation2 + $0xf0] sm:$0xff] %v2613_v17  ;;  %v2614_v16 = vmax.f32 %v7641_v57, %v2579_v24  ;;  %v2581_v37 = vpop.f32.mrb[127].mxu1  ;;  %v2744_v57 = vsel %vm562_vm0, %v2738_v60, %v2739_v20 }
 0x3fd   : > { %v2675_v38 = vld [vmem:[#allocation2 + $0xe0] ss:$2 sm:$0xff]  ;;  %v2707_v39 = vld [vmem:[#allocation2 + $0xe1] ss:$2 sm:$0xff] }
 0x3fe   : > { %2646 = vst [vmem:[#allocation2 + $0xf8] sm:$0xff] %v2614_v16  ;;  %v8061_v0 = vmax.f32 %v2675_v38, %v2707_v39  ;;  %v2884_v39 = vpack.c.bf16 %v8047_v40, %v8014_v33 }
 0x400   : > { %v2740_v53 = vrot.slane %v8061_v0, 1  ;;  %v2772_v55 = vrot.slane %v8061_v0, 2  ;;  %v2836_v44 = vrot.slane %v8061_v0, 4 }
 0x402   : > { %v2743_v41 = vsel %vm562_vm0, %v2739_v20, %v2740_v53  ;;  %v8073_v17 = vsel %vm627_vm2, %v2771_v6, %v2772_v55  ;;  %v8077_v24 = vsel %vm757_vm3, %v2835_v1, %v2836_v44 }
 0x403   : > { %v2885_v16 = vpack.c.bf16 %v2743_v41, %v2744_v57  ;;  %v2886_v37 = vpack.c.bf16 %v8073_v17, %v8054_v18  ;;  %v6063_v18 = vld [vmem:[%s8649_s8 + $0x30] sm:$0xff]  }
 0x405   : > { %3478 = vmatprep.mubr.bf16.mxu1 %v2885_v16  ;;  %v2677_v60 = vld [vmem:[#allocation2 + $0xf0] ss:$2 sm:$0xff]  ;;  %v2709_v20 = vld [vmem:[#allocation2 + $0xf1] ss:$2 sm:$0xff] }
 0x406   : > { %3479 = vmatmul.mubr.bf16.gmra.mrb[152].mxu1 %v2884_v39  ;;  %v8085_v6 = vmax.f32 %v2677_v60, %v2709_v20 }
 0x408   : > { %v2741_v21 = vrot.slane %v8085_v6, 1  ;;  %v2773_v1 = vrot.slane %v8085_v6, 2  ;;  %v2837_v41 = vrot.slane %v8085_v6, 4  ;;  %v2889_v20 = vpack.c.bf16 %v8085_v6, %v8061_v0 }
 0x40a   : > { %v2742_v57 = vsel %vm562_vm0, %v2740_v53, %v2741_v21  ;;  %v2757_v38 = vsel %vm562_vm0, %v2741_v21, %v2726_v35  ;;  %v8098_v39 = vsel %vm627_vm2, %v2772_v55, %v2773_v1  ;;  %v8104_v60 = vsel %vm627_vm2, %v2773_v1, %v2758_v63  ;;  %v6048_v55 = vld [vmem:[%s8648_s7] sm:$0xff]  }
 0x40b   : > { %v2890_v16 = vpack.c.bf16 %v2757_v38, %v2742_v57  ;;  %v2891_v53 = vpack.c.bf16 %v8104_v60, %v8098_v39  ;;  %v8112_v35 = vsel %vm757_vm3, %v2836_v44, %v2837_v41  ;;  %v8118_v21 = vsel %vm757_vm3, %v2837_v41, %v2822_v14  ;;  %3879 = vmatpush1.bf16.msra.mxu0 %v6048_v55  ;;  %v6049_v44 = vld [vmem:[%s8648_s7 + $0x8] sm:$0xff]   ;;  %v6029_v41 = vld [vmem:[%s8646_s5 + $0x214] ss:$8 sps:$4 sm:$0xff]  }
 0x40c   : > { %v2893_v63 = vpack.c.bf16 %v8118_v21, %v8112_v35  ;;  %v8674_v38 = vpack.c.bf16 %v7692_v56, %v7659_v28  ;;  %v8675_v14 = vmov 0   ;;  %v6024_v1 = vld [vmem:[%s8646_s5 + $0x200] ss:$8 sps:$4 sm:$0xff]   ;;  %v6050_v28 = vld [vmem:[%s8648_s7 + $0x10] sm:$0xff]   ;;  %v8676_v56 = vpack.c.bf16 %v7696_v13, %v7665_v59  ;;  %v6051_v59 = vld [vmem:[%s8648_s7 + $0x18] sm:$0xff]  }
 0x40d   : > { %3488 = vmatprep.mubr.bf16.mxu1 %v2890_v16  ;;  %3880 = vmatprep.subr.bf16.mxu0 %v8675_v14  ;;  %v8677_v57 = vpack.c.bf16 %v7765_v4, %v7725_v47  ;;  %v6027_v16 = vld [vmem:[%s8646_s5 + $0x210] ss:$8 sps:$4 sm:$0xff]   ;;  %v6030_v13 = vld [vmem:[%s8646_s5 + $0x220] ss:$8 sps:$4 sm:$0xff]   ;;  %v6035_v47 = vld [vmem:[%s8646_s5 + $0x234] ss:$8 sps:$4 sm:$0xff]   ;;  %v8678_v55 = vpack.c.bf16 %v7769_v49, %v7729_v7 }
 0x40e   : > { %3489 = vmatmul.mubr.bf16.gmra.mrb[156].mxu1 %v2889_v20  ;;  %v6032_v20 = vld [vmem:[%s8646_s5 + $0x224] ss:$8 sps:$4 sm:$0xff]   ;;  %v6041_v49 = vld [vmem:[%s8646_s5 + $0x254] ss:$8 sps:$4 sm:$0xff]  }
 0x40f   : > { %3531 = vmatprep.mubr.bf16.mxu1 %v8674_v38  ;;  %3881 = vmatpush1.bf16.msra.mxu0 %v6049_v44  ;;  %v6052_v4 = vld [vmem:[%s8648_s7 + $0x20] sm:$0xff]   ;;  %v8679_v38 = vpack.c.bf16 %v7838_v32, %v7798_v25  ;;  %v6033_v44 = vld [vmem:[%s8646_s5 + $0x230] ss:$8 sps:$4 sm:$0xff]   ;;  %v6053_v7 = vld [vmem:[%s8648_s7 + $0x28] sm:$0xff]  }
 0x410   : > { %3882 = vmatprep.subr.bf16.mxu0 %v8675_v14  ;;  %v6036_v32 = vld [vmem:[%s8646_s5 + $0x240] ss:$8 sps:$4 sm:$0xff]   ;;  %v6056_v25 = vld [vmem:[%s8648_s7 + $0x30] sm:$0xff]  }
 0x413   : > { %3883 = vmatpush1.bf16.msra.mxu0 %v6050_v28  ;;  %v8681_v28 = vpack.c.bf16 %v7911_v54, %v7871_v8  ;;  %v6047_v54 = vld [vmem:[%s8646_s5 + $0x274] ss:$8 sps:$4 sm:$0xff]   ;;  %v6062_v8 = vld [vmem:[%s8648_s7 + $0x40] sm:$0xff]  }
 0x414   : > { %3884 = vmatprep.subr.bf16.mxu0 %v8675_v14 }
 0x416   : > { %3532 = vmatmul.mubr.bf16.vlgmr.msra.gmra.mrb[128].mxu1 %v8676_v56  ;;  %v6039_v56 = vld [vmem:[%s8646_s5 + $0x250] ss:$8 sps:$4 sm:$0xff]  }
 0x417   : > { %3541 = vmatprep.mubr.bf16.mxu1 %v8677_v57  ;;  %3613 = vmatpush1.bf16.msra.mxu1 %v6024_v1  ;;  %v6038_v1 = vld [vmem:[%s8646_s5 + $0x244] ss:$8 sps:$4 sm:$0xff]  }
 0x418   : > { %3614 = vmatprep.subr.bf16.mxu1 %v6029_v41  ;;  %3885 = vmatpush1.bf16.msra.mxu0 %v6051_v59  ;;  %v8680_v41 = vpack.c.bf16 %v7842_v10, %v7802_v43  ;;  %v6044_v57 = vld [vmem:[%s8646_s5 + $0x264] ss:$8 sps:$4 sm:$0xff]   ;;  %v6059_v10 = vld [vmem:[%s8648_s7 + $0x38] sm:$0xff]   ;;  %v6042_v43 = vld [vmem:[%s8646_s5 + $0x260] ss:$8 sps:$4 sm:$0xff]  }
 0x419   : > { %3886 = vmatprep.subr.bf16.mxu0 %v8675_v14  ;;  %v6045_v59 = vld [vmem:[%s8646_s5 + $0x270] ss:$8 sps:$4 sm:$0xff]  }
 0x41b   : > { %3615 = vmatpush1.bf16.msra.mxu1 %v6027_v16  ;;  %v8682_v16 = vpack.c.bf16 %v7915_v27, %v7875_v9  ;;  %v8684_v27 = vpack.c.bf16 %v7986_v2, %v7948_v23  ;;  %v2804_v9 = vrot.slane %v8061_v0, 3  ;;  %v8685_v2 = vpack.c.bf16 %v8033_v5, %v8007_v42  ;;  %v6054_v42 = vld [vmem:[%s8649_s8] sm:$0xff]   ;;  %v6057_v5 = vld [vmem:[%s8649_s8 + $0x10] sm:$0xff]  }
 0x41c   : > { %3616 = vmatprep.subr.bf16.mxu1 %v6032_v20  ;;  %3887 = vmatpush1.bf16.msra.mxu0 %v6052_v4  ;;  %v8683_v20 = vpack.c.bf16 %v7982_v45, %v7944_v3  ;;  %v2803_v45 = vrot.slane %v8047_v40, 3  ;;  %v2805_v23 = vrot.slane %v8085_v6, 3  ;;  %v8686_v40 = vrot.slane %v7649_v29, 3 }
 0x41d   : > { %3888 = vmatprep.subr.bf16.mxu0 %v8675_v14  ;;  %v8687_v29 = vpack.c.bf16 %v7707_v36, %v7671_v11  ;;  %v8688_v11 = vpack.c.bf16 %v7780_v51, %v7736_v50  ;;  %v6058_v36 = vld [vmem:[%s8649_s8 + $0x18] sm:$0xff]   ;;  %v8689_v50 = vpack.c.bf16 %v7853_v48, %v7809_v61  ;;  %v6061_v51 = vld [vmem:[%s8649_s8 + $0x28] sm:$0xff]   ;;  %v8690_v61 = vpack.c.bf16 %v7926_v34, %v7882_v22 }
 0x41e   : > { %3542 = vmatmul.mubr.bf16.gmra.mrb[132].mxu1 %v8678_v55  ;;  %v2807_v3 = vsel %vm692_vm1, %v2803_v45, %v2804_v9  ;;  %v2806_v58 = vsel %vm692_vm1, %v2804_v9, %v2805_v23  ;;  %v2821_v30 = vsel %vm692_vm1, %v2805_v23, %v8686_v40  ;;  %v6064_v48 = vld [vmem:[%s8649_s8 + $0x38] sm:$0xff]   ;;  %v8691_v0 = vpack.c.bf16 %v7994_v31, %v7955_v15  ;;  %v6065_v15 = vld [vmem:[%s8648_s7 + $0x48] sm:$0xff]   ;;  %v6066_v31 = vld [vmem:[%s8649_s8 + $0x40] sm:$0xff]  }
 0x41f   : > { %3551 = vmatprep.mubr.bf16.mxu1 %v8679_v38  ;;  %3617 = vmatpush1.bf16.msra.mxu1 %v6030_v13  ;;  %v2808_v13 = vsel %vm692_vm1, %v2802_v26, %v2803_v45  ;;  %v2892_v33 = vpack.c.bf16 %v2821_v30, %v2806_v58  ;;  %v6055_v26 = vld [vmem:[%s8649_s8 + $0x8] sm:$0xff]   ;;  %v8692_v22 = vpack.c.bf16 %v8041_v46, %v8011_v19  ;;  %v2974_v46 = vld [vmem:[%s8647_s6] sm:$0x3] }
 0x420   : > { %3618 = vmatprep.subr.bf16.mxu1 %v6035_v47  ;;  %3889 = vmatpush1.bf16.msra.mxu0 %v6053_v7  ;;  %v2887_v47 = vpack.c.bf16 %v2807_v3, %v2808_v13  ;;  %v8693_v34 = vpack.c.bf16 %v8077_v24, %v8058_v62  ;;  %v6067_v19 = vld [vmem:[%s8649_s8 + $0x48] sm:$0xff]   ;;  %v8694_v62 = vsub.s32 0, %v6375_v12  ;;  %v8695_v24 = vsub.s32 1, %v6375_v12 }
 0x421   : > { %3890 = vmatprep.subr.bf16.mxu0 %v8675_v14 }
 0x422   : > { %v8340_v17 = vrot.slane %v2974_v46, %v8694_v62 }
 0x423   : > { %3619 = vmatpush1.bf16.msra.mxu1 %v6033_v44 }
 0x424   : > { %3620 = vmatprep.subr.bf16.mxu1 %v6038_v1  ;;  %3891 = vmatpush1.bf16.msra.mxu0 %v6056_v25 }
 0x425   : > { %3892 = vmatprep.subr.bf16.mxu0 %v8675_v14 }
 0x426   : > { %3552 = vmatmul.mubr.bf16.gmra.mrb[136].mxu1 %v8680_v41 }
 0x427   : > { %3561 = vmatprep.mubr.bf16.mxu1 %v8681_v28  ;;  %3621 = vmatpush1.bf16.msra.mxu1 %v6036_v32 }
 0x428   : > { %3622 = vmatprep.subr.bf16.mxu1 %v6041_v49  ;;  %3893 = vmatpush1.bf16.msra.mxu0 %v6059_v10 }
 0x429   : > { %3894 = vmatprep.subr.bf16.mxu0 %v8675_v14 }
 0x42b   : > { %3623 = vmatpush1.bf16.msra.mxu1 %v6039_v56 }
 0x42c   : > { %3624 = vmatprep.subr.bf16.mxu1 %v6044_v57  ;;  %3895 = vmatpush1.bf16.msra.mxu0 %v6062_v8 }
 0x42d   : > { %3896 = vmatprep.subr.bf16.mxu0 %v8675_v14 }
 0x42e   : > { %3562 = vmatmul.mubr.bf16.gmra.mrb[140].mxu1 %v8682_v16 }
 0x42f   : > { %3571 = vmatprep.mubr.bf16.mxu1 %v8683_v20  ;;  %3625 = vmatpush1.bf16.msra.mxu1 %v6042_v43 }
 0x430   : > { %3626 = vmatprep.subr.bf16.mxu1 %v6047_v54  ;;  %3897 = vmatpush1.bf16.msra.mxu0 %v6065_v15 }
 0x433   : > { %3627 = vmatpush1.bf16.msra.mxu1 %v6045_v59 }
 0x434   : > { %4055 = vmatprep.subr.bf16.mxu1 %v8675_v14 }
 0x436   : > { %3572 = vmatmul.mubr.bf16.gmra.mrb[144].mxu1 %v8684_v27 }
 0x437   : > { %3581 = vmatprep.mubr.bf16.mxu1 %v2882_v52  ;;  %v6060_v52 = vld [vmem:[%s8649_s8 + $0x20] sm:$0xff]  }
 0x43e   : > { %3582 = vmatmul.mubr.bf16.gmra.mrb[148].mxu1 %v8685_v2 }
 0x43f   : > { %3591 = vmatprep.mubr.bf16.mxu1 %v2887_v47 }
 0x446   : > { %3592 = vmatmul.mubr.bf16.gmra.mrb[152].mxu1 %v2886_v37  ;;  %v8344_v37 = vrot.slane %v2974_v46, %v8695_v24 }
 0x447   : > { %3601 = vmatprep.mubr.bf16.mxu1 %v2892_v33 }
 0x44e   : > { %3602 = vmatmul.mubr.bf16.gmra.mrb[156].mxu1 %v2891_v53 }
 0x44f   : > { %3644 = vmatprep.mubr.bf16.mxu1 %v8675_v14 }
 0x456   : > { %3645 = vmatmul.mubr.bf16.vlgmr.msra.gmra.mrb[128].mxu1 %v8687_v29 }
 0x457   : > { %3654 = vmatprep.mubr.bf16.mxu1 %v8675_v14  ;;  %4056 = vmatpush1.bf16.msra.mxu1 %v6054_v42 }
 0x458   : > { %4057 = vmatprep.subr.bf16.mxu1 %v8675_v14 }
 0x45b   : > { %4058 = vmatpush1.bf16.msra.mxu1 %v6055_v26 }
 0x45c   : > { %4059 = vmatprep.subr.bf16.mxu1 %v8675_v14 }
 0x45e   : > { %3655 = vmatmul.mubr.bf16.gmra.mrb[132].mxu1 %v8688_v11 }
 0x45f   : > { %3664 = vmatprep.mubr.bf16.mxu1 %v8675_v14  ;;  %4060 = vmatpush1.bf16.msra.mxu1 %v6057_v5 }
 0x460   : > { %4061 = vmatprep.subr.bf16.mxu1 %v8675_v14 }
 0x463   : > { %4062 = vmatpush1.bf16.msra.mxu1 %v6058_v36 }
 0x464   : > { %4063 = vmatprep.subr.bf16.mxu1 %v8675_v14 }
 0x466   : > { %3665 = vmatmul.mubr.bf16.gmra.mrb[136].mxu1 %v8689_v50 }
 0x467   : > { %3674 = vmatprep.mubr.bf16.mxu1 %v8675_v14  ;;  %4064 = vmatpush1.bf16.msra.mxu1 %v6060_v52 }
 0x468   : > { %4065 = vmatprep.subr.bf16.mxu1 %v8675_v14 }
 0x46b   : > { %4066 = vmatpush1.bf16.msra.mxu1 %v6061_v51 }
 0x46c   : > { %4067 = vmatprep.subr.bf16.mxu1 %v8675_v14 }
 0x46e   : > { %3675 = vmatmul.mubr.bf16.gmra.mrb[140].mxu1 %v8690_v61 }
 0x46f   : > { %3684 = vmatprep.mubr.bf16.mxu1 %v8675_v14  ;;  %4068 = vmatpush1.bf16.msra.mxu1 %v6063_v18 }
 0x470   : > { %4069 = vmatprep.subr.bf16.mxu1 %v8675_v14 }
 0x473   : > { %4070 = vmatpush1.bf16.msra.mxu1 %v6064_v48 }
 0x474   : > { %4071 = vmatprep.subr.bf16.mxu1 %v8675_v14 }
 0x476   : > { %3685 = vmatmul.mubr.bf16.gmra.mrb[144].mxu1 %v8691_v0 }
 0x477   : > { %3694 = vmatprep.mubr.bf16.mxu1 %v8675_v14  ;;  %4072 = vmatpush1.bf16.msra.mxu1 %v6066_v31 }
 0x478   : > { %4073 = vmatprep.subr.bf16.mxu1 %v8675_v14 }
 0x47b   : > { %4074 = vmatpush1.bf16.msra.mxu1 %v6067_v19 }
 0x47e   : > { %3695 = vmatmul.mubr.bf16.gmra.mrb[148].mxu1 %v8692_v22 }
 0x47f   : > { %3704 = vmatprep.mubr.bf16.mxu1 %v8675_v14 }
 0x486   : > { %3705 = vmatmul.mubr.bf16.gmra.mrb[152].mxu1 %v8693_v34 }
 0x487   : > { %3714 = vmatprep.mubr.bf16.mxu1 %v8675_v14 }
 0x48e   : > { %3715 = vmatmul.mubr.bf16.gmra.mrb[156].mxu1 %v2893_v63 }
 0x529   : > { %v3646_v6 = vpop.f32.mrb[128].mxu1 }
 0x52a   : > { %v5520_v39 = vadd.f32 %v3646_v6, %v8340_v17  ;;  %v3648_v60 = vpop.f32.mrb[129].mxu1 }
 0x52b   : > { %v5521_v53 = vadd.f32 %v3648_v60, %v8344_v37  ;;  %v3650_v35 = vpop.f32.mrb[130].mxu1 }
 0x52c   : > { %v5522_v21 = vadd.f32 %v3650_v35, %v8340_v17  ;;  %v3652_v63 = vpop.f32.mrb[131].mxu1  ;;  %v3725_v4 = vmax.f32 %v5520_v39, 0.0 }
 0x52d   : > { %v5523_v14 = vadd.f32 %v3652_v63, %v8344_v37  ;;  %v3726_v38 = vmax.f32 %v5521_v53, 0.0 }
 0x52e   : > { %v3727_v55 = vmax.f32 %v5522_v21, 0.0 }
 0x52f   : > { %v3728_v44 = vmax.f32 %v5523_v14, 0.0 }
 0x530   : > { %v3757_v1 = vpack.c.bf16 %v3727_v55, %v3725_v4 }
 0x531   : > { %v3758_v12 = vpack.c.bf16 %v3728_v44, %v3726_v38  ;;  %v3656_v7 = vpop.f32.mrb[132].mxu1 }
 0x532   : > { %v5524_v32 = vadd.f32 %v3656_v7, %v8340_v17  ;;  %v3658_v49 = vpop.f32.mrb[133].mxu1 }
 0x533   : > { %v5525_v25 = vadd.f32 %v3658_v49, %v8344_v37  ;;  %v3660_v41 = vpop.f32.mrb[134].mxu1  ;;  %5242 = vmatprep.mubr.msk.bf16.mxu0 %vm3853_vm6, %v3758_v12  ;;  %5260 = vmatprep.mubr.msk.bf16.mxu1 %vm3853_vm6, %v3758_v12 }
 0x534   : > { %v5526_v28 = vadd.f32 %v3660_v41, %v8340_v17  ;;  %v3662_v56 = vpop.f32.mrb[135].mxu1  ;;  %3911 = vmatmul.mubr.bf16.vlgmr.msra.gmra.mrb[64].mxu0 %v3757_v1  ;;  %4088 = vmatmul.mubr.bf16.vlgmr.msra.gmra.mrb[160].mxu1 %v3757_v1  ;;  %v3729_v10 = vmax.f32 %v5524_v32, 0.0 }
 0x535   : > { %v5527_v57 = vadd.f32 %v3662_v56, %v8344_v37  ;;  %v3730_v54 = vmax.f32 %v5525_v25, 0.0 }
 0x536   : > { %v3731_v43 = vmax.f32 %v5526_v28, 0.0 }
 0x537   : > { %v3732_v8 = vmax.f32 %v5527_v57, 0.0 }
 0x538   : > { %v3759_v16 = vpack.c.bf16 %v3731_v43, %v3729_v10 }
 0x539   : > { %v3760_v20 = vpack.c.bf16 %v3732_v8, %v3730_v54  ;;  %v3666_v59 = vpop.f32.mrb[136].mxu1 }
 0x53a   : > { %v5528_v27 = vadd.f32 %v3666_v59, %v8340_v17  ;;  %v3668_v9 = vpop.f32.mrb[137].mxu1 }
 0x53b   : > { %v5529_v45 = vadd.f32 %v3668_v9, %v8344_v37  ;;  %v3670_v3 = vpop.f32.mrb[138].mxu1  ;;  %5243 = vmatprep.mubr.msk.bf16.mxu0 %vm3853_vm6, %v3760_v20  ;;  %5261 = vmatprep.mubr.msk.bf16.mxu1 %vm3853_vm6, %v3760_v20 }
 0x53c   : > { %v5530_v13 = vadd.f32 %v3670_v3, %v8340_v17  ;;  %v3672_v47 = vpop.f32.mrb[139].mxu1  ;;  %3919 = vmatmul.mubr.bf16.gmra.mrb[68].mxu0 %v3759_v16  ;;  %4096 = vmatmul.mubr.bf16.gmra.mrb[164].mxu1 %v3759_v16  ;;  %v3733_v23 = vmax.f32 %v5528_v27, 0.0 }
 0x53d   : > { %v5531_v2 = vadd.f32 %v3672_v47, %v8344_v37  ;;  %v3734_v40 = vmax.f32 %v5529_v45, 0.0 }
 0x53e   : > { %v3735_v58 = vmax.f32 %v5530_v13, 0.0 }
 0x53f   : > { %v3736_v30 = vmax.f32 %v5531_v2, 0.0 }
 0x540   : > { %v3761_v33 = vpack.c.bf16 %v3735_v58, %v3733_v23 }
 0x541   : > { %v3762_v42 = vpack.c.bf16 %v3736_v30, %v3734_v40  ;;  %v3676_v29 = vpop.f32.mrb[140].mxu1 }
 0x542   : > { %v5532_v26 = vadd.f32 %v3676_v29, %v8340_v17  ;;  %v3678_v5 = vpop.f32.mrb[141].mxu1 }
 0x543   : > { %v5533_v11 = vadd.f32 %v3678_v5, %v8344_v37  ;;  %v3680_v36 = vpop.f32.mrb[142].mxu1  ;;  %5244 = vmatprep.mubr.msk.bf16.mxu0 %vm3853_vm6, %v3762_v42  ;;  %5262 = vmatprep.mubr.msk.bf16.mxu1 %vm3853_vm6, %v3762_v42 }
 0x544   : > { %v5534_v52 = vadd.f32 %v3680_v36, %v8340_v17  ;;  %v3682_v50 = vpop.f32.mrb[143].mxu1  ;;  %3927 = vmatmul.mubr.bf16.gmra.mrb[72].mxu0 %v3761_v33  ;;  %4104 = vmatmul.mubr.bf16.gmra.mrb[168].mxu1 %v3761_v33  ;;  %v3737_v18 = vmax.f32 %v5532_v26, 0.0 }
 0x545   : > { %v5535_v51 = vadd.f32 %v3682_v50, %v8344_v37  ;;  %v3738_v48 = vmax.f32 %v5533_v11, 0.0 }
 0x546   : > { %v3739_v61 = vmax.f32 %v5534_v52, 0.0 }
 0x547   : > { %v3740_v0 = vmax.f32 %v5535_v51, 0.0 }
 0x548   : > { %v3763_v22 = vpack.c.bf16 %v3739_v61, %v3737_v18  ;;  %v6070_v18 = vld [vmem:[%s8650_s9 + $0x48] sm:$0xff]  }
 0x549   : > { %v3764_v34 = vpack.c.bf16 %v3740_v0, %v3738_v48  ;;  %v3686_v15 = vpop.f32.mrb[144].mxu1  ;;  %v6071_v61 = vld [vmem:[%s8650_s9 + $0x8] sm:$0xff]   ;;  %v6072_v48 = vld [vmem:[%s8650_s9 + $0x50] sm:$0xff]  }
 0x54a   : > { %v5536_v31 = vadd.f32 %v3686_v15, %v8340_v17  ;;  %v3688_v19 = vpop.f32.mrb[145].mxu1  ;;  %v6073_v0 = vld [vmem:[%s8650_s9 + $0x10] sm:$0xff]   ;;  %v6078_v15 = vld [vmem:[%s8650_s9 + $0x100] sm:$0xff]  }
 0x54b   : > { %v5537_v46 = vadd.f32 %v3688_v19, %v8344_v37  ;;  %v3690_v62 = vpop.f32.mrb[146].mxu1  ;;  %5245 = vmatprep.mubr.msk.bf16.mxu0 %vm3853_vm6, %v3764_v34  ;;  %5263 = vmatprep.mubr.msk.bf16.mxu1 %vm3853_vm6, %v3764_v34  ;;  %v6075_v34 = vld [vmem:[%s8650_s9 + $0x18] sm:$0xff]   ;;  %v6077_v19 = vld [vmem:[%s8650_s9 + $0x20] sm:$0xff]  }
 0x54c   : > { %v5538_v24 = vadd.f32 %v3690_v62, %v8340_v17  ;;  %v3692_v6 = vpop.f32.mrb[147].mxu1  ;;  %3935 = vmatmul.mubr.bf16.gmra.mrb[76].mxu0 %v3763_v22  ;;  %4112 = vmatmul.mubr.bf16.gmra.mrb[172].mxu1 %v3763_v22  ;;  %v3741_v60 = vmax.f32 %v5536_v31, 0.0  ;;  %v6074_v22 = vld [vmem:[%s8650_s9 + $0x58] sm:$0xff]   ;;  %v6076_v31 = vld [vmem:[%s8650_s9 + $0x60] sm:$0xff]   ;;  %v6079_v62 = vld [vmem:[%s8650_s9 + $0x108] sm:$0xff]  }
 0x54d   : > { %v5539_v39 = vadd.f32 %v3692_v6, %v8344_v37  ;;  %v3742_v35 = vmax.f32 %v5537_v46, 0.0  ;;  %v6210_v46 = vmov 0.0   ;;  %v6080_v6 = vld [vmem:[%s8650_s9 + $0x68] sm:$0xff]  }
 0x54e   : > { %v3743_v53 = vmax.f32 %v5538_v24, 0.0  ;;  %5400 = vmatprep.subr.bf16.mxu1 %v6210_v46  ;;  %v6082_v24 = vld [vmem:[%s8650_s9 + $0x110] sm:$0xff]  }
 0x54f   : > { %v3744_v21 = vmax.f32 %v5539_v39, 0.0  ;;  %5401 = vmatpush3.bf16.msra.mxu1 %v6078_v15  ;;  %v6081_v39 = vld [vmem:[%s8650_s9 + $0x28] sm:$0xff]  }
 0x550   : > { %v3765_v63 = vpack.c.bf16 %v3743_v53, %v3741_v60  ;;  %5402 = vmatprep.subr.bf16.mxu1 %v6210_v46  ;;  %v6083_v60 = vld [vmem:[%s8650_s9 + $0x118] sm:$0xff]   ;;  %v6086_v53 = vld [vmem:[%s8650_s9 + $0x120] sm:$0xff]  }
 0x551   : > { %v3766_v14 = vpack.c.bf16 %v3744_v21, %v3742_v35  ;;  %v3696_v4 = vpop.f32.mrb[148].mxu1  ;;  %v6084_v35 = vld [vmem:[%s8650_s9 + $0x70] sm:$0xff]  }
 0x552   : > { %v5540_v55 = vadd.f32 %v3696_v4, %v8340_v17  ;;  %v3698_v38 = vpop.f32.mrb[149].mxu1  ;;  %v6085_v21 = vld [vmem:[%s8650_s9 + $0x30] sm:$0xff]   ;;  %v6089_v4 = vld [vmem:[%s8650_s9 + $0x38] sm:$0xff]  }
 0x553   : > { %v5541_v44 = vadd.f32 %v3698_v38, %v8344_v37  ;;  %v3700_v1 = vpop.f32.mrb[150].mxu1  ;;  %5246 = vmatprep.mubr.msk.bf16.mxu0 %vm3853_vm6, %v3766_v14  ;;  %5264 = vmatprep.mubr.msk.bf16.mxu1 %vm3853_vm6, %v3766_v14  ;;  %v6088_v14 = vld [vmem:[%s8650_s9 + $0x78] sm:$0xff]  }
 0x554   : > { %v5542_v12 = vadd.f32 %v3700_v1, %v8340_v17  ;;  %v3702_v7 = vpop.f32.mrb[151].mxu1  ;;  %3943 = vmatmul.mubr.bf16.gmra.mrb[80].mxu0 %v3765_v63  ;;  %4120 = vmatmul.mubr.bf16.gmra.mrb[176].mxu1 %v3765_v63  ;;  %v3745_v49 = vmax.f32 %v5540_v55, 0.0  ;;  %v6087_v63 = vld [vmem:[%s8650_s9 + $0x128] sm:$0xff]   ;;  %v6090_v55 = vld [vmem:[%s8650_s9 + $0x130] sm:$0xff]   ;;  %v6091_v38 = vld [vmem:[%s8650_s9 + $0x138] sm:$0xff]  }
 0x555   : > { %v5543_v32 = vadd.f32 %v3702_v7, %v8344_v37  ;;  %v3746_v41 = vmax.f32 %v5541_v44, 0.0  ;;  %5403 = vmatpush3.bf16.msra.mxu1 %v6079_v62  ;;  %v6092_v44 = vld [vmem:[%s8650_s9 + $0xc0] sm:$0xff]  }
 0x556   : > { %v3747_v25 = vmax.f32 %v5542_v12, 0.0  ;;  %5404 = vmatprep.subr.bf16.mxu1 %v6210_v46 }
 0x557   : > { %v3748_v28 = vmax.f32 %v5543_v32, 0.0 }
 0x558   : > { %v3767_v56 = vpack.c.bf16 %v3747_v25, %v3745_v49 }
 0x559   : > { %v3768_v57 = vpack.c.bf16 %v3748_v28, %v3746_v41  ;;  %v3706_v10 = vpop.f32.mrb[152].mxu1  ;;  %5405 = vmatpush3.bf16.msra.mxu1 %v6082_v24 }
 0x55a   : > { %v5544_v43 = vadd.f32 %v3706_v10, %v8340_v17  ;;  %v3708_v54 = vpop.f32.mrb[153].mxu1  ;;  %5406 = vmatprep.subr.bf16.mxu1 %v6210_v46 }
 0x55b   : > { %v5545_v8 = vadd.f32 %v3708_v54, %v8344_v37  ;;  %v3710_v16 = vpop.f32.mrb[154].mxu1  ;;  %5247 = vmatprep.mubr.msk.bf16.mxu0 %vm3853_vm6, %v3768_v57  ;;  %5265 = vmatprep.mubr.msk.bf16.mxu1 %vm3853_vm6, %v3768_v57 }
 0x55c   : > { %v5546_v20 = vadd.f32 %v3710_v16, %v8340_v17  ;;  %v3712_v59 = vpop.f32.mrb[155].mxu1  ;;  %3951 = vmatmul.mubr.bf16.gmra.mrb[84].mxu0 %v3767_v56  ;;  %4128 = vmatmul.mubr.bf16.gmra.mrb[180].mxu1 %v3767_v56  ;;  %v3749_v9 = vmax.f32 %v5544_v43, 0.0 }
 0x55d   : > { %v5547_v27 = vadd.f32 %v3712_v59, %v8344_v37  ;;  %v3750_v3 = vmax.f32 %v5545_v8, 0.0  ;;  %5407 = vmatpush3.bf16.msra.mxu1 %v6083_v60 }
 0x55e   : > { %v3751_v45 = vmax.f32 %v5546_v20, 0.0  ;;  %5408 = vmatprep.subr.bf16.mxu1 %v6210_v46 }
 0x55f   : > { %v3752_v13 = vmax.f32 %v5547_v27, 0.0 }
 0x560   : > { %v3769_v47 = vpack.c.bf16 %v3751_v45, %v3749_v9 }
 0x561   : > { %v3770_v2 = vpack.c.bf16 %v3752_v13, %v3750_v3  ;;  %v3716_v23 = vpop.f32.mrb[156].mxu1  ;;  %5409 = vmatpush3.bf16.msra.mxu1 %v6086_v53 }
 0x562   : > { %v5548_v58 = vadd.f32 %v3716_v23, %v8340_v17  ;;  %v3718_v40 = vpop.f32.mrb[157].mxu1  ;;  %5410 = vmatprep.subr.bf16.mxu1 %v6210_v46 }
 0x563   : > { %v5549_v30 = vadd.f32 %v3718_v40, %v8344_v37  ;;  %v3720_v33 = vpop.f32.mrb[158].mxu1  ;;  %5248 = vmatprep.mubr.msk.bf16.mxu0 %vm3853_vm6, %v3770_v2  ;;  %5266 = vmatprep.mubr.msk.bf16.mxu1 %vm3853_vm6, %v3770_v2 }
 0x564   : > { %v5550_v42 = vadd.f32 %v3720_v33, %v8340_v17  ;;  %v3722_v29 = vpop.f32.mrb[159].mxu1  ;;  %3959 = vmatmul.mubr.bf16.gmra.mrb[88].mxu0 %v3769_v47  ;;  %4136 = vmatmul.mubr.bf16.gmra.mrb[184].mxu1 %v3769_v47  ;;  %v3753_v5 = vmax.f32 %v5548_v58, 0.0  ;;  %v6068_v17 = vld [vmem:[%s8650_s9 + $0x40] sm:$0xff]  }
 0x565   : > { %v5551_v26 = vadd.f32 %v3722_v29, %v8344_v37  ;;  %v3754_v36 = vmax.f32 %v5549_v30, 0.0  ;;  %v6069_v37 = vld [vmem:[%s8650_s9] sm:$0xff]   ;;  %5331 = vmatprep.subr.bf16.mxu0 %v6068_v17  ;;  %5411 = vmatpush3.bf16.msra.mxu1 %v6087_v63 }
 0x566   : > { %v3755_v11 = vmax.f32 %v5550_v42, 0.0  ;;  %5332 = vmatpush3.bf16.msra.mxu0 %v6069_v37  ;;  %5412 = vmatprep.subr.bf16.mxu1 %v6210_v46 }
 0x567   : > { %v3756_v52 = vmax.f32 %v5551_v26, 0.0  ;;  %5333 = vmatprep.subr.bf16.mxu0 %v6070_v18 }
 0x568   : > { %v3771_v50 = vpack.c.bf16 %v3755_v11, %v3753_v5 }
 0x569   : > { %v3772_v51 = vpack.c.bf16 %v3756_v52, %v3754_v36  ;;  %5413 = vmatpush3.bf16.msra.mxu1 %v6090_v55 }
 0x56a   : > { %5334 = vmatpush3.bf16.msra.mxu0 %v6071_v61  ;;  %5414 = vmatprep.subr.bf16.mxu1 %v6210_v46 }
 0x56b   : > { %5249 = vmatprep.mubr.msk.bf16.mxu0 %vm3853_vm6, %v3772_v51  ;;  %5267 = vmatprep.mubr.msk.bf16.mxu1 %vm3853_vm6, %v3772_v51 }
 0x56c   : > { %3967 = vmatmul.mubr.bf16.gmra.mrb[92].mxu0 %v3771_v50  ;;  %4144 = vmatmul.mubr.bf16.gmra.mrb[188].mxu1 %v3771_v50 }
 0x56d   : > { %5335 = vmatprep.subr.bf16.mxu0 %v6072_v48  ;;  %5415 = vmatpush3.bf16.msra.mxu1 %v6091_v38 }
 0x56e   : > { %5336 = vmatpush3.bf16.msra.mxu0 %v6073_v0  ;;  %5440 = vmatprep.subr.bf16.mxu1 %v6210_v46 }
 0x56f   : > { %5337 = vmatprep.subr.bf16.mxu0 %v6074_v22  ;;  %5416 = vmatprep.mubr.msk.bf16.mxu1 %vm6211_vm7, %v6210_v46 }
 0x572   : > { %5338 = vmatpush3.bf16.msra.mxu0 %v6075_v34 }
 0x573   : > { %5339 = vmatprep.subr.bf16.mxu0 %v6076_v31 }
 0x576   : > { %5340 = vmatpush3.bf16.msra.mxu0 %v6077_v19 }
 0x577   : > { %5341 = vmatprep.subr.bf16.mxu0 %v6080_v6 }
 0x57a   : > { %5342 = vmatpush3.bf16.msra.mxu0 %v6081_v39 }
 0x57b   : > { %5343 = vmatprep.subr.bf16.mxu0 %v6084_v35 }
 0x57e   : > { %5344 = vmatpush3.bf16.msra.mxu0 %v6085_v21 }
 0x57f   : > { %5345 = vmatprep.subr.bf16.mxu0 %v6088_v14 }
 0x582   : > { %5346 = vmatpush3.bf16.msra.mxu0 %v6089_v4 }
 0x583   : > { %5353 = vmatprep.subr.bf16.mxu0 %v6092_v44 }
 0x607   : > { %v3912_v1 = vpop.f32.mrb[64].mxu0  ;;  %v4089_v12 = vpop.f32.mrb[160].mxu1 }
 0x608   : > { %v4152_v7 = vmax.f32 %v3912_v1, %v4089_v12  ;;  %v3914_v32 = vpop.f32.mrb[65].mxu0  ;;  %v4091_v49 = vpop.f32.mrb[161].mxu1 }
 0x609   : > { %v3915_v25 = vpop.f32.mrb[66].mxu0  ;;  %v4092_v41 = vpop.f32.mrb[162].mxu1 }
 0x60a   : > { %4168 = vst [vmem:[#allocation3] sm:$0xff] %v4152_v7  ;;  %v4153_v28 = vmax.f32 %v3915_v25, %v4092_v41  ;;  %v3917_v56 = vpop.f32.mrb[67].mxu0  ;;  %v4094_v57 = vpop.f32.mrb[163].mxu1 }
 0x60c   : > { %4169 = vst [vmem:[#allocation3 + $0x8] sm:$0xff] %v4153_v28 }
 0x60f   : > { %v3920_v10 = vpop.f32.mrb[68].mxu0  ;;  %v4097_v43 = vpop.f32.mrb[164].mxu1 }
 0x610   : > { %v4154_v54 = vmax.f32 %v3920_v10, %v4097_v43  ;;  %v3922_v8 = vpop.f32.mrb[69].mxu0  ;;  %v4099_v16 = vpop.f32.mrb[165].mxu1 }
 0x611   : > { %v3923_v20 = vpop.f32.mrb[70].mxu0  ;;  %v4100_v59 = vpop.f32.mrb[166].mxu1 }
 0x612   : > { %4170 = vst [vmem:[#allocation3 + $0x10] sm:$0xff] %v4154_v54  ;;  %v4155_v27 = vmax.f32 %v3923_v20, %v4100_v59  ;;  %v3925_v9 = vpop.f32.mrb[71].mxu0  ;;  %v4102_v45 = vpop.f32.mrb[167].mxu1 }
 0x614   : > { %4171 = vst [vmem:[#allocation3 + $0x18] sm:$0xff] %v4155_v27 }
 0x617   : > { %v3928_v3 = vpop.f32.mrb[72].mxu0  ;;  %v4105_v13 = vpop.f32.mrb[168].mxu1 }
 0x618   : > { %v4156_v47 = vmax.f32 %v3928_v3, %v4105_v13  ;;  %v3930_v2 = vpop.f32.mrb[73].mxu0  ;;  %v4107_v23 = vpop.f32.mrb[169].mxu1 }
 0x619   : > { %v3931_v58 = vpop.f32.mrb[74].mxu0  ;;  %v4108_v40 = vpop.f32.mrb[170].mxu1  ;;  %v4201_v13 = vld [vmem:[#allocation3 + $0x2] ss:$16 sm:$0x3] }
 0x61a   : > { %4172 = vst [vmem:[#allocation3 + $0x20] sm:$0xff] %v4156_v47  ;;  %v4157_v30 = vmax.f32 %v3931_v58, %v4108_v40  ;;  %v3933_v33 = vpop.f32.mrb[75].mxu0  ;;  %v4110_v42 = vpop.f32.mrb[171].mxu1  ;;  %v4209_v47 = vld [vmem:[#allocation3 + $0x3] ss:$16 sm:$0x3] }
 0x61b   : > { %v4184_v58 = vld [vmem:[#allocation3] ss:$16 sm:$0x3]  ;;  %v4192_v40 = vld [vmem:[#allocation3 + $0x1] ss:$16 sm:$0x3] }
 0x61c   : > { %4173 = vst [vmem:[#allocation3 + $0x28] sm:$0xff] %v4157_v30 }
 0x61f   : > { %v3936_v29 = vpop.f32.mrb[76].mxu0  ;;  %v4113_v26 = vpop.f32.mrb[172].mxu1 }
 0x620   : > { %v4158_v5 = vmax.f32 %v3936_v29, %v4113_v26  ;;  %v3938_v11 = vpop.f32.mrb[77].mxu0  ;;  %v4115_v36 = vpop.f32.mrb[173].mxu1  ;;  %v4235_v26 = vld [vmem:[#allocation3 + $0x6] ss:$16 sm:$0x3] }
 0x621   : > { %v3939_v52 = vpop.f32.mrb[78].mxu0  ;;  %v4116_v50 = vpop.f32.mrb[174].mxu1 }
 0x622   : > { %4174 = vst [vmem:[#allocation3 + $0x30] sm:$0xff] %v4158_v5  ;;  %v4159_v51 = vmax.f32 %v3939_v52, %v4116_v50  ;;  %v3941_v17 = vpop.f32.mrb[79].mxu0  ;;  %v4118_v37 = vpop.f32.mrb[175].mxu1  ;;  %v4243_v5 = vld [vmem:[#allocation3 + $0x7] ss:$16 sm:$0x3] }
 0x623   : > { %v4260_v17 = vld [vmem:[#allocation3 + $0x9] ss:$16 sm:$0x3] }
 0x624   : > { %4175 = vst [vmem:[#allocation3 + $0x38] sm:$0xff] %v4159_v51  ;;  %v4252_v51 = vld [vmem:[#allocation3 + $0x8] ss:$16 sm:$0x3] }
 0x627   : > { %v3944_v18 = vpop.f32.mrb[80].mxu0  ;;  %v4121_v61 = vpop.f32.mrb[176].mxu1 }
 0x628   : > { %v4160_v48 = vmax.f32 %v3944_v18, %v4121_v61  ;;  %v3946_v0 = vpop.f32.mrb[81].mxu0  ;;  %v4123_v22 = vpop.f32.mrb[177].mxu1 }
 0x629   : > { %v3947_v34 = vpop.f32.mrb[82].mxu0  ;;  %v4124_v15 = vpop.f32.mrb[178].mxu1  ;;  %v4202_v16 = vld [vmem:[#allocation3 + $0x2] ss:$16 sm:$0xc] }
 0x62a   : > { %4176 = vst [vmem:[#allocation3 + $0x40] sm:$0xff] %v4160_v48  ;;  %v4161_v31 = vmax.f32 %v3947_v34, %v4124_v15  ;;  %v3949_v19 = vpop.f32.mrb[83].mxu0  ;;  %v4126_v62 = vpop.f32.mrb[179].mxu1  ;;  %v4210_v20 = vld [vmem:[#allocation3 + $0x3] ss:$16 sm:$0xc]  ;;  %v4203_v11 = vor.u32 %v4202_v16, %v4201_v13 }
 0x62b   : > { %v4185_v45 = vld [vmem:[#allocation3] ss:$16 sm:$0xc]  ;;  %v4193_v3 = vld [vmem:[#allocation3 + $0x1] ss:$16 sm:$0xc]  ;;  %v4211_v36 = vor.u32 %v4210_v20, %v4209_v47 }
 0x62c   : > { %4177 = vst [vmem:[#allocation3 + $0x48] sm:$0xff] %v4161_v31  ;;  %v4236_v2 = vld [vmem:[#allocation3 + $0x6] ss:$16 sm:$0xc]  ;;  %v4186_v37 = vor.u32 %v4185_v45, %v4184_v58  ;;  %v4194_v18 = vor.u32 %v4193_v3, %v4192_v40  ;;  %v6095_v3 = vld [vmem:[%s8650_s9 + $0x88] sm:$0xff]  }
 0x62d   : > { %v4244_v23 = vld [vmem:[#allocation3 + $0x7] ss:$16 sm:$0xc]  ;;  %v4253_v30 = vld [vmem:[#allocation3 + $0x8] ss:$16 sm:$0xc]  ;;  %v4237_v34 = vor.u32 %v4236_v2, %v4235_v26 }
 0x62e   : > { %v4261_v33 = vld [vmem:[#allocation3 + $0x9] ss:$16 sm:$0xc]  ;;  %v4245_v15 = vor.u32 %v4244_v23, %v4243_v5  ;;  %v6096_v13 = vld [vmem:[%s8650_s9 + $0xd0] sm:$0xff]   ;;  %v6100_v58 = vld [vmem:[%s8650_s9 + $0xe0] sm:$0xff]  }
 0x62f   : > { %v3952_v24 = vpop.f32.mrb[84].mxu0  ;;  %v4129_v6 = vpop.f32.mrb[180].mxu1  ;;  %v6097_v47 = vld [vmem:[%s8650_s9 + $0x90] sm:$0xff]   ;;  %v6098_v2 = vld [vmem:[%s8650_s9 + $0xd8] sm:$0xff]   ;;  %v6101_v40 = vld [vmem:[%s8650_s9 + $0xa0] sm:$0xff]  }
 0x630   : > { %v4162_v39 = vmax.f32 %v3952_v24, %v4129_v6  ;;  %v3954_v60 = vpop.f32.mrb[85].mxu0  ;;  %v4131_v53 = vpop.f32.mrb[181].mxu1  ;;  %v6099_v23 = vld [vmem:[%s8650_s9 + $0x98] sm:$0xff]   ;;  %v4218_v26 = vld [vmem:[#allocation3 + $0x4] ss:$16 sm:$0x3] }
 0x631   : > { %v3955_v35 = vpop.f32.mrb[86].mxu0  ;;  %v4132_v21 = vpop.f32.mrb[182].mxu1  ;;  %v4254_v60 = vor.u32 %v4253_v30, %v4252_v51  ;;  %v4262_v53 = vor.u32 %v4261_v33, %v4260_v17  ;;  %v6102_v30 = vld [vmem:[%s8650_s9 + $0xe8] sm:$0xff]   ;;  %v4226_v5 = vld [vmem:[#allocation3 + $0x5] ss:$16 sm:$0x3] }
 0x632   : > { %4178 = vst [vmem:[#allocation3 + $0x50] sm:$0xff] %v4162_v39  ;;  %v4163_v63 = vmax.f32 %v3955_v35, %v4132_v21  ;;  %v3957_v14 = vpop.f32.mrb[87].mxu0  ;;  %v4134_v4 = vpop.f32.mrb[183].mxu1  ;;  %v6103_v33 = vld [vmem:[%s8650_s9 + $0xa8] sm:$0xff]  }
 0x634   : > { %4179 = vst [vmem:[#allocation3 + $0x58] sm:$0xff] %v4163_v63 }
 0x637   : > { %v3960_v55 = vpop.f32.mrb[88].mxu0  ;;  %v4137_v38 = vpop.f32.mrb[184].mxu1 }
 0x638   : > { %v4164_v44 = vmax.f32 %v3960_v55, %v4137_v38  ;;  %v3962_v1 = vpop.f32.mrb[89].mxu0  ;;  %v4139_v12 = vpop.f32.mrb[185].mxu1 }
 0x639   : > { %v3963_v7 = vpop.f32.mrb[90].mxu0  ;;  %v4140_v32 = vpop.f32.mrb[186].mxu1  ;;  %v4204_v42 = vld [vmem:[#allocation3 + $0x2] ss:$16 sm:$0x30] }
 0x63a   : > { %4180 = vst [vmem:[#allocation3 + $0x60] sm:$0xff] %v4164_v44  ;;  %v4165_v49 = vmax.f32 %v3963_v7, %v4140_v32  ;;  %v3965_v25 = vpop.f32.mrb[91].mxu0  ;;  %v4142_v41 = vpop.f32.mrb[187].mxu1  ;;  %v4212_v29 = vld [vmem:[#allocation3 + $0x3] ss:$16 sm:$0x30]  ;;  %v4205_v0 = vor.u32 %v4204_v42, %v4203_v11 }
 0x63b   : > { %v4187_v52 = vld [vmem:[#allocation3] ss:$16 sm:$0x30]  ;;  %v4195_v50 = vld [vmem:[#allocation3 + $0x1] ss:$16 sm:$0x30]  ;;  %v4213_v22 = vor.u32 %v4212_v29, %v4211_v36 }
 0x63c   : > { %4181 = vst [vmem:[#allocation3 + $0x68] sm:$0xff] %v4165_v49  ;;  %v4238_v61 = vld [vmem:[#allocation3 + $0x6] ss:$16 sm:$0x30]  ;;  %v4188_v6 = vor.u32 %v4187_v52, %v4186_v37  ;;  %v4196_v39 = vor.u32 %v4195_v50, %v4194_v18 }
 0x63d   : > { %v4246_v48 = vld [vmem:[#allocation3 + $0x7] ss:$16 sm:$0x30]  ;;  %v4255_v31 = vld [vmem:[#allocation3 + $0x8] ss:$16 sm:$0x30]  ;;  %v4239_v4 = vor.u32 %v4238_v61, %v4237_v34 }
 0x63e   : > { %v4263_v19 = vld [vmem:[#allocation3 + $0x9] ss:$16 sm:$0x30]  ;;  %v4247_v55 = vor.u32 %v4246_v48, %v4245_v15  ;;  %v4256_v7 = vor.u32 %v4255_v31, %v4254_v60  ;;  %v4219_v42 = vld [vmem:[#allocation3 + $0x4] ss:$16 sm:$0xc] }
 0x63f   : > { %v3968_v28 = vpop.f32.mrb[92].mxu0  ;;  %v4145_v56 = vpop.f32.mrb[188].mxu1  ;;  %v4264_v32 = vor.u32 %v4263_v19, %v4262_v53  ;;  %v4227_v29 = vld [vmem:[#allocation3 + $0x5] ss:$16 sm:$0xc]  ;;  %v4220_v50 = vor.u32 %v4219_v42, %v4218_v26  ;;  %v6107_v15 = vld [vmem:[%s8650_s9 + $0xb8] sm:$0xff]  }
 0x640   : > { %v4166_v57 = vmax.f32 %v3968_v28, %v4145_v56  ;;  %v3970_v10 = vpop.f32.mrb[93].mxu0  ;;  %v4147_v43 = vpop.f32.mrb[189].mxu1  ;;  %v4221_v11 = vld [vmem:[#allocation3 + $0x4] ss:$16 sm:$0x30]  ;;  %v4228_v51 = vor.u32 %v4227_v29, %v4226_v5  ;;  %v6113_v53 = vld [vmem:[%s8652_s11 + $0x28] sm:$0xff]  }
 0x641   : > { %v3971_v54 = vpop.f32.mrb[94].mxu0  ;;  %v4148_v8 = vpop.f32.mrb[190].mxu1  ;;  %v4229_v36 = vld [vmem:[#allocation3 + $0x5] ss:$16 sm:$0x30]  ;;  %v4222_v18 = vor.u32 %v4221_v11, %v4220_v50 }
 0x642   : > { %4182 = vst [vmem:[#allocation3 + $0x70] sm:$0xff] %v4166_v57  ;;  %v4167_v59 = vmax.f32 %v3971_v54, %v4148_v8  ;;  %v3973_v27 = vpop.f32.mrb[95].mxu0  ;;  %v4150_v9 = vpop.f32.mrb[191].mxu1  ;;  %v6093_v8 = vld [vmem:[%s8650_s9 + $0x80] sm:$0xff]   ;;  %v6104_v52 = vld [vmem:[%s8650_s9 + $0xf0] sm:$0xff]   ;;  %v4230_v61 = vor.u32 %v4229_v36, %v4228_v51 }
 0x643   : > { %v6094_v27 = vld [vmem:[%s8650_s9 + $0xc8] sm:$0xff]   ;;  %v6105_v48 = vld [vmem:[%s8650_s9 + $0xb0] sm:$0xff]   ;;  %v6112_v60 = vld [vmem:[%s8652_s11 + $0x20] sm:$0xff]  }
 0x644   : > { %4183 = vst [vmem:[#allocation3 + $0x78] sm:$0xff] %v4167_v59  ;;  %v5319_v42 = vld [vmem:[%s8655_s14] ss:$0 sm:$0xff] }
 0x649   : > { %v4206_v62 = vld [vmem:[#allocation3 + $0x2] ss:$16 sm:$0xc0]  ;;  %v4214_v24 = vld [vmem:[#allocation3 + $0x3] ss:$16 sm:$0xc0] }
 0x64a   : > { %v4207_v35 = vor.u32 %v4206_v62, %v4205_v0  ;;  %v4215_v21 = vor.u32 %v4214_v24, %v4213_v22  ;;  %v4189_v63 = vld [vmem:[#allocation3] ss:$16 sm:$0xc0]  ;;  %v4197_v14 = vld [vmem:[#allocation3 + $0x1] ss:$16 sm:$0xc0] }
 0x64b   : > { %v4190_v38 = vor.u32 %v4189_v63, %v4188_v6  ;;  %v4198_v44 = vor.u32 %v4197_v14, %v4196_v39  ;;  %v4240_v1 = vld [vmem:[#allocation3 + $0x6] ss:$16 sm:$0xc0]  ;;  %v4248_v12 = vld [vmem:[#allocation3 + $0x7] ss:$16 sm:$0xc0] }
 0x64c   : > { %v4216_v49 = vmax.f32 %v4207_v35, %v4215_v21  ;;  %v4241_v25 = vor.u32 %v4240_v1, %v4239_v4  ;;  %v4249_v41 = vor.u32 %v4248_v12, %v4247_v55  ;;  %v4257_v28 = vld [vmem:[#allocation3 + $0x8] ss:$16 sm:$0xc0]  ;;  %v4265_v56 = vld [vmem:[#allocation3 + $0x9] ss:$16 sm:$0xc0] }
 0x64d   : > { %v4199_v57 = vmax.f32 %v4190_v38, %v4198_v44  ;;  %v4258_v10 = vor.u32 %v4257_v28, %v4256_v7  ;;  %v4266_v43 = vor.u32 %v4265_v56, %v4264_v32  ;;  %v4223_v17 = vld [vmem:[#allocation3 + $0x4] ss:$16 sm:$0xc0]  ;;  %v4231_v37 = vld [vmem:[#allocation3 + $0x5] ss:$16 sm:$0xc0] }
 0x64e   : > { %v4269_v54 = vpack.c.bf16 %v4216_v49, %v4216_v49  ;;  %v4250_v16 = vmax.f32 %v4241_v25, %v4249_v41  ;;  %v6106_v0 = vld [vmem:[%s8650_s9 + $0xf8] sm:$0xff]   ;;  %v4224_v22 = vor.u32 %v4223_v17, %v4222_v18  ;;  %v4232_v34 = vor.u32 %v4231_v37, %v4230_v61  ;;  %v6108_v62 = vld [vmem:[%s8652_s11] sm:$0xff]   ;;  %v6109_v24 = vld [vmem:[%s8652_s11 + $0x8] sm:$0xff]  }
 0x64f   : > { %v4268_v20 = vpack.c.bf16 %v4199_v57, %v4199_v57  ;;  %v4267_v59 = vmax.f32 %v4258_v10, %v4266_v43  ;;  %v6110_v6 = vld [vmem:[%s8652_s11 + $0x10] sm:$0xff]   ;;  %v6111_v39 = vld [vmem:[%s8652_s11 + $0x18] sm:$0xff]   ;;  %v6116_v14 = vld [vmem:[%s8654_s13] sm:$0xff]  }
 0x650   : > { %4632 = vmatprep.mubr.bf16.mxu0 %v4269_v54  ;;  %v4271_v9 = vpack.c.bf16 %v4250_v16, %v4250_v16  ;;  %v4233_v31 = vmax.f32 %v4224_v22, %v4232_v34  ;;  %v6114_v35 = vld [vmem:[%s8652_s11 + $0x30] sm:$0xff]   ;;  %v6115_v21 = vld [vmem:[%s8652_s11 + $0x38] ss:$0 sps:$4 sm:$0xff]   ;;  %v6117_v4 = vld [vmem:[%s8654_s13 + $0x8] sm:$0xff]  }
 0x651   : > { %4633 = vmatmul.mubr.bf16.vlgmr.msra.gmra.mrb[96].mxu0 %v4268_v20  ;;  %v4272_v45 = vpack.c.bf16 %v4267_v59, %v4267_v59  ;;  %v4794_v63 = vsel %vm2170_vm4, %v6115_v21, 0  ;;  %v6118_v55 = vld [vmem:[%s8654_s13 + $0x10] sm:$0xff]   ;;  %v6119_v38 = vld [vmem:[%s8654_s13 + $0x18] sm:$0xff]   ;;  %v5268_v56 = vld [vmem:[%s8651_s10] ss:$0 sm:$0xff] }
 0x652   : > { %5354 = vmatpush3.bf16.msra.mxu0 %v6093_v8  ;;  %4672 = vmatprep.mubr.bf16.mxu0 %v4271_v9  ;;  %v4270_v19 = vpack.c.bf16 %v4233_v31, %v4233_v31 }
 0x653   : > { %5417 = vmatmul.mubr.bf16.vlgmr.msra.gmra.mrb[192].mxu1 %v4272_v45  ;;  %5355 = vmatprep.subr.bf16.mxu0 %v6094_v27  ;;  %v6120_v45 = vld [vmem:[%s8654_s13 + $0x20] sm:$0xff]  }
 0x654   : > { %5452 = vmatprep.mubr.msk.bf16.mxu1 %vm6211_vm7, %v6210_v46  ;;  %5441 = vmatpush3.bf16.msra.mxu1 %v6116_v14 }
 0x655   : > { %5442 = vmatprep.subr.bf16.mxu1 %v6210_v46 }
 0x656   : > { %5356 = vmatpush3.bf16.msra.mxu0 %v6095_v3  ;;  %v6121_v3 = vld [vmem:[%s8654_s13 + $0x28] ss:$0 sps:$4 sm:$0x33]  }
 0x657   : > { %5357 = vmatprep.subr.bf16.mxu0 %v6096_v13  ;;  %v4895_v13 = vsel %vm4893_vm9, %v6121_v3, 0 }
 0x658   : > { %5443 = vmatpush3.bf16.msra.mxu1 %v6117_v4 }
 0x659   : > { %5444 = vmatprep.subr.bf16.mxu1 %v6210_v46 }
 0x65a   : > { %5358 = vmatpush3.bf16.msra.mxu0 %v6097_v47  ;;  %v5309_v47 = vld [vmem:[%s8653_s12] ss:$0 sm:$0xff] }
 0x65b   : > { %5359 = vmatprep.subr.bf16.mxu0 %v6098_v2 }
 0x65c   : > { %5445 = vmatpush3.bf16.msra.mxu1 %v6118_v55 }
 0x65d   : > { %5446 = vmatprep.subr.bf16.mxu1 %v6210_v46 }
 0x65e   : > { %5360 = vmatpush3.bf16.msra.mxu0 %v6099_v23 }
 0x65f   : > { %5361 = vmatprep.subr.bf16.mxu0 %v6100_v58 }
 0x660   : > { %5447 = vmatpush3.bf16.msra.mxu1 %v6119_v38 }
 0x661   : > { %5448 = vmatprep.subr.bf16.mxu1 %v6210_v46 }
 0x662   : > { %5362 = vmatpush3.bf16.msra.mxu0 %v6101_v40 }
 0x663   : > { %5363 = vmatprep.subr.bf16.mxu0 %v6102_v30 }
 0x664   : > { %5449 = vmatpush3.bf16.msra.mxu1 %v6120_v45 }
 0x665   : > { %5450 = vmatprep.subr.bf16.mxu1 %v6210_v46 }
 0x666   : > { %5364 = vmatpush3.bf16.msra.mxu0 %v6103_v33 }
 0x667   : > { %5365 = vmatprep.subr.bf16.mxu0 %v6104_v52 }
 0x668   : > { %5451 = vmatpush3.bf16.msra.mxu1 %v4895_v13 }
 0x66a   : > { %5366 = vmatpush3.bf16.msra.mxu0 %v6105_v48 }
 0x66b   : > { %5367 = vmatprep.subr.bf16.mxu0 %v6106_v0 }
 0x66e   : > { %5368 = vmatpush3.bf16.msra.mxu0 %v6107_v15 }
 0x66f   : > { %5420 = vmatprep.subr.bf16.mxu0 %v6210_v46 }
 0x671   : > { %4673 = vmatmul.mubr.bf16.vlgmr.msra.gmra.mrb[100].mxu0 %v4270_v19 }
 0x672   : > { %5436 = vmatprep.mubr.msk.bf16.mxu0 %vm6211_vm7, %v6210_v46  ;;  %5421 = vmatpush3.bf16.msra.mxu0 %v6108_v62 }
 0x673   : > { %5422 = vmatprep.subr.bf16.mxu0 %v6210_v46 }
 0x676   : > { %5423 = vmatpush3.bf16.msra.mxu0 %v6109_v24 }
 0x677   : > { %5424 = vmatprep.subr.bf16.mxu0 %v6210_v46 }
 0x67a   : > { %5425 = vmatpush3.bf16.msra.mxu0 %v6110_v6 }
 0x67b   : > { %5426 = vmatprep.subr.bf16.mxu0 %v6210_v46 }
 0x67e   : > { %5427 = vmatpush3.bf16.msra.mxu0 %v6111_v39 }
 0x67f   : > { %5428 = vmatprep.subr.bf16.mxu0 %v6210_v46 }
 0x682   : > { %5429 = vmatpush3.bf16.msra.mxu0 %v6112_v60 }
 0x683   : > { %5430 = vmatprep.subr.bf16.mxu0 %v6210_v46 }
 0x686   : > { %5431 = vmatpush3.bf16.msra.mxu0 %v6113_v53 }
 0x687   : > { %5432 = vmatprep.subr.bf16.mxu0 %v6210_v46 }
 0x68a   : > { %5433 = vmatpush3.bf16.msra.mxu0 %v6114_v35 }
 0x68b   : > { %5434 = vmatprep.subr.bf16.mxu0 %v6210_v46 }
 0x68e   : > { %5435 = vmatpush3.bf16.msra.mxu0 %v4794_v63 }
 0x724   : > { %v5347_v44 = vpop.f32.mrb[96].mxu0 }
 0x725   : > { %v5348_v1 = vpop.f32.mrb[97].mxu0 }
 0x726   : > { %v5349_v12 = vadd.f32 %v5348_v1, %v5347_v44  ;;  %v4714_v7 = vpop.f32.mrb[192].mxu1  ;;  %v5350_v32 = vpop.f32.mrb[98].mxu0 }
 0x727   : > { %v5418_v49 = vpop.f32.mrb[193].mxu1  ;;  %v5351_v25 = vpop.f32.mrb[99].mxu0 }
 0x728   : > { %v4717_v41 = vpop.f32.mrb[194].mxu1  ;;  %v4635_v43 = vadd.f32 %v5349_v12, %v5268_v56 }
 0x729   : > { %v5419_v28 = vpop.f32.mrb[195].mxu1 }
 0x744   : > { %v5369_v57 = vpop.f32.mrb[100].mxu0 }
 0x745   : > { %v5370_v10 = vpop.f32.mrb[101].mxu0 }
 0x746   : > { %v5371_v54 = vadd.f32 %v5370_v10, %v5369_v57  ;;  %v5372_v8 = vpop.f32.mrb[102].mxu0 }
 0x747   : > { %v5373_v16 = vpop.f32.mrb[103].mxu0 }
 0x748   : > { %v4675_v20 = vadd.f32 %v5371_v54, %v4635_v43 }
 0x74a   : > { %v4715_v59 = vadd.f32 %v4714_v7, %v4675_v20 }
 0x74c   : > { %v4720_v27 = vmax.f32 %v4715_v59, 0.0 }
 0x74e   : > { %v4721_v9 = vpack.c.bf16 %v4720_v27, %v4720_v27 }
 0x750   : > { %5437 = vmatmul.mubr.msk.bf16.vlgmr.msra.gmra.mrb[104].mxu0 %vm4789_vm8, %v4721_v9 }
 0x823   : > { %v4830_v2 = vpop.f32.mrb[104].mxu0 }
 0x824   : > { %v4831_v23 = vadd.f32 %v5309_v47, %v4830_v2  ;;  %v5438_v58 = vpop.f32.mrb[105].mxu0 }
 0x825   : > { %v4833_v40 = vpop.f32.mrb[106].mxu0 }
 0x826   : > { %v4836_v30 = vmax.f32 %v4831_v23, 0.0  ;;  %v5439_v33 = vpop.f32.mrb[107].mxu0 }
 0x828   : > { %v4837_v46 = vpack.c.bf16 %v4836_v30, %v4836_v30 }
 0x82a   : > { %5453 = vmatmul.mubr.msk.bf16.vlgmr.msra.gmra.mrb[196].mxu1 %vm4889_vm10, %v4837_v46 }
 0x8fd   : > { %v4931_v29 = vpop.f32.mrb[196].mxu1 }
 0x8fe   : > { %v4932_v26 = vadd.f32 %v5319_v42, %v4931_v29  ;;  %v5454_v5 = vpop.f32.mrb[197].mxu1 }
 0x8ff   : > { %v4934_v11 = vpop.f32.mrb[198].mxu1 }
 0x900   : > { %4937 = vst [vmem:[%s488_s29] sm:$0xff] %v4932_v26  ;;  %v5455_v36 = vpop.f32.mrb[199].mxu1 }
 0x901   : > { %6158 = shalt.err (!%p6155_p3)
}
 0x902   : > { %s6159_s23 = scalar_lea.hbm %s8599_s16, 128  ;;  %s6163_s26 = scalar_lea.hbm %s8656_s15, 256 }
 0x903   : > { %p6160_p4 = scmp.ne.s32.totalorder %s8599_s16, %s6159_s23  ;;  %p6164_p9 = scmp.lt.u32.totalorder %s8599_s16, %s8656_s15 }
 0x904   : > { %p6165_p10 = scmp.lt.u32.totalorder %s6163_s26, %s6159_s23  ;;  %p6167_p12 = scmp.lt.u32.totalorder %s6159_s23, %s8599_s16 }
 0x905   : > { %p6161_p7 = pnand %p6160_p4, %p6331_p5 }
 0x906   : > { %p6166_p11 = por %p6165_p10, %p6164_p9 }
 0x907   : > { %p6162_p8 = pneg %p6161_p7 }
 0x908   : > { %p6168_p13 = por %p6167_p12, %p6166_p11 }
 0x90a   : > { %p6169_p0 = pnand %p6168_p13, %p6162_p8 }
 0x90c   : > { %6172 = shalt.err (!%p6169_p0)
}
 0x90d   : > { %5744 = dma.vmem_to_hbm [thread:$0]  (%p6331_p5), %s8601_s30, 128, %s8599_s16, %s4939_s17  }
 0x90e PF: > { %s8696_s22 = sld [smem:[#allocation7_spill]]  ;;  %p5750_p1 = scmp.ge.s32.totalorder %s6207_s21, 2 }
 0x910   : > { %p5747_p2 = pnand %p5750_p1, %p6335_p6 }
 0x914   : > { %s4964_s27 = sand.u32 1, %s8696_s22  }
 0x915   : > { %s4965_s24 = scalar_lea.sflag [#allocation5], %s4964_s27 }
 0x916   : > { %6190 = dma.done.wait (!%p5747_p2), %s4965_s24, 128  }
 0x917   : > { %6192 = vsyncadd (!%p5747_p2), %s4965_s24, 4294967168  ;;  %s8698_s21 = sld [smem:[#allocation9_spill]]  ;;  %s8699_s23 = sld [smem:[#allocation8_spill]] }
 0x918   : > { %s8700_s20 = sld [smem:[#allocation10_spill]]  ;;  %s8701_s18 = smov %s6199_s19 }
 0x91d   : > { %p25_p3 = scmp.ge.s32.totalorder %s8698_s21, 4   ;;  %s8702_s19 = smov %s8699_s23 }
 0x91f   :  { %27 = sbr.rel (!%p25_p3) target bundleno = 3 (0x3), region = 155 }
 0x926   :  { %4970 = vsyncpa [#allocation5], 1 }
 0x927   :  { %4972 = vsyncpa [#allocation5 + $0x1], 1 }

</bundles_post_ra>
